<compile_context>
chip_gen: v5e
topology: v5e:2x2
jax: 0.10.0
libtpu: 0.0.40
codegen_flags: <defaults>
</compile_context>

<pallas_src>
import jax
import jax.numpy as jnp
from jax.experimental import pallas as pl
from jax.experimental.pallas import tpu as pltpu


# ---------------------------------------------------------------------------
# Small helpers (trace-time hardware introspection, safe fallbacks).
# ---------------------------------------------------------------------------

def _round_up(x, m):
    return ((x + m - 1) // m) * m


def _vmem_capacity_bytes():
    try:
        return int(pltpu.get_tpu_info().vmem_capacity_bytes)
    except Exception:
        return 64 << 20          # v7x per-core VMEM: smallest of the targets


def _num_tensorcores():
    dev = jax.devices()[0]
    for attr in ("num_cores", "core_count", "num_tensorcores"):
        v = getattr(dev, attr, None)
        if isinstance(v, int) and v > 0:
            return v
    kind = str(getattr(dev, "device_kind", "")).lower()
    if "v7" in kind:             # only target generation with 2 TCs per chip
        return 2
    return 1


# ---------------------------------------------------------------------------
# One-time parameter preparation (call at load time, NOT per forward).
# ---------------------------------------------------------------------------

def prepare_params(w_enc, b_enc, w_dec, b_dec):
    """PyTorch layout in: w_enc (H, U), b_enc (H,), w_dec (U, H), b_dec (U,).

    Returns matmul-ready layout: we_t (U, H) bf16, be (1, H) f32,
    wd_t (H, U) bf16, bd (1, U) f32.
    """
    we_t = jnp.asarray(w_enc, jnp.float32).T.astype(jnp.bfloat16)   # (U, H)
    wd_t = jnp.asarray(w_dec, jnp.float32).T.astype(jnp.bfloat16)   # (H, U)
    be = jnp.asarray(b_enc, jnp.float32).reshape(1, -1)             # (1, H)
    bd = jnp.asarray(b_dec, jnp.float32).reshape(1, -1)             # (1, U)
    return we_t, be, wd_t, bd


# ---------------------------------------------------------------------------
# Path 1: resident weights (small/medium U) — single fused matmul pipeline.
# ---------------------------------------------------------------------------

def _resident_kernel(x_ref, we_ref, be_ref, wd_ref, bd_ref, o_ref):
    # Encoder: (TB, U)bf16 @ (U, H)bf16 -> f32 accumulation on the MXU.
    x = x_ref[...].astype(jnp.bfloat16)
    h = jnp.dot(x, we_ref[...], preferred_element_type=jnp.float32)
    h = jax.nn.sigmoid(h + be_ref[...])                 # f32 bias + EUP sigmoid
    pred = jnp.dot(h.astype(jnp.bfloat16), wd_ref[...],
                   preferred_element_type=jnp.float32)  # decoder on the MXU
    o_ref[...] = (pred + bd_ref[...]).astype(o_ref.dtype)


def _const_spec(shape, single_buffer):
    idx_map = lambda i: tuple(0 for _ in shape)          # resident across grid
    if single_buffer:
        # Constant block index -> DMA'd once; single-buffering halves its VMEM.
        return pl.BlockSpec(shape, idx_map, pipeline_mode=pl.Buffered(1))
    return pl.BlockSpec(shape, idx_map)


def _forward_resident(x, we_t, be, wd_t, bd, tb, vmem_cap):
    b_pad, u = x.shape
    h = we_t.shape[1]
    grid = (b_pad // tb,)
    xb = x.dtype.itemsize

    def run(single_buffer):
        wmult = 1 if single_buffer else 2
        need = (wmult * (we_t.size * 2 + wd_t.size * 2 + be.size * 4 + bd.size * 4)
                + 2 * tb * u * xb          # x tiles (double-buffered)
                + 2 * tb * u * 4           # out tiles (double-buffered)
                + tb * u * 2               # bf16 cast temp of the x tile
                + 2 * tb * h * 4)          # encoder pre-activation / hidden temps
        vmem_limit = int(min(max(2 * need, 16 << 20), vmem_cap // 2))
        cost = pl.CostEstimate(
            flops=2 * b_pad * u * h * 2,                 # encoder + decoder matmuls
            transcendentals=b_pad * h,                   # sigmoid
            bytes_accessed=(x.size * xb + we_t.size * 2 + wd_t.size * 2
                            + be.size * 4 + bd.size * 4 + b_pad * u * 4),
        )
        return pl.pallas_call(
            _resident_kernel,
            out_shape=jax.ShapeDtypeStruct((b_pad, u), jnp.float32),
            grid=grid,
            in_specs=[
                pl.BlockSpec((tb, u), lambda i: (i, 0)),   # x: streams per step
                _const_spec((u, h), single_buffer),        # encoder weight (resident)
                _const_spec((1, h), single_buffer),        # encoder bias
                _const_spec((h, u), single_buffer),        # decoder weight (resident)
                _const_spec((1, u), single_buffer),        # decoder bias
            ],
            out_specs=pl.BlockSpec((tb, u), lambda i: (i, 0)),
            compiler_params=pltpu.CompilerParams(
                dimension_semantics=("parallel",),
                vmem_limit_bytes=vmem_limit,
            ),
            cost_estimate=cost,
        )(x, we_t, be, wd_t, bd)

    try:
        return jax.block_until_ready(run(True))
    except Exception:
        # pipeline_mode=pl.Buffered(1) unsupported on this jax/libtpu build:
        # fall back to default double-buffered weight specs (still correct).
        return run(False)


# ---------------------------------------------------------------------------
# Path 2: U-tiled (realistic AutoRec item counts; weights never fully resident).
# Grid = (batch tiles, 2 * nu): first nu steps accumulate the encoder over
# K = U tiles, last nu steps emit decoder N = U output tiles.
# ---------------------------------------------------------------------------

def _tiled_kernel(x_ref, we_ref, be_ref, wd_ref, bd_ref, o_ref, acc_ref, h_ref):
    u = pl.program_id(1)
    nu = pl.num_programs(1) // 2          # encode phase: u < nu; decode: u >= nu

    @pl.when(u < nu)
    def _encode():
        @pl.when(u == 0)
        def _():
            acc_ref[...] = jnp.zeros_like(acc_ref)
        acc_ref[...] += jnp.dot(x_ref[...].astype(jnp.bfloat16), we_ref[...],
                                preferred_element_type=jnp.float32)

        @pl.when(u == nu - 1)
        def _():
            h_ref[...] = jax.nn.sigmoid(acc_ref[...] + be_ref[...]).astype(h_ref.dtype)

    @pl.when(u >= nu)
    def _decode():
        pred = jnp.dot(h_ref[...], wd_ref[...], preferred_element_type=jnp.float32)
        o_ref[...] = (pred + bd_ref[...]).astype(o_ref.dtype)


def _forward_tiled(x, we_t, be, wd_t, bd, tb, tu, vmem_cap):
    b_pad, u_orig = x.shape
    h = we_t.shape[1]
    u_pad = _round_up(u_orig, tu)
    if u_pad != u_orig:
        # TODO(synk): pad U once at parameter-load time instead of per call.
        x = jnp.pad(x, ((0, 0), (0, u_pad - u_orig)))
        we_t = jnp.pad(we_t, ((0, u_pad - u_orig), (0, 0)))
        wd_t = jnp.pad(wd_t, ((0, 0), (0, u_pad - u_orig)))
        bd = jnp.pad(bd, ((0, 0), (0, u_pad - u_orig)))
    nu = u_pad // tu
    xb = x.dtype.itemsize

    need = (2 * tb * tu * xb + 2 * tb * tu * 4        # x / out tiles (dbl-buffered)
            + 2 * tu * h * 2 + 2 * h * tu * 2         # weight tiles
            + 2 * h * 4 + 2 * tu * 4                  # bias tiles
            + tb * h * 4 + tb * h * 2                 # accumulator + hidden scratch
            + tb * tu * 2 + tb * tu * 4)              # cast / matmul temps
    vmem_limit = int(min(max(2 * need, 16 << 20), vmem_cap // 2))

    cost = pl.CostEstimate(
        flops=2 * b_pad * u_pad * h * 2,
        transcendentals=b_pad * h,
        bytes_accessed=(x.size * xb
                        + (b_pad // tb) * (we_t.size * 2 + wd_t.size * 2)
                        + be.size * 4 + bd.size * 4 + b_pad * u_pad * 4),
    )

    out = pl.pallas_call(
        _tiled_kernel,
        out_shape=jax.ShapeDtypeStruct((b_pad, u_pad), jnp.float32),
        grid=(b_pad // tb, 2 * nu),
        in_specs=[
            # x: stream K tiles during encode, hold the last tile during decode.
            pl.BlockSpec((tb, tu), lambda i, u: (i, jnp.minimum(u, nu - 1))),
            # encoder weight: K tiles during encode, parked during decode.
            pl.BlockSpec((tu, h), lambda i, u: (jnp.minimum(u, nu - 1), 0)),
            pl.BlockSpec((1, h), lambda i, u: (0, 0)),
            # decoder weight / bias: N tiles during decode, parked during encode.
            pl.BlockSpec((h, tu), lambda i, u: (0, jnp.maximum(u - nu, 0))),
            pl.BlockSpec((1, tu), lambda i, u: (0, jnp.maximum(u - nu, 0))),
        ],
        out_specs=pl.BlockSpec((tb, tu), lambda i, u: (i, jnp.maximum(u - nu, 0))),
        scratch_shapes=[
            pltpu.VMEM((tb, h), jnp.float32),    # encoder f32 accumulator
            pltpu.VMEM((tb, h), jnp.bfloat16),   # finished hidden activations
        ],
        compiler_params=pltpu.CompilerParams(
            dimension_semantics=("parallel", "arbitrary"),
            vmem_limit_bytes=vmem_limit,
        ),
        cost_estimate=cost,
    )(x, we_t, be, wd_t, bd)
    return out[:, :u_orig] if u_pad != u_orig else out


# ---------------------------------------------------------------------------
# Dispatcher: tile selection + path selection.
# ---------------------------------------------------------------------------

def autorec_forward(x, we_t, be, wd_t, bd, *, batch_tile=None, u_tile=None,
                    force_tiled=False):
    """Eval-mode AutoRec forward: sigmoid(x @ we_t + be) @ wd_t + bd.

    x: (B, U) f32 (or bf16); params as produced by prepare_params().
    """
    b, u = x.shape
    h = we_t.shape[1]
    assert we_t.shape == (u, h) and wd_t.shape == (h, u)

    vmem_cap = _vmem_capacity_bytes()
    num_cores = _num_tensorcores()

    # Batch tile: big tiles (kernel is memory-bound); single block on 1-TC
    # chips, >= num_cores parallel steps on multi-core chips.
    if batch_tile is None:
        cap = 512
        if num_cores <= 1 or b <= 8:
            tb = min(b, cap)
        else:
            tb = min(cap, max(8, _round_up(-(-b // num_cores), 8)))
    else:
        tb = max(1, min(batch_tile, b))
    if tb < b:
        tb = max(8, _round_up(tb, 8))     # sublane alignment for batch tiles
    b_pad = _round_up(b, tb)
    x_p = jnp.pad(x, ((0, b_pad - b), (0, 0))) if b_pad != b else x

    # Path selection from the resident-weights VMEM footprint (~40% of VMEM).
    xb = x.dtype.itemsize
    resident_need = (we_t.size * 2 + wd_t.size * 2 + be.size * 4 + bd.size * 4
                     + 2 * tb * u * xb + 2 * tb * u * 4
                     + tb * u * 2 + 2 * tb * h * 4)
    use_tiled = force_tiled or (resident_need > (vmem_cap * 2) // 5)

    if not use_tiled:
        out = _forward_resident(x_p, we_t, be, wd_t, bd, tb, vmem_cap)
    else:
        tu = u_tile if u_tile is not None else min(512, _round_up(u, 128))
        tu = max(128, _round_up(tu, 128))
        out = _forward_tiled(x_p, we_t, be, wd_t, bd, tb, tu, vmem_cap)
    return out[:b] if b_pad != b else out


# ---------------------------------------------------------------------------
# Demo / self-test.
# ---------------------------------------------------------------------------

if __name__ == "__main__":
    # TPU-tile-friendly demo shapes: num_users (items) U=512, hidden H=128, B=256.
    B, U, H = 256, 512, 128

    key = jax.random.PRNGKey(0)
    k_x, k_we, k_be, k_wd, k_bd = jax.random.split(key, 5)

    x = jax.random.normal(k_x, (B, U), dtype=jnp.float32)
    w_enc = jax.random.uniform(k_we, (H, U), jnp.float32, -1.0, 1.0) / jnp.sqrt(U)
    b_enc = jax.random.uniform(k_be, (H,), jnp.float32, -1.0, 1.0) / jnp.sqrt(U)
    w_dec = jax.random.uniform(k_wd, (U, H), jnp.float32, -1.0, 1.0) / jnp.sqrt(H)
    b_dec = jax.random.uniform(k_bd, (U,), jnp.float32, -1.0, 1.0) / jnp.sqrt(H)

    # One-time parameter prep (transposes + bf16 downcast hoisted out of forward).
    we_t, be, wd_t, bd = jax.block_until_ready(
        prepare_params(w_enc, b_enc, w_dec, b_dec))

    # References: pure-f32 PyTorch-style eval forward + bf16-operand forward.
    hidden_ref = jax.nn.sigmoid(x @ w_enc.T + b_enc)
    pred_ref = hidden_ref @ w_dec.T + b_dec
    h_bf = jax.nn.sigmoid(
        jnp.dot(x.astype(jnp.bfloat16), we_t, preferred_element_type=jnp.float32) + be)
    pred_bf_ref = jnp.dot(h_bf.astype(jnp.bfloat16), wd_t,
                          preferred_element_type=jnp.float32) + bd

    # 1) Default (auto-dispatched, resident-weights) path.
    pred = jax.block_until_ready(autorec_forward(x, we_t, be, wd_t, bd))
    assert pred.shape == (B, U)
    assert jnp.allclose(pred, pred_bf_ref, atol=1e-2, rtol=1e-2), "bf16 ref mismatch"
    assert jnp.allclose(pred, pred_ref, atol=3e-2, rtol=3e-2), "f32 ref mismatch"

    # 2) Force the U-tiled (large item count) path at the same small shape.
    pred_t = jax.block_until_ready(
        autorec_forward(x, we_t, be, wd_t, bd,
                        force_tiled=True, batch_tile=128, u_tile=128))
    assert jnp.allclose(pred_t, pred_ref, atol=3e-2, rtol=3e-2), "tiled path mismatch"
    assert jnp.allclose(pred_t, pred, atol=2e-2, rtol=2e-2), "tiled vs resident mismatch"

    # 3) Ragged batch: exercises pad-and-slice tiling instead of one giant block.
    x_odd = x[:200]
    pred_odd = jax.block_until_ready(
        autorec_forward(x_odd, we_t, be, wd_t, bd, batch_tile=128))
    assert pred_odd.shape == (200, U)
    assert jnp.allclose(pred_odd, pred_ref[:200], atol=3e-2, rtol=3e-2), "ragged mismatch"

    print("KERNEL_OK")
</pallas_src>

<mosaic_0001>
module attributes {stable_mosaic.version = 11 : i64} {
  func.func @_resident_kernel(%arg0: i32, %arg1: memref<256x512xf32, #tpu.memory_space<vmem>>, %arg2: memref<512x128xbf16, #tpu.memory_space<vmem>>, %arg3: memref<1x128xf32, #tpu.memory_space<vmem>>, %arg4: memref<128x512xbf16, #tpu.memory_space<vmem>>, %arg5: memref<1x512xf32, #tpu.memory_space<vmem>>, %arg6: memref<256x512xf32, #tpu.memory_space<vmem>>) attributes {dimension_semantics = [#tpu.dimension_semantics<parallel>], iteration_bounds = array<i64: 1>, scalar_prefetch = 0 : i64, scratch_operands = 0 : i64, tpu.core_type = #tpu.core_type<tc>, window_params = [{transform_indices = @transform_0, window_bounds = array<i64: 256, 512>}, {pipeline_mode = #tpu.pipeline_mode<synchronous>, transform_indices = @transform_1, window_bounds = array<i64: 512, 128>}, {pipeline_mode = #tpu.pipeline_mode<synchronous>, transform_indices = @transform_2, window_bounds = array<i64: 1, 128>}, {pipeline_mode = #tpu.pipeline_mode<synchronous>, transform_indices = @transform_3, window_bounds = array<i64: 128, 512>}, {pipeline_mode = #tpu.pipeline_mode<synchronous>, transform_indices = @transform_4, window_bounds = array<i64: 1, 512>}, {transform_indices = @transform_5, window_bounds = array<i64: 256, 512>}]} {
    %c0 = arith.constant 0 : index
    %c0_0 = arith.constant 0 : index
    %0 = vector.load %arg1[%c0, %c0_0] : memref<256x512xf32, #tpu.memory_space<vmem>>, vector<256x512xf32>
    %1 = arith.truncf %0 : vector<256x512xf32> to vector<256x512xbf16>
    %c0_1 = arith.constant 0 : index
    %c0_2 = arith.constant 0 : index
    %2 = vector.load %arg2[%c0_1, %c0_2] : memref<512x128xbf16, #tpu.memory_space<vmem>>, vector<512x128xbf16>
    %cst = arith.constant dense<0.000000e+00> : vector<256x128xf32>
    %3 = tpu.matmul %1, %2, %cst {dimension_numbers = #tpu.dot_dimension_numbers<[1], [0], [0], [1], [0, 0, 1, 1], [], []>} : vector<256x512xbf16>, vector<512x128xbf16>, vector<256x128xf32> -> vector<256x128xf32>
    %c0_3 = arith.constant 0 : index
    %c0_4 = arith.constant 0 : index
    %4 = vector.load %arg3[%c0_3, %c0_4] : memref<1x128xf32, #tpu.memory_space<vmem>>, vector<1x128xf32>
    %5 = vector.broadcast %4 : vector<1x128xf32> to vector<256x128xf32>
    %6 = arith.addf %3, %5 : vector<256x128xf32>
    %7 = arith.negf %6 : vector<256x128xf32>
    %8 = math.exp %7 : vector<256x128xf32>
    %cst_5 = arith.constant 1.000000e+00 : f32
    %9 = vector.broadcast %cst_5 : f32 to vector<256x128xf32>
    %10 = arith.addf %9, %8 : vector<256x128xf32>
    %11 = arith.divf %9, %10 : vector<256x128xf32>
    %12 = arith.truncf %11 : vector<256x128xf32> to vector<256x128xbf16>
    %c0_6 = arith.constant 0 : index
    %c0_7 = arith.constant 0 : index
    %13 = vector.load %arg4[%c0_6, %c0_7] : memref<128x512xbf16, #tpu.memory_space<vmem>>, vector<128x512xbf16>
    %cst_8 = arith.constant dense<0.000000e+00> : vector<256x512xf32>
    %14 = tpu.matmul %12, %13, %cst_8 {dimension_numbers = #tpu.dot_dimension_numbers<[1], [0], [0], [1], [0, 0, 1, 1], [], []>} : vector<256x128xbf16>, vector<128x512xbf16>, vector<256x512xf32> -> vector<256x512xf32>
    %c0_9 = arith.constant 0 : index
    %c0_10 = arith.constant 0 : index
    %15 = vector.load %arg5[%c0_9, %c0_10] : memref<1x512xf32, #tpu.memory_space<vmem>>, vector<1x512xf32>
    %16 = vector.broadcast %15 : vector<1x512xf32> to vector<256x512xf32>
    %17 = arith.addf %14, %16 : vector<256x512xf32>
    %c0_11 = arith.constant 0 : index
    %c0_12 = arith.constant 0 : index
    %18 = vector.load %arg6[%c0_11, %c0_12] : memref<256x512xf32, #tpu.memory_space<vmem>>, vector<256x512xf32>
    tpu.vector_store %arg6[%c0_11, %c0_12], %17 {strides = array<i32>} : memref<256x512xf32, #tpu.memory_space<vmem>>, vector<256x512xf32>,
    return
  }
  func.func @transform_0(%arg0: i32) -> (i32, i32) {
    %c0_i32 = arith.constant 0 : i32
    %c0_i32_0 = arith.constant 0 : i32
    return %arg0, %c0_i32 : i32, i32
  }
  func.func @transform_1(%arg0: i32) -> (i32, i32) {
    %c0_i32 = arith.constant 0 : i32
    %c0_i32_0 = arith.constant 0 : i32
    %c0_i32_1 = arith.constant 0 : i32
    return %c0_i32, %c0_i32_0 : i32, i32
  }
  func.func @transform_2(%arg0: i32) -> (i32, i32) {
    %c0_i32 = arith.constant 0 : i32
    %c0_i32_0 = arith.constant 0 : i32
    %c0_i32_1 = arith.constant 0 : i32
    return %c0_i32, %c0_i32_0 : i32, i32
  }
  func.func @transform_3(%arg0: i32) -> (i32, i32) {
    %c0_i32 = arith.constant 0 : i32
    %c0_i32_0 = arith.constant 0 : i32
    %c0_i32_1 = arith.constant 0 : i32
    return %c0_i32, %c0_i32_0 : i32, i32
  }
  func.func @transform_4(%arg0: i32) -> (i32, i32) {
    %c0_i32 = arith.constant 0 : i32
    %c0_i32_0 = arith.constant 0 : i32
    %c0_i32_1 = arith.constant 0 : i32
    return %c0_i32, %c0_i32_0 : i32, i32
  }
  func.func @transform_5(%arg0: i32) -> (i32, i32) {
    %c0_i32 = arith.constant 0 : i32
    %c0_i32_0 = arith.constant 0 : i32
    return %arg0, %c0_i32 : i32, i32
  }
}

module attributes {stable_mosaic.version = 11 : i64} {
  func.func @_resident_kernel(%arg0: i32, %arg1: memref<256x512xf32, #tpu.memory_space<vmem>>, %arg2: memref<512x128xbf16, #tpu.memory_space<vmem>>, %arg3: memref<1x128xf32, #tpu.memory_space<vmem>>, %arg4: memref<128x512xbf16, #tpu.memory_space<vmem>>, %arg5: memref<1x512xf32, #tpu.memory_space<vmem>>, %arg6: memref<256x512xf32, #tpu.memory_space<vmem>>) attributes {dimension_semantics = [#tpu.dimension_semantics<parallel>], iteration_bounds = array<i64: 1>, scalar_prefetch = 0 : i64, scratch_operands = 0 : i64, tpu.core_type = #tpu.core_type<tc>, window_params = [{transform_indices = @transform_0, window_bounds = array<i64: 256, 512>}, {pipeline_mode = #tpu.pipeline_mode<synchronous>, transform_indices = @transform_1, window_bounds = array<i64: 512, 128>}, {pipeline_mode = #tpu.pipeline_mode<synchronous>, transform_indices = @transform_2, window_bounds = array<i64: 1, 128>}, {pipeline_mode = #tpu.pipeline_mode<synchronous>, transform_indices = @transform_3, window_bounds = array<i64: 128, 512>}, {pipeline_mode = #tpu.pipeline_mode<synchronous>, transform_indices = @transform_4, window_bounds = array<i64: 1, 512>}, {transform_indices = @transform_5, window_bounds = array<i64: 256, 512>}]} {
    %c0 = arith.constant 0 : index
    %c0_0 = arith.constant 0 : index
    %0 = vector.load %arg1[%c0, %c0_0] : memref<256x512xf32, #tpu.memory_space<vmem>>, vector<256x512xf32>
    %1 = arith.truncf %0 : vector<256x512xf32> to vector<256x512xbf16>
    %c0_1 = arith.constant 0 : index
    %c0_2 = arith.constant 0 : index
    %2 = vector.load %arg2[%c0_1, %c0_2] : memref<512x128xbf16, #tpu.memory_space<vmem>>, vector<512x128xbf16>
    %cst = arith.constant dense<0.000000e+00> : vector<256x128xf32>
    %3 = tpu.matmul %1, %2, %cst {dimension_numbers = #tpu.dot_dimension_numbers<[1], [0], [0], [1], [0, 0, 1, 1], [], []>} : vector<256x512xbf16>, vector<512x128xbf16>, vector<256x128xf32> -> vector<256x128xf32>
    %c0_3 = arith.constant 0 : index
    %c0_4 = arith.constant 0 : index
    %4 = vector.load %arg3[%c0_3, %c0_4] : memref<1x128xf32, #tpu.memory_space<vmem>>, vector<1x128xf32>
    %5 = vector.broadcast %4 : vector<1x128xf32> to vector<256x128xf32>
    %6 = arith.addf %3, %5 : vector<256x128xf32>
    %7 = arith.negf %6 : vector<256x128xf32>
    %8 = math.exp %7 : vector<256x128xf32>
    %cst_5 = arith.constant 1.000000e+00 : f32
    %9 = vector.broadcast %cst_5 : f32 to vector<256x128xf32>
    %10 = arith.addf %9, %8 : vector<256x128xf32>
    %11 = arith.divf %9, %10 : vector<256x128xf32>
    %12 = arith.truncf %11 : vector<256x128xf32> to vector<256x128xbf16>
    %c0_6 = arith.constant 0 : index
    %c0_7 = arith.constant 0 : index
    %13 = vector.load %arg4[%c0_6, %c0_7] : memref<128x512xbf16, #tpu.memory_space<vmem>>, vector<128x512xbf16>
    %cst_8 = arith.constant dense<0.000000e+00> : vector<256x512xf32>
    %14 = tpu.matmul %12, %13, %cst_8 {dimension_numbers = #tpu.dot_dimension_numbers<[1], [0], [0], [1], [0, 0, 1, 1], [], []>} : vector<256x128xbf16>, vector<128x512xbf16>, vector<256x512xf32> -> vector<256x512xf32>
    %c0_9 = arith.constant 0 : index
    %c0_10 = arith.constant 0 : index
    %15 = vector.load %arg5[%c0_9, %c0_10] : memref<1x512xf32, #tpu.memory_space<vmem>>, vector<1x512xf32>
    %16 = vector.broadcast %15 : vector<1x512xf32> to vector<256x512xf32>
    %17 = arith.addf %14, %16 : vector<256x512xf32>
    %c0_11 = arith.constant 0 : index
    %c0_12 = arith.constant 0 : index
    %18 = vector.load %arg6[%c0_11, %c0_12] : memref<256x512xf32, #tpu.memory_space<vmem>>, vector<256x512xf32>
    tpu.vector_store %arg6[%c0_11, %c0_12], %17 {strides = array<i32>} : memref<256x512xf32, #tpu.memory_space<vmem>>, vector<256x512xf32>,
    return
  }
  func.func @transform_0(%arg0: i32) -> (i32, i32) {
    %c0_i32 = arith.constant 0 : i32
    %c0_i32_0 = arith.constant 0 : i32
    return %arg0, %c0_i32 : i32, i32
  }
  func.func @transform_1(%arg0: i32) -> (i32, i32) {
    %c0_i32 = arith.constant 0 : i32
    %c0_i32_0 = arith.constant 0 : i32
    %c0_i32_1 = arith.constant 0 : i32
    return %c0_i32, %c0_i32_0 : i32, i32
  }
  func.func @transform_2(%arg0: i32) -> (i32, i32) {
    %c0_i32 = arith.constant 0 : i32
    %c0_i32_0 = arith.constant 0 : i32
    %c0_i32_1 = arith.constant 0 : i32
    return %c0_i32, %c0_i32_0 : i32, i32
  }
  func.func @transform_3(%arg0: i32) -> (i32, i32) {
    %c0_i32 = arith.constant 0 : i32
    %c0_i32_0 = arith.constant 0 : i32
    %c0_i32_1 = arith.constant 0 : i32
    return %c0_i32, %c0_i32_0 : i32, i32
  }
  func.func @transform_4(%arg0: i32) -> (i32, i32) {
    %c0_i32 = arith.constant 0 : i32
    %c0_i32_0 = arith.constant 0 : i32
    %c0_i32_1 = arith.constant 0 : i32
    return %c0_i32, %c0_i32_0 : i32, i32
  }
  func.func @transform_5(%arg0: i32) -> (i32, i32) {
    %c0_i32 = arith.constant 0 : i32
    %c0_i32_0 = arith.constant 0 : i32
    return %arg0, %c0_i32 : i32, i32
  }
}

</mosaic_0001>

<bundles_post_ra>
// kernel: tpu_custom_call.1
= control target key start
LH: loop header
LB: loop body
LE: loop exit
PB: predicated region body
PF: predicated region fallthrough
CT: control target
= control target key end

     0   :  { %10 = vsyncpa [#allocation3], 0  ;;  %s3708_s0 = inlined_call_operand.hbm [shape: f32[256,512], index: 0, kind: input, shape index: {}]   ;;  %s3709_s1 = inlined_call_operand.hbm [shape: bf16[512,128], index: 1, kind: input, shape index: {}]   ;;  %s3710_s2 = inlined_call_operand.vmem [shape: f32[1,128], index: 2, kind: input, shape index: {}]   ;;  %s3711_s3 = inlined_call_operand.hbm [shape: bf16[128,512], index: 3, kind: input, shape index: {}]   ;;  %s3712_s4 = inlined_call_operand.hbm [shape: f32[1,512], index: 4, kind: input, shape index: {}]   ;;  %s3713_s5 = inlined_call_operand.hbm [shape: f32[256,512], index: 5, kind: output, shape index: {}]  }
   0x1   :  { %11 = vsyncpa [#allocation6], 0 }
   0x2   :  { %12 = vsyncpa [#allocation9], 0  ;;  %s31_s20 = sshll.u32 %s3709_s1, 4  ;;  %s32_s20 = int_to_ptr.hbm [resolvable:$true] %s31_s20 }
   0x3   :  { %13 = vsyncpa [#allocation4], 0  ;;  %s2842_s21 = smov [#allocation5]   ;;  %s18_s25 = sshll.u32 %s3708_s0, 4  ;;  %s19_s25 = int_to_ptr.hbm [resolvable:$true] %s18_s25 }
   0x4   :  { %s33_s22 = sshll.u32 %s2842_s21, 4  ;;  %s2843_s26 = smov 64   ;;  %s34_s22 = int_to_ptr.vmem [resolvable:$true] %s33_s22 }
   0x5   :  { %s2844_s27 = smov 4   ;;  %s2845_s28 = smov [#allocation2]  }
   0x6   :  { %39 = dma.hbm_to_vmem [thread:$0]  %s32_s20, 4096, %s34_s22, [#allocation6], %s2843_s26, %s2843_s26, %s2844_s27  }
   0x7   :  { %s20_s29 = sshll.u32 %s2845_s28, 4  ;;  %s2846_s30 = smov 512   ;;  %s21_s29 = int_to_ptr.vmem [resolvable:$true] %s20_s29 }
   0x8   :  { %s2847_s6 = smov 32   ;;  %s46_s8 = sshll.u32 %s3711_s3, 4  ;;  %s47_s8 = int_to_ptr.hbm [resolvable:$true] %s46_s8 }
   0x9   :  { %26 = dma.hbm_to_vmem [thread:$0]  %s19_s25, 16384, %s21_s29, [#allocation3], %s2846_s30, %s2846_s30, %s2847_s6  }
   0xa   :  { %s2848_s9 = smov [#allocation7]   ;;  %s60_s12 = sshll.u32 %s3712_s4, 4  ;;  %s61_s12 = int_to_ptr.hbm [resolvable:$true] %s60_s12 }
   0xb   :  { %s48_s0 = sshll.u32 %s2848_s9, 4  ;;  %s2849_s13 = smov 256   ;;  %s49_s0 = int_to_ptr.vmem [resolvable:$true] %s48_s0 }
   0xc   :  { %s2850_s14 = smov 16   ;;  %s2851_s15 = smov [#allocation8]  }
   0xd   :  { %54 = dma.hbm_to_vmem [thread:$0]  %s47_s8, 4096, %s49_s0, [#allocation6], %s2849_s13, %s2849_s13, %s2850_s14  }
   0xe   :  { %s62_s16 = sshll.u32 %s2851_s15, 4  ;;  %s63_s16 = int_to_ptr.vmem [resolvable:$true] %s62_s16 }
   0xf   :  { %65 = dma.hbm_to_vmem [thread:$0]  %s61_s12, 64, %s63_s16, [#allocation9]  }
  0x10   :  { %2834 = dma.done.wait [#allocation3], 16384  }
  0x11   :  { %2835 = vsyncadd [#allocation3], 4294950912 }
  0x12   :  { %2836 = dma.done.wait [#allocation6], 8192  }
  0x13   :  { %2837 = vsyncadd [#allocation6], 4294959104 }
  0x14   :  { %2838 = dma.done.wait [#allocation9], 64  }
  0x15   :  { %2839 = vsyncadd [#allocation9], 4294967232  ;;  %v2516_v0 = vld [vmem:[#allocation5 + $0x38] sm:$0xff]  ;;  %v2515_v4 = vld [vmem:[#allocation5 + $0x30] sm:$0xff]  ;;  %s2206_s22 = sshll.u32 %s3713_s5, 4  ;;  %s2207_s22 = int_to_ptr.hbm [resolvable:$true] %s2206_s22 }
  0x16   :  { %v2524_v1 = vld [vmem:[#allocation5 + $0x78] sm:$0xff]  ;;  %534 = vmatpush.bf16.msra.mxu0 %v2516_v0  ;;  %v2523_v5 = vld [vmem:[#allocation5 + $0x70] sm:$0xff]  ;;  %v2514_v8 = vld [vmem:[#allocation5 + $0x28] sm:$0xff] }
  0x17   :  { %v2532_v2 = vld [vmem:[#allocation5 + $0xb8] sm:$0xff]  ;;  %623 = vmatpush.bf16.msra.mxu1 %v2524_v1  ;;  %v2531_v6 = vld [vmem:[#allocation5 + $0xb0] sm:$0xff]  ;;  %v2522_v9 = vld [vmem:[#allocation5 + $0x68] sm:$0xff] }
  0x18   :  { %v2540_v3 = vld [vmem:[#allocation5 + $0xf8] sm:$0xff]  ;;  %712 = vmatpush.bf16.msra.mxu2 %v2532_v2  ;;  %v2539_v7 = vld [vmem:[#allocation5 + $0xf0] sm:$0xff]  ;;  %v2530_v10 = vld [vmem:[#allocation5 + $0xa8] sm:$0xff] }
  0x19   :  { %801 = vmatpush.bf16.msra.mxu3 %v2540_v3  ;;  %v2538_v11 = vld [vmem:[#allocation5 + $0xe8] sm:$0xff]  ;;  %v2513_v12 = vld [vmem:[#allocation5 + $0x20] sm:$0xff]  ;;  %v2512_v16 = vld [vmem:[#allocation5 + $0x18] sm:$0xff] }
  0x1a   :  { %535 = vmatpush.bf16.msra.mxu0 %v2515_v4  ;;  %v2521_v13 = vld [vmem:[#allocation5 + $0x60] sm:$0xff]  ;;  %v2520_v17 = vld [vmem:[#allocation5 + $0x58] sm:$0xff]  ;;  %v2511_v20 = vld [vmem:[#allocation5 + $0x10] sm:$0xff] }
  0x1b   :  { %624 = vmatpush.bf16.msra.mxu1 %v2523_v5  ;;  %v2529_v14 = vld [vmem:[#allocation5 + $0xa0] sm:$0xff]  ;;  %v2528_v18 = vld [vmem:[#allocation5 + $0x98] sm:$0xff]  ;;  %v2519_v21 = vld [vmem:[#allocation5 + $0x50] sm:$0xff] }
  0x1c   :  { %713 = vmatpush.bf16.msra.mxu2 %v2531_v6  ;;  %v2537_v15 = vld [vmem:[#allocation5 + $0xe0] sm:$0xff]  ;;  %v2536_v19 = vld [vmem:[#allocation5 + $0xd8] sm:$0xff]  ;;  %v2527_v22 = vld [vmem:[#allocation5 + $0x90] sm:$0xff] }
  0x1d   :  { %802 = vmatpush.bf16.msra.mxu3 %v2539_v7  ;;  %v2535_v23 = vld [vmem:[#allocation5 + $0xd0] sm:$0xff]  ;;  %v2510_v24 = vld [vmem:[#allocation5 + $0x8] sm:$0xff]  ;;  %v2509_v28 = vld [vmem:[#allocation5] sm:$0xff] }
  0x1e   :  { %536 = vmatpush.bf16.msra.mxu0 %v2514_v8  ;;  %v2518_v25 = vld [vmem:[#allocation5 + $0x48] sm:$0xff]  ;;  %v2517_v29 = vld [vmem:[#allocation5 + $0x40] sm:$0xff]  ;;  %v2572_v36 = vld [vmem:[#allocation7 + $0xf4] sm:$0xf0] }
  0x1f   :  { %625 = vmatpush.bf16.msra.mxu1 %v2522_v9  ;;  %v2526_v26 = vld [vmem:[#allocation5 + $0x88] sm:$0xff]  ;;  %v82_v30 = vld [vmem:[#allocation2] sm:$0xff]  ;;  %v2505_v38 = vld [vmem:[#allocation7 + $0xf8] sm:$0xf0] }
  0x20   :  { %714 = vmatpush.bf16.msra.mxu2 %v2530_v10  ;;  %v2534_v27 = vld [vmem:[#allocation5 + $0xc8] sm:$0xff]  ;;  %v86_v31 = vld [vmem:[#allocation2 + $0x20] sm:$0xff]  ;;  %v84_v40 = vld [vmem:[#allocation2 + $0x10] sm:$0xff] }
  0x21   :  { %803 = vmatpush.bf16.msra.mxu3 %v2538_v11  ;;  %v83_v32 = vld [vmem:[#allocation2 + $0x8] sm:$0xff]  ;;  %v2525_v34 = vld [vmem:[#allocation5 + $0x80] sm:$0xff]  ;;  %v88_v41 = vld [vmem:[#allocation2 + $0x30] sm:$0xff]  ;;  %v210_v50 = vpack.c.bf16 %v86_v31, %v82_v30 }
  0x22   :  { %537 = vmatpush.bf16.msra.mxu0 %v2513_v12  ;;  %v2503_v33 = vld [vmem:[#allocation7 + $0xe8] sm:$0xf]  ;;  %v2533_v35 = vld [vmem:[#allocation5 + $0xc0] sm:$0xff]  ;;  %v2570_v37 = vld [vmem:[#allocation7 + $0xec] sm:$0xf]  ;;  %v212_v52 = vpack.c.bf16 %v88_v41, %v84_v40 }
  0x23   :  { %626 = vmatpush.bf16.msra.mxu1 %v2521_v13  ;;  %v87_v39 = vld [vmem:[#allocation2 + $0x28] sm:$0xff]  ;;  %v85_v42 = vld [vmem:[#allocation2 + $0x18] sm:$0xff]  ;;  %v2495_v44 = vld [vmem:[#allocation7 + $0xe0] sm:$0xf]  ;;  %v2504_v45 = vor.u32 %v2572_v36, %v2503_v33  ;;  %v2508_v46 = vor.u32 %v2570_v37, %v2505_v38 }
  0x24   :  { %715 = vmatpush.bf16.msra.mxu2 %v2529_v14  ;;  %v89_v43 = vld [vmem:[#allocation2 + $0x38] sm:$0xff]  ;;  %v2571_v47 = vld [vmem:[#allocation7 + $0xec] sm:$0xf0]  ;;  %v2569_v48 = vld [vmem:[#allocation7 + $0xe4] sm:$0xf]  ;;  %v211_v51 = vpack.c.bf16 %v87_v39, %v83_v32 }
  0x25   :  { %804 = vmatpush.bf16.msra.mxu3 %v2537_v15  ;;  %v2497_v49 = vld [vmem:[#allocation7 + $0xf0] sm:$0xf0]  ;;  %v213_v53 = vpack.c.bf16 %v89_v43, %v85_v42  ;;  %v2496_v54 = vor.u32 %v2571_v47, %v2495_v44  ;;  %v2487_v56 = vld [vmem:[#allocation7 + $0xc8] sm:$0xf]  ;;  %v2568_v57 = vld [vmem:[#allocation7 + $0xd4] sm:$0xf0] }
  0x26   :  { %538 = vmatpush.bf16.msra.mxu0 %v2512_v16  ;;  %v2500_v55 = vor.u32 %v2569_v48, %v2497_v49  ;;  %v2566_v58 = vld [vmem:[#allocation7 + $0xcc] sm:$0xf]  ;;  %v2488_v59 = vor.u32 %v2568_v57, %v2487_v56  ;;  %v2489_v60 = vld [vmem:[#allocation7 + $0xd8] sm:$0xf0]  ;;  %v2479_v61 = vld [vmem:[#allocation7 + $0xc0] sm:$0xf] }
  0x27   :  { %627 = vmatpush.bf16.msra.mxu1 %v2520_v17  ;;  %v2567_v62 = vld [vmem:[#allocation7 + $0xcc] sm:$0xf0]  ;;  %v2492_v63 = vor.u32 %v2566_v58, %v2489_v60  ;;  %v2565_v1 = vld [vmem:[#allocation7 + $0xc4] sm:$0xf]  ;;  %v2481_v2 = vld [vmem:[#allocation7 + $0xd0] sm:$0xf0] }
  0x28   :  { %716 = vmatpush.bf16.msra.mxu2 %v2528_v18  ;;  %v2480_v0 = vor.u32 %v2567_v62, %v2479_v61  ;;  %v2484_v3 = vor.u32 %v2565_v1, %v2481_v2  ;;  %v90_v4 = vld [vmem:[#allocation2 + $0x40] sm:$0xff]  ;;  %v91_v6 = vld [vmem:[#allocation2 + $0x48] sm:$0xff]  ;;  %v92_v8 = vld [vmem:[#allocation2 + $0x50] sm:$0xff] }
  0x29   :  { %805 = vmatpush.bf16.msra.mxu3 %v2536_v19  ;;  %v94_v5 = vld [vmem:[#allocation2 + $0x60] sm:$0xff]  ;;  %v95_v7 = vld [vmem:[#allocation2 + $0x68] sm:$0xff]  ;;  %v96_v9 = vld [vmem:[#allocation2 + $0x70] sm:$0xff] }
  0x2a   :  { %539 = vmatpush.bf16.msra.mxu0 %v2511_v20  ;;  %v93_v10 = vld [vmem:[#allocation2 + $0x58] sm:$0xff]  ;;  %v214_v12 = vpack.c.bf16 %v94_v5, %v90_v4  ;;  %v215_v13 = vpack.c.bf16 %v95_v7, %v91_v6  ;;  %v216_v14 = vpack.c.bf16 %v96_v9, %v92_v8  ;;  %v98_v16 = vld [vmem:[#allocation2 + $0x80] sm:$0xff]  ;;  %v99_v18 = vld [vmem:[#allocation2 + $0x88] sm:$0xff] }
  0x2b   :  { %628 = vmatpush.bf16.msra.mxu1 %v2519_v21  ;;  %v97_v11 = vld [vmem:[#allocation2 + $0x78] sm:$0xff]  ;;  %v102_v17 = vld [vmem:[#allocation2 + $0xa0] sm:$0xff]  ;;  %v103_v19 = vld [vmem:[#allocation2 + $0xa8] sm:$0xff] }
  0x2c   :  { %717 = vmatpush.bf16.msra.mxu2 %v2527_v22  ;;  %v217_v15 = vpack.c.bf16 %v97_v11, %v93_v10  ;;  %v100_v20 = vld [vmem:[#allocation2 + $0x90] sm:$0xff]  ;;  %v101_v22 = vld [vmem:[#allocation2 + $0x98] sm:$0xff]  ;;  %v2562_v30 = vld [vmem:[#allocation7 + $0xac] sm:$0xf] }
  0x2d   :  { %806 = vmatpush.bf16.msra.mxu3 %v2535_v23  ;;  %v104_v21 = vld [vmem:[#allocation2 + $0xb0] sm:$0xff]  ;;  %v105_v23 = vld [vmem:[#allocation2 + $0xb8] sm:$0xff]  ;;  %v2463_v33 = vld [vmem:[#allocation7 + $0xa0] sm:$0xf] }
  0x2e   :  { %540 = vmatpush.bf16.msra.mxu0 %v2510_v24  ;;  %v218_v24 = vpack.c.bf16 %v102_v17, %v98_v16  ;;  %v2473_v32 = vld [vmem:[#allocation7 + $0xb8] sm:$0xf0]  ;;  %v2561_v37 = vld [vmem:[#allocation7 + $0xa4] sm:$0xf]  ;;  %v2465_v38 = vld [vmem:[#allocation7 + $0xb0] sm:$0xf0] }
  0x2f   :  { %629 = vmatpush.bf16.msra.mxu1 %v2518_v25  ;;  %v219_v25 = vpack.c.bf16 %v103_v19, %v99_v18  ;;  %v2468_v39 = vor.u32 %v2561_v37, %v2465_v38  ;;  %v106_v40 = vld [vmem:[#allocation2 + $0xc0] sm:$0xff]  ;;  %v107_v42 = vld [vmem:[#allocation2 + $0xc8] sm:$0xff]  ;;  %v108_v44 = vld [vmem:[#allocation2 + $0xd0] sm:$0xff] }
  0x30   :  { %718 = vmatpush.bf16.msra.mxu2 %v2526_v26  ;;  %v220_v26 = vpack.c.bf16 %v104_v21, %v100_v20  ;;  %v110_v41 = vld [vmem:[#allocation2 + $0xe0] sm:$0xff]  ;;  %v111_v43 = vld [vmem:[#allocation2 + $0xe8] sm:$0xff]  ;;  %v113_v47 = vld [vmem:[#allocation2 + $0xf8] sm:$0xff] }
  0x31   :  { %807 = vmatpush.bf16.msra.mxu3 %v2534_v27  ;;  %v221_v27 = vpack.c.bf16 %v105_v23, %v101_v22  ;;  %v222_v48 = vpack.c.bf16 %v110_v41, %v106_v40  ;;  %v223_v49 = vpack.c.bf16 %v111_v43, %v107_v42  ;;  %v116_v56 = vld [vmem:[#allocation2 + $0x110] sm:$0xff]  ;;  %v117_v58 = vld [vmem:[#allocation2 + $0x118] sm:$0xff]  ;;  %v2558_v2 = vld [vmem:[#allocation7 + $0x8c] sm:$0xf] }
  0x32   :  { %541 = vmatpush.bf16.msra.mxu0 %v2509_v28  ;;  %v2471_v28 = vld [vmem:[#allocation7 + $0xa8] sm:$0xf]  ;;  %v120_v57 = vld [vmem:[#allocation2 + $0x130] sm:$0xff]  ;;  %v2560_v1 = vld [vmem:[#allocation7 + $0x94] sm:$0xf0] }
  0x33   :  { %630 = vmatpush.bf16.msra.mxu1 %v2517_v29  ;;  %v2564_v29 = vld [vmem:[#allocation7 + $0xb4] sm:$0xf0]  ;;  %v228_v62 = vpack.c.bf16 %v120_v57, %v116_v56  ;;  %v2457_v4 = vld [vmem:[#allocation7 + $0x98] sm:$0xf0]  ;;  %v2447_v5 = vld [vmem:[#allocation7 + $0x80] sm:$0xf] }
  0x34   :  { %719 = vmatpush.bf16.msra.mxu2 %v2525_v34  ;;  %v2472_v31 = vor.u32 %v2564_v29, %v2471_v28  ;;  %v2563_v34 = vld [vmem:[#allocation7 + $0xac] sm:$0xf0]  ;;  %v2460_v7 = vor.u32 %v2558_v2, %v2457_v4  ;;  %v2557_v9 = vld [vmem:[#allocation7 + $0x84] sm:$0xf]  ;;  %v2449_v10 = vld [vmem:[#allocation7 + $0x90] sm:$0xf0] }
  0x35   :  { %808 = vmatpush.bf16.msra.mxu3 %v2533_v35  ;;  %542 = vmatmul.bf16.vlgmr.msra.gmra.mxu0 %v210_v50  ;;  %v2476_v35 = vor.u32 %v2562_v30, %v2473_v32  ;;  %v2464_v36 = vor.u32 %v2563_v34, %v2463_v33  ;;  %v2559_v6 = vld [vmem:[#allocation7 + $0x8c] sm:$0xf0]  ;;  %v2452_v11 = vor.u32 %v2557_v9, %v2449_v10  ;;  %v125_v18 = vld [vmem:[#allocation2 + $0x158] sm:$0xff]  ;;  %v2554_v38 = vld [vmem:[#allocation7 + $0x6c] sm:$0xf] }
  0x36   :  { %631 = vmatmul.bf16.vlgmr.msra.gmra.mxu1 %v211_v51  ;;  %1716 = vmatpush.bf16.msrb.mxu0 %v2496_v54  ;;  %v115_v54 = vld [vmem:[#allocation2 + $0x108] sm:$0xff]  ;;  %v2448_v8 = vor.u32 %v2559_v6, %v2447_v5  ;;  %v124_v16 = vld [vmem:[#allocation2 + $0x150] sm:$0xff]  ;;  %v129_v19 = vld [vmem:[#allocation2 + $0x178] sm:$0xff] }
  0x37   :  { %720 = vmatmul.bf16.vlgmr.msra.gmra.mxu2 %v212_v52  ;;  %1805 = vmatpush.bf16.msrb.mxu1 %v2500_v55  ;;  %v114_v52 = vld [vmem:[#allocation2 + $0x100] sm:$0xff]  ;;  %v119_v55 = vld [vmem:[#allocation2 + $0x128] sm:$0xff]  ;;  %v128_v17 = vld [vmem:[#allocation2 + $0x170] sm:$0xff]  ;;  %v233_v23 = vpack.c.bf16 %v129_v19, %v125_v18 }
  0x38   :  { %1894 = vmatpush.bf16.msrb.mxu2 %v2504_v45  ;;  %809 = vmatmul.bf16.vlgmr.msra.gmra.mxu3 %v213_v53  ;;  %v112_v45 = vld [vmem:[#allocation2 + $0xf0] sm:$0xff]  ;;  %v118_v53 = vld [vmem:[#allocation2 + $0x120] sm:$0xff]  ;;  %v227_v61 = vpack.c.bf16 %v119_v55, %v115_v54  ;;  %v232_v22 = vpack.c.bf16 %v128_v17, %v124_v16  ;;  %v133_v30 = vld [vmem:[#allocation2 + $0x198] sm:$0xff] }
  0x39   :  { %1983 = vmatpush.bf16.msrb.mxu3 %v2508_v46  ;;  %v109_v46 = vld [vmem:[#allocation2 + $0xd8] sm:$0xff]  ;;  %v224_v50 = vpack.c.bf16 %v112_v45, %v108_v44  ;;  %v226_v60 = vpack.c.bf16 %v118_v53, %v114_v52  ;;  %v132_v28 = vld [vmem:[#allocation2 + $0x190] sm:$0xff]  ;;  %v138_v42 = vld [vmem:[#allocation2 + $0x1c0] sm:$0xff] }
  0x3a   :  { %1717 = vmatpush.bf16.msrb.mxu0 %v2480_v0  ;;  %v225_v51 = vpack.c.bf16 %v113_v47, %v109_v46  ;;  %v2455_v0 = vld [vmem:[#allocation7 + $0x88] sm:$0xf]  ;;  %v136_v29 = vld [vmem:[#allocation2 + $0x1b0] sm:$0xff]  ;;  %v2556_v37 = vld [vmem:[#allocation7 + $0x74] sm:$0xf0] }
  0x3b   :  { %1806 = vmatpush.bf16.msrb.mxu1 %v2484_v3  ;;  %v2456_v3 = vor.u32 %v2560_v1, %v2455_v0  ;;  %v236_v34 = vpack.c.bf16 %v136_v29, %v132_v28  ;;  %v2441_v40 = vld [vmem:[#allocation7 + $0x78] sm:$0xf0]  ;;  %v142_v43 = vld [vmem:[#allocation2 + $0x1e0] sm:$0xff]  ;;  %v139_v44 = vld [vmem:[#allocation2 + $0x1c8] sm:$0xff] }
  0x3c   :  { %1895 = vmatpush.bf16.msrb.mxu2 %v2488_v59  ;;  %v121_v59 = vld [vmem:[#allocation2 + $0x138] sm:$0xff]  ;;  %v2444_v41 = vor.u32 %v2554_v38, %v2441_v40  ;;  %v143_v45 = vld [vmem:[#allocation2 + $0x1e8] sm:$0xff]  ;;  %v140_v46 = vld [vmem:[#allocation2 + $0x1d0] sm:$0xff] }
  0x3d   :  { %1984 = vmatpush.bf16.msrb.mxu3 %v2492_v63  ;;  %v229_v63 = vpack.c.bf16 %v121_v59, %v117_v58  ;;  %v144_v47 = vld [vmem:[#allocation2 + $0x1f0] sm:$0xff]  ;;  %v2901_v54 = vld [vmem:[%s3710_s2] ss:$0 sm:$0xff]  ;;  %v147_v57 = vld [vmem:[#allocation2 + $0x208] sm:$0xff] }
  0x3e   :  { %1718 = vmatpush.bf16.msrb.mxu0 %v2464_v36  ;;  %v2439_v36 = vld [vmem:[#allocation7 + $0x68] sm:$0xf]  ;;  %v240_v52 = vpack.c.bf16 %v144_v47, %v140_v46  ;;  %v146_v55 = vld [vmem:[#allocation2 + $0x200] sm:$0xff]  ;;  %v148_v59 = vld [vmem:[#allocation2 + $0x210] sm:$0xff] }
  0x3f   :  { %1807 = vmatpush.bf16.msrb.mxu1 %v2468_v39  ;;  %v2440_v39 = vor.u32 %v2556_v37, %v2439_v36  ;;  %v150_v56 = vld [vmem:[#allocation2 + $0x220] sm:$0xff]  ;;  %v151_v58 = vld [vmem:[#allocation2 + $0x228] sm:$0xff]  ;;  %v2555_v6 = vld [vmem:[#allocation7 + $0x6c] sm:$0xf0] }
  0x40   :  { %1896 = vmatpush.bf16.msrb.mxu2 %v2472_v31  ;;  %v137_v31 = vld [vmem:[#allocation2 + $0x1b8] sm:$0xff]  ;;  %v243_v0 = vpack.c.bf16 %v151_v58, %v147_v57  ;;  %v2431_v5 = vld [vmem:[#allocation7 + $0x60] sm:$0xf]  ;;  %v2433_v10 = vld [vmem:[#allocation7 + $0x70] sm:$0xf0] }
  0x41   :  { %1985 = vmatpush.bf16.msrb.mxu3 %v2476_v35  ;;  %v237_v35 = vpack.c.bf16 %v137_v31, %v133_v30  ;;  %v2432_v9 = vor.u32 %v2555_v6, %v2431_v5  ;;  %v157_v28 = vld [vmem:[#allocation2 + $0x258] sm:$0xff]  ;;  %v168_v5 = vld [vmem:[#allocation2 + $0x2b0] sm:$0xff] }
  0x42   :  { %1719 = vmatpush.bf16.msrb.mxu0 %v2448_v8  ;;  %v161_v29 = vld [vmem:[#allocation2 + $0x278] sm:$0xff] }
  0x43   :  { %1808 = vmatpush.bf16.msrb.mxu1 %v2452_v11  ;;  %v249_v38 = vpack.c.bf16 %v161_v29, %v157_v28  ;;  %v165_v6 = vld [vmem:[#allocation2 + $0x298] sm:$0xff] }
  0x44   :  { %1897 = vmatpush.bf16.msrb.mxu2 %v2456_v3 }
  0x45   :  { %547 = vmatmul.bf16.gmra.mxu0 %v214_v12  ;;  %1986 = vmatpush.bf16.msrb.mxu3 %v2460_v7  ;;  %v122_v12 = vld [vmem:[#allocation2 + $0x140] sm:$0xff] }
  0x46   :  { %636 = vmatmul.bf16.gmra.mxu1 %v215_v13  ;;  %v126_v13 = vld [vmem:[#allocation2 + $0x160] sm:$0xff]  ;;  %1720 = vmatpush.bf16.msrb.mxu0 %v2432_v9 }
  0x47   :  { %725 = vmatmul.bf16.gmra.mxu2 %v216_v14  ;;  %v123_v14 = vld [vmem:[#allocation2 + $0x148] sm:$0xff]  ;;  %v230_v20 = vpack.c.bf16 %v126_v13, %v122_v12  ;;  %v2553_v7 = vld [vmem:[#allocation7 + $0x64] sm:$0xf] }
  0x48   :  { %814 = vmatmul.bf16.gmra.mxu3 %v217_v15  ;;  %v127_v15 = vld [vmem:[#allocation2 + $0x168] sm:$0xff]  ;;  %1898 = vmatpush.bf16.msrb.mxu2 %v2440_v39  ;;  %v2436_v11 = vor.u32 %v2553_v7, %v2433_v10  ;;  %v169_v7 = vld [vmem:[#allocation2 + $0x2b8] sm:$0xff] }
  0x49   :  { %v231_v21 = vpack.c.bf16 %v127_v15, %v123_v14  ;;  %1987 = vmatpush.bf16.msrb.mxu3 %v2444_v41 }
  0x4a   :  { %1809 = vmatpush.bf16.msrb.mxu1 %v2436_v11 }
  0x55   :  { %552 = vmatmul.bf16.gmra.mxu0 %v218_v24  ;;  %v130_v24 = vld [vmem:[#allocation2 + $0x180] sm:$0xff] }
  0x56   :  { %641 = vmatmul.bf16.gmra.mxu1 %v219_v25  ;;  %v134_v25 = vld [vmem:[#allocation2 + $0x1a0] sm:$0xff] }
  0x57   :  { %730 = vmatmul.bf16.gmra.mxu2 %v220_v26  ;;  %v131_v26 = vld [vmem:[#allocation2 + $0x188] sm:$0xff]  ;;  %v234_v32 = vpack.c.bf16 %v134_v25, %v130_v24 }
  0x58   :  { %819 = vmatmul.bf16.gmra.mxu3 %v221_v27  ;;  %v135_v27 = vld [vmem:[#allocation2 + $0x1a8] sm:$0xff] }
  0x59   :  { %v235_v33 = vpack.c.bf16 %v135_v27, %v131_v26  ;;  %v155_v24 = vld [vmem:[#allocation2 + $0x248] sm:$0xff]  ;;  %v156_v26 = vld [vmem:[#allocation2 + $0x250] sm:$0xff] }
  0x5a   :  { %v159_v25 = vld [vmem:[#allocation2 + $0x268] sm:$0xff]  ;;  %v160_v27 = vld [vmem:[#allocation2 + $0x270] sm:$0xff] }
  0x5b   :  { %v248_v37 = vpack.c.bf16 %v160_v27, %v156_v26 }
  0x65   :  { %557 = vmatmul.bf16.gmra.mxu0 %v222_v48  ;;  %v141_v48 = vld [vmem:[#allocation2 + $0x1d8] sm:$0xff] }
  0x66   :  { %646 = vmatmul.bf16.gmra.mxu1 %v223_v49  ;;  %v145_v49 = vld [vmem:[#allocation2 + $0x1f8] sm:$0xff] }
  0x67   :  { %735 = vmatmul.bf16.gmra.mxu2 %v224_v50  ;;  %v238_v50 = vpack.c.bf16 %v142_v43, %v138_v42  ;;  %v241_v53 = vpack.c.bf16 %v145_v49, %v141_v48 }
  0x68   :  { %824 = vmatmul.bf16.gmra.mxu3 %v225_v51  ;;  %v239_v51 = vpack.c.bf16 %v143_v45, %v139_v44 }
  0x75   :  { %562 = vmatmul.bf16.gmra.mxu0 %v226_v60  ;;  %v152_v60 = vld [vmem:[#allocation2 + $0x230] sm:$0xff] }
  0x76   :  { %651 = vmatmul.bf16.gmra.mxu1 %v227_v61  ;;  %v149_v61 = vld [vmem:[#allocation2 + $0x218] sm:$0xff]  ;;  %v244_v3 = vpack.c.bf16 %v152_v60, %v148_v59  ;;  %v162_v60 = vld [vmem:[#allocation2 + $0x280] sm:$0xff] }
  0x77   :  { %740 = vmatmul.bf16.gmra.mxu2 %v228_v62  ;;  %v153_v62 = vld [vmem:[#allocation2 + $0x238] sm:$0xff] }
  0x78   :  { %829 = vmatmul.bf16.gmra.mxu3 %v229_v63  ;;  %v242_v63 = vpack.c.bf16 %v150_v56, %v146_v55  ;;  %v245_v4 = vpack.c.bf16 %v153_v62, %v149_v61  ;;  %v2425_v56 = vld [vmem:[#allocation7 + $0x58] sm:$0xf0]  ;;  %v166_v61 = vld [vmem:[#allocation2 + $0x2a0] sm:$0xff] }
  0x79   :  { %v250_v11 = vpack.c.bf16 %v166_v61, %v162_v60  ;;  %v172_v60 = vld [vmem:[#allocation2 + $0x2d0] sm:$0xff] }
  0x7a   :  { %v176_v61 = vld [vmem:[#allocation2 + $0x2f0] sm:$0xff] }
  0x85   :  { %567 = vmatmul.bf16.gmra.mxu0 %v230_v20 }
  0x86   :  { %656 = vmatmul.bf16.gmra.mxu1 %v231_v21  ;;  %v154_v21 = vld [vmem:[#allocation2 + $0x240] sm:$0xff] }
  0x87   :  { %745 = vmatmul.bf16.gmra.mxu2 %v232_v22  ;;  %v158_v22 = vld [vmem:[#allocation2 + $0x260] sm:$0xff] }
  0x88   :  { %834 = vmatmul.bf16.gmra.mxu3 %v233_v23 }
  0x95   :  { %572 = vmatmul.bf16.gmra.mxu0 %v234_v32  ;;  %v246_v32 = vpack.c.bf16 %v158_v22, %v154_v21 }
  0x96   :  { %661 = vmatmul.bf16.gmra.mxu1 %v235_v33  ;;  %v247_v33 = vpack.c.bf16 %v159_v25, %v155_v24  ;;  %v2417_v24 = vld [vmem:[#allocation7 + $0x50] sm:$0xf0] }
  0x97   :  { %750 = vmatmul.bf16.gmra.mxu2 %v236_v34 }
  0x98   :  { %839 = vmatmul.bf16.gmra.mxu3 %v237_v35 }
  0xa5   :  { %577 = vmatmul.bf16.gmra.mxu0 %v238_v50  ;;  %v2423_v50 = vld [vmem:[#allocation7 + $0x48] sm:$0xf] }
  0xa6   :  { %666 = vmatmul.bf16.gmra.mxu1 %v239_v51  ;;  %v2552_v51 = vld [vmem:[#allocation7 + $0x54] sm:$0xf0] }
  0xa7   :  { %755 = vmatmul.bf16.gmra.mxu2 %v240_v52  ;;  %v2550_v52 = vld [vmem:[#allocation7 + $0x4c] sm:$0xf]  ;;  %v2424_v55 = vor.u32 %v2552_v51, %v2423_v50 }
  0xa8   :  { %844 = vmatmul.bf16.gmra.mxu3 %v241_v53  ;;  %v2428_v58 = vor.u32 %v2550_v52, %v2425_v56 }
  0xa9   :  { %1899 = vmatpush.bf16.msrb.mxu2 %v2424_v55 }
  0xaa   :  { %1988 = vmatpush.bf16.msrb.mxu3 %v2428_v58 }
  0xb2   :  { %v543_v1 = vpop.f32.mrf.mxu0 }
  0xb3   :  { %v632_v2 = vpop.f32.mrf.mxu1  ;;  %v544_v8 = vadd.f32 %v2901_v54, %v543_v1  ;;  %v167_v1 = vld [vmem:[#allocation2 + $0x2a8] sm:$0xff] }
  0xb5   :  { %v633_v12 = vadd.f32 %v632_v2, %v544_v8  ;;  %582 = vmatmul.bf16.gmra.mxu0 %v242_v63  ;;  %v164_v2 = vld [vmem:[#allocation2 + $0x290] sm:$0xff] }
  0xb6   :  { %671 = vmatmul.bf16.gmra.mxu1 %v243_v0  ;;  %v163_v0 = vld [vmem:[#allocation2 + $0x288] sm:$0xff] }
  0xb7   :  { %760 = vmatmul.bf16.gmra.mxu2 %v244_v3 }
  0xb8   :  { %849 = vmatmul.bf16.gmra.mxu3 %v245_v4 }
  0xba   :  { %v721_v13 = vpop.f32.mrf.mxu2  ;;  %v545_v16 = vpop.f32.mrf.mxu0 }
  0xbb   :  { %v810_v14 = vpop.f32.mrf.mxu3  ;;  %v722_v15 = vadd.f32 %v721_v13, %v633_v12  ;;  %v634_v17 = vpop.f32.mrf.mxu1  ;;  %v546_v18 = vadd.f32 %v2901_v54, %v545_v16  ;;  %v251_v12 = vpack.c.bf16 %v167_v1, %v163_v0 }
  0xbd   :  { %v811_v19 = vadd.f32 %v810_v14, %v722_v15  ;;  %v635_v20 = vadd.f32 %v634_v17, %v546_v18  ;;  %v252_v17 = vpack.c.bf16 %v168_v5, %v164_v2  ;;  %v253_v18 = vpack.c.bf16 %v169_v7, %v165_v6  ;;  %v177_v2 = vld [vmem:[#allocation2 + $0x2f8] sm:$0xff] }
  0xbf   :  { %v2349_v23 = vmul.f32 -1.442695, %v811_v19  ;;  %v2415_v19 = vld [vmem:[#allocation7 + $0x40] sm:$0xf] }
  0xc1   :  { %2585 = vpow2.f32 %v2349_v23  ;;  %v2549_v23 = vld [vmem:[#allocation7 + $0x44] sm:$0xf] }
  0xc2   :  { %v723_v30 = vpop.f32.mrf.mxu2  ;;  %v548_v35 = vpop.f32.mrf.mxu0  ;;  %v2420_v26 = vor.u32 %v2549_v23, %v2417_v24 }
  0xc3   :  { %v812_v31 = vpop.f32.mrf.mxu3  ;;  %v724_v34 = vadd.f32 %v723_v30, %v635_v20  ;;  %v637_v36 = vpop.f32.mrf.mxu1  ;;  %v549_v39 = vadd.f32 %v2901_v54, %v548_v35  ;;  %v2551_v20 = vld [vmem:[#allocation7 + $0x4c] sm:$0xf0] }
  0xc4   :  { %v2416_v22 = vor.u32 %v2551_v20, %v2415_v19  ;;  %1810 = vmatpush.bf16.msrb.mxu1 %v2420_v26 }
  0xc5   :  { %v813_v40 = vadd.f32 %v812_v31, %v724_v34  ;;  %v638_v41 = vadd.f32 %v637_v36, %v549_v39  ;;  %587 = vmatmul.bf16.gmra.mxu0 %v246_v32  ;;  %v170_v36 = vld [vmem:[#allocation2 + $0x2c0] sm:$0xff] }
  0xc6   :  { %676 = vmatmul.bf16.gmra.mxu1 %v247_v33  ;;  %1721 = vmatpush.bf16.msrb.mxu0 %v2416_v22 }
  0xc7   :  { %v2586_v42 = vpop.eup %2585  ;;  %v2350_v43 = vmul.f32 -1.442695, %v813_v40  ;;  %765 = vmatmul.bf16.gmra.mxu2 %v248_v37 }
  0xc8   :  { %854 = vmatmul.bf16.gmra.mxu3 %v249_v38  ;;  %v2906_v44 = vadd.f32 1.0, %v2586_v42  ;;  %v171_v42 = vld [vmem:[#allocation2 + $0x2c8] sm:$0xff] }
  0xc9   :  { %2587 = vpow2.f32 %v2350_v43  ;;  %v175_v43 = vld [vmem:[#allocation2 + $0x2e8] sm:$0xff] }
  0xca   :  { %2589 = vrcp.f32 %v2906_v44  ;;  %v726_v45 = vpop.f32.mrf.mxu2  ;;  %v550_v48 = vpop.f32.mrf.mxu0  ;;  %vm1023_vm0 = vweird.f32 %v2906_v44  ;;  %v255_v56 = vpack.c.bf16 %v175_v43, %v171_v42 }
  0xcb   :  { %v815_v46 = vpop.f32.mrf.mxu3  ;;  %v727_v47 = vadd.f32 %v726_v45, %v638_v41  ;;  %v639_v49 = vpop.f32.mrf.mxu1  ;;  %v551_v53 = vadd.f32 %v2901_v54, %v550_v48  ;;  %v174_v41 = vld [vmem:[#allocation2 + $0x2e0] sm:$0xff]  ;;  %v1029_v48 = vand.u32 2147483648, %v2906_v44 }
  0xcc   :  { %v254_v55 = vpack.c.bf16 %v174_v41, %v170_v36  ;;  %v2548_v41 = vld [vmem:[#allocation7 + $0x34] sm:$0xf0] }
  0xcd   :  { %v816_v57 = vadd.f32 %v815_v46, %v727_v47  ;;  %v640_v59 = vadd.f32 %v639_v49, %v551_v53  ;;  %v1027_v47 = vand.u32 2147483647, %v2906_v44  ;;  %v1030_v5 = vor.u32 1.1754944e-38, %v1029_v48 }
  0xcf   :  { %v2588_v62 = vpop.eup %2587  ;;  %v2351_v63 = vmul.f32 -1.442695, %v816_v57  ;;  %vm1028_vm5 = vcmp.eq.f32.partialorder %v1027_v47, 8.507059e+37  ;;  %v2409_v47 = vld [vmem:[#allocation7 + $0x38] sm:$0xf0] }
  0xd0   :  { %v2910_v3 = vpop.eup %2589  ;;  %v2912_v4 = vadd.f32 1.0, %v2588_v62 }
  0xd1   :  { %v1019_v8 = vmul.f32 %v2910_v3, %v2906_v44  ;;  %2591 = vpow2.f32 %v2351_v63  ;;  %vm1024_vm1 = vweird.f32 %v2910_v3  ;;  %v173_v44 = vld [vmem:[#allocation2 + $0x2d8] sm:$0xff] }
  0xd2   :  { %2593 = vrcp.f32 %v2912_v4  ;;  %v728_v9 = vpop.f32.mrf.mxu2  ;;  %v553_v15 = vpop.f32.mrf.mxu0  ;;  %v1044_v49 = vand.u32 2147483648, %v2912_v4  ;;  %v1042_v52 = vand.u32 2147483647, %v2912_v4  ;;  %vm2933_vm3 = vmor %vm1023_vm0, %vm1024_vm1  ;;  %vm1038_vm4 = vweird.f32 %v2912_v4 }
  0xd3   :  { %v817_v10 = vpop.f32.mrf.mxu3  ;;  %v1020_v13 = vsub.f32 1.0, %v1019_v8  ;;  %v729_v14 = vadd.f32 %v728_v9, %v640_v59  ;;  %v642_v16 = vpop.f32.mrf.mxu1  ;;  %v554_v21 = vadd.f32 %v2901_v54, %v553_v15  ;;  %v256_v9 = vpack.c.bf16 %v176_v61, %v172_v60  ;;  %v180_v60 = vld [vmem:[#allocation2 + $0x310] sm:$0xff] }
  0xd4   :  { %v1045_v6 = vor.u32 1.1754944e-38, %v1044_v49  ;;  %vm1043_vm7 = vcmp.eq.f32.partialorder %v1042_v52, 8.507059e+37  ;;  %v184_v61 = vld [vmem:[#allocation2 + $0x330] sm:$0xff] }
  0xd5   :  { %v818_v25 = vadd.f32 %v817_v10, %v729_v14  ;;  %v643_v27 = vadd.f32 %v642_v16, %v554_v21  ;;  %592 = vmatmul.bf16.gmra.mxu0 %v250_v11  ;;  %v1021_v30 = vmul.f32 %v2910_v3, %v1020_v13  ;;  %v257_v16 = vpack.c.bf16 %v177_v2, %v173_v44  ;;  %v181_v2 = vld [vmem:[#allocation2 + $0x318] sm:$0xff] }
  0xd6   :  { %681 = vmatmul.bf16.gmra.mxu1 %v251_v12 }
  0xd7   :  { %v2592_v28 = vpop.eup %2591  ;;  %v2352_v29 = vmul.f32 -1.442695, %v818_v25  ;;  %770 = vmatmul.bf16.gmra.mxu2 %v252_v17  ;;  %v1022_v45 = vadd.f32 %v2910_v3, %v1021_v30  ;;  %v2962_v30 = vld [vmem:[#allocation2 + $0x320] sm:$0xff] }
  0xd8   :  { %859 = vmatmul.bf16.gmra.mxu3 %v253_v18  ;;  %v2594_v31 = vpop.eup %2593  ;;  %v2919_v32 = vadd.f32 1.0, %v2592_v28 }
  0xd9   :  { %v1034_v33 = vmul.f32 %v2594_v31, %v2912_v4  ;;  %2595 = vpow2.f32 %v2352_v29  ;;  %vm1039_vm2 = vweird.f32 %v2594_v31  ;;  %v1026_v62 = vsel %vm2933_vm3, %v2910_v3, %v1022_v45 }
  0xda   :  { %2597 = vrcp.f32 %v2919_v32  ;;  %v731_v34 = vpop.f32.mrf.mxu2  ;;  %v555_v39 = vpop.f32.mrf.mxu0  ;;  %vm1040_vm6 = vmor %vm1038_vm4, %vm1039_vm2  ;;  %v1031_v10 = vsel %vm1028_vm5, %v1030_v5, %v1026_v62  ;;  %vm1053_vm8 = vweird.f32 %v2919_v32  ;;  %v1059_v48 = vand.u32 2147483648, %v2919_v32  ;;  %v185_v5 = vld [vmem:[#allocation2 + $0x338] sm:$0xff] }
  0xdb   :  { %v820_v35 = vpop.f32.mrf.mxu3  ;;  %v1035_v37 = vsub.f32 1.0, %v1034_v33  ;;  %v732_v38 = vadd.f32 %v731_v34, %v643_v27  ;;  %v644_v40 = vpop.f32.mrf.mxu1  ;;  %v556_v46 = vadd.f32 %v2901_v54, %v555_v39  ;;  %v2959_v27 = vld [vmem:[#allocation2 + $0x300] sm:$0xff]  ;;  %v1057_v33 = vand.u32 2147483647, %v2919_v32  ;;  %v183_v39 = vld [vmem:[#allocation2 + $0x328] sm:$0xff] }
  0xdd   :  { %v821_v50 = vadd.f32 %v820_v35, %v732_v38  ;;  %v1036_v51 = vmul.f32 %v2594_v31, %v1035_v37  ;;  %v645_v53 = vadd.f32 %v644_v40, %v556_v46  ;;  %v2407_v40 = vld [vmem:[#allocation7 + $0x28] sm:$0xf]  ;;  %v2546_v46 = vld [vmem:[#allocation7 + $0x2c] sm:$0xf]  ;;  %vm1058_vm13 = vcmp.eq.f32.partialorder %v1057_v33, 8.507059e+37 }
  0xde   :  { %v2408_v45 = vor.u32 %v2548_v41, %v2407_v40 }
  0xdf   :  { %v2596_v58 = vpop.eup %2595  ;;  %v2353_v59 = vmul.f32 -1.442695, %v821_v50  ;;  %v1037_v63 = vadd.f32 %v2594_v31, %v1036_v51  ;;  %v2412_v51 = vor.u32 %v2546_v46, %v2409_v47 }
  0xe0   :  { %v2941_v0 = vpop.eup %2597  ;;  %v2943_v1 = vadd.f32 1.0, %v2596_v58  ;;  %1900 = vmatpush.bf16.msrb.mxu2 %v2408_v45  ;;  %v191_v45 = vld [vmem:[#allocation2 + $0x368] sm:$0xff] }
  0xe1   :  { %v1049_v7 = vmul.f32 %v2941_v0, %v2919_v32  ;;  %2599 = vpow2.f32 %v2353_v59  ;;  %v1041_v8 = vsel %vm1040_vm6, %v2594_v31, %v1037_v63  ;;  %v2964_v31 = vld [vmem:[#allocation2 + $0x308] sm:$0xff]  ;;  %vm1054_vm9 = vweird.f32 %v2941_v0  ;;  %1989 = vmatpush.bf16.msrb.mxu3 %v2412_v51 }
  0xe2   :  { %2601 = vrcp.f32 %v2943_v1  ;;  %v733_v3 = vpop.f32.mrf.mxu2  ;;  %v1046_v11 = vsel %vm1043_vm7, %v1045_v6, %v1041_v8  ;;  %v558_v14 = vpop.f32.mrf.mxu0  ;;  %v1072_v34 = vand.u32 2147483647, %v2943_v1  ;;  %v1074_v49 = vand.u32 2147483648, %v2943_v1  ;;  %vm2983_vm11 = vmor %vm1053_vm8, %vm1054_vm9 }
  0xe3   :  { %v822_v4 = vpop.f32.mrf.mxu3  ;;  %v1050_v12 = vsub.f32 1.0, %v1049_v7  ;;  %v734_v13 = vadd.f32 %v733_v3, %v645_v53  ;;  %v647_v15 = vpop.f32.mrf.mxu1  ;;  %v2949_v17 = vpack.c.bf16 %v1046_v11, %v1031_v10  ;;  %v559_v18 = vadd.f32 %v2901_v54, %v558_v14 }
  0xe4   :  { %vm1068_vm12 = vweird.f32 %v2943_v1  ;;  %v1060_v6 = vor.u32 1.1754944e-38, %v1059_v48  ;;  %v1075_v7 = vor.u32 1.1754944e-38, %v1074_v49  ;;  %vm1073_vm15 = vcmp.eq.f32.partialorder %v1072_v34, 8.507059e+37 }
  0xe5   :  { %v823_v19 = vadd.f32 %v822_v4, %v734_v13  ;;  %v648_v20 = vadd.f32 %v647_v15, %v559_v18  ;;  %597 = vmatmul.bf16.gmra.mxu0 %v254_v55  ;;  %v1051_v23 = vmul.f32 %v2941_v0, %v1050_v12  ;;  %v258_v55 = vpack.c.bf16 %v2962_v30, %v2959_v27  ;;  %v2547_v18 = vld [vmem:[#allocation7 + $0x2c] sm:$0xf0] }
  0xe6   :  { %686 = vmatmul.bf16.gmra.mxu1 %v255_v56  ;;  %v259_v56 = vpack.c.bf16 %v183_v39, %v2964_v31  ;;  %v260_v4 = vpack.c.bf16 %v184_v61, %v180_v60  ;;  %v261_v15 = vpack.c.bf16 %v185_v5, %v181_v2  ;;  %v188_v61 = vld [vmem:[#allocation2 + $0x350] sm:$0xff] }
  0xe7   :  { %v2600_v21 = vpop.eup %2599  ;;  %v2354_v22 = vmul.f32 -1.442695, %v823_v19  ;;  %775 = vmatmul.bf16.gmra.mxu2 %v256_v9  ;;  %v1052_v42 = vadd.f32 %v2941_v0, %v1051_v23  ;;  %v2401_v23 = vld [vmem:[#allocation7 + $0x30] sm:$0xf0] }
  0xe8   :  { %864 = vmatmul.bf16.gmra.mxu3 %v257_v16  ;;  %v2953_v24 = vpop.eup %2601  ;;  %v2955_v25 = vadd.f32 1.0, %v2600_v21  ;;  %v2399_v16 = vld [vmem:[#allocation7 + $0x20] sm:$0xf] }
  0xe9   :  { %v1064_v26 = vmul.f32 %v2953_v24, %v2943_v1  ;;  %2603 = vpow2.f32 %v2354_v22  ;;  %vm1069_vm10 = vweird.f32 %v2953_v24  ;;  %v1056_v62 = vsel %vm2983_vm11, %v2941_v0, %v1052_v42  ;;  %v2545_v22 = vld [vmem:[#allocation7 + $0x24] sm:$0xf] }
  0xea   :  { %2605 = vrcp.f32 %v2955_v25  ;;  %v736_v28 = vpop.f32.mrf.mxu2  ;;  %v560_v37 = vpop.f32.mrf.mxu0  ;;  %vm1070_vm14 = vmor %vm1068_vm12, %vm1069_vm10  ;;  %v1061_v9 = vsel %vm1058_vm13, %v1060_v6, %v1056_v62  ;;  %v2400_v21 = vor.u32 %v2547_v18, %v2399_v16  ;;  %vm1083_vm0 = vweird.f32 %v2955_v25  ;;  %v190_v42 = vld [vmem:[#allocation2 + $0x360] sm:$0xff]  ;;  %v192_v62 = vld [vmem:[#allocation2 + $0x370] sm:$0xff] }
  0xeb   :  { %v825_v29 = vpop.f32.mrf.mxu3  ;;  %v1065_v35 = vsub.f32 1.0, %v1064_v26  ;;  %v737_v36 = vadd.f32 %v736_v28, %v648_v20  ;;  %v649_v38 = vpop.f32.mrf.mxu1  ;;  %v561_v43 = vadd.f32 %v2901_v54, %v560_v37  ;;  %v2404_v26 = vor.u32 %v2545_v22, %v2401_v23  ;;  %v186_v37 = vld [vmem:[#allocation2 + $0x340] sm:$0xff] }
  0xec   :  { %1722 = vmatpush.bf16.msrb.mxu0 %v2400_v21  ;;  %v1087_v48 = vand.u32 2147483647, %v2955_v25  ;;  %v1089_v49 = vand.u32 2147483648, %v2955_v25  ;;  %v3039_v22 = vld [vmem:[#allocation2 + $0x380] sm:$0xff] }
  0xed   :  { %v826_v50 = vadd.f32 %v825_v29, %v737_v36  ;;  %v1066_v52 = vmul.f32 %v2953_v24, %v1065_v35  ;;  %v650_v53 = vadd.f32 %v649_v38, %v561_v43  ;;  %1811 = vmatpush.bf16.msrb.mxu1 %v2404_v26  ;;  %v187_v43 = vld [vmem:[#allocation2 + $0x348] sm:$0xff]  ;;  %v3041_v23 = vld [vmem:[#allocation2 + $0x3a0] sm:$0xff] }
  0xee   :  { %v263_v57 = vpack.c.bf16 %v191_v45, %v187_v43  ;;  %vm1088_vm5 = vcmp.eq.f32.partialorder %v1087_v48, 8.507059e+37  ;;  %v2544_v48 = vld [vmem:[#allocation7 + $0x14] sm:$0xf0] }
  0xef   :  { %v2604_v58 = vpop.eup %2603  ;;  %v2355_v59 = vmul.f32 -1.442695, %v826_v50  ;;  %v1067_v63 = vadd.f32 %v2953_v24, %v1066_v52 }
  0xf0   :  { %v2992_v44 = vpop.eup %2605  ;;  %v2994_v32 = vadd.f32 1.0, %v2604_v58 }
  0xf1   :  { %v1079_v8 = vmul.f32 %v2992_v44, %v2955_v25  ;;  %2607 = vpow2.f32 %v2355_v59  ;;  %v1071_v0 = vsel %vm1070_vm14, %v2953_v24, %v1067_v63  ;;  %vm1084_vm1 = vweird.f32 %v2992_v44  ;;  %v189_v25 = vld [vmem:[#allocation2 + $0x358] sm:$0xff] }
  0xf2   :  { %2609 = vrcp.f32 %v2994_v32  ;;  %v738_v1 = vpop.f32.mrf.mxu2  ;;  %v1076_v10 = vsel %vm1073_vm15, %v1075_v7, %v1071_v0  ;;  %v563_v13 = vpop.f32.mrf.mxu0  ;;  %v1104_v50 = vand.u32 2147483648, %v2994_v32  ;;  %vm3020_vm3 = vmor %vm1083_vm0, %vm1084_vm1  ;;  %vm1098_vm4 = vweird.f32 %v2994_v32  ;;  %v193_v7 = vld [vmem:[#allocation2 + $0x378] sm:$0xff] }
  0xf3   :  { %v827_v3 = vpop.f32.mrf.mxu3  ;;  %v1080_v11 = vsub.f32 1.0, %v1079_v8  ;;  %v739_v12 = vadd.f32 %v738_v1, %v650_v53  ;;  %v652_v14 = vpop.f32.mrf.mxu1  ;;  %v3002_v19 = vpack.c.bf16 %v1076_v10, %v1061_v9  ;;  %v564_v20 = vadd.f32 %v2901_v54, %v563_v13 }
  0xf4   :  { %v1102_v53 = vand.u32 2147483647, %v2994_v32  ;;  %v1090_v8 = vor.u32 1.1754944e-38, %v1089_v49  ;;  %v1105_v0 = vor.u32 1.1754944e-38, %v1104_v50 }
  0xf5   :  { %v828_v24 = vadd.f32 %v827_v3, %v739_v12  ;;  %v653_v27 = vadd.f32 %v652_v14, %v564_v20  ;;  %602 = vmatmul.bf16.gmra.mxu0 %v258_v55  ;;  %v1081_v30 = vmul.f32 %v2992_v44, %v1080_v11 }
  0xf6   :  { %691 = vmatmul.bf16.gmra.mxu1 %v259_v56  ;;  %v262_v56 = vpack.c.bf16 %v190_v42, %v186_v37  ;;  %vm1103_vm7 = vcmp.eq.f32.partialorder %v1102_v53, 8.507059e+37  ;;  %v3055_v37 = vld [vmem:[#allocation2 + $0x3a8] sm:$0xff]  ;;  %v2393_v53 = vld [vmem:[#allocation7 + $0x18] sm:$0xf0] }
  0xf7   :  { %v2608_v28 = vpop.eup %2607  ;;  %v2356_v29 = vmul.f32 -1.442695, %v828_v24  ;;  %780 = vmatmul.bf16.gmra.mxu2 %v260_v4  ;;  %v1082_v46 = vadd.f32 %v2992_v44, %v1081_v30  ;;  %v264_v4 = vpack.c.bf16 %v192_v62, %v188_v61 }
  0xf8   :  { %869 = vmatmul.bf16.gmra.mxu3 %v261_v15  ;;  %v2610_v31 = vpop.eup %2609  ;;  %v3006_v33 = vadd.f32 1.0, %v2608_v28  ;;  %v265_v15 = vpack.c.bf16 %v193_v7, %v189_v25 }
  0xf9   :  { %v1094_v34 = vmul.f32 %v2610_v31, %v2994_v32  ;;  %2611 = vpow2.f32 %v2356_v29  ;;  %vm1099_vm2 = vweird.f32 %v2610_v31  ;;  %v1086_v63 = vsel %vm3020_vm3, %v2992_v44, %v1082_v46  ;;  %v3062_v46 = vld [vmem:[#allocation2 + $0x3b0] sm:$0xff] }
  0xfa   :  { %2613 = vrcp.f32 %v3006_v33  ;;  %v741_v35 = vpop.f32.mrf.mxu2  ;;  %v565_v40 = vpop.f32.mrf.mxu0  ;;  %vm1100_vm6 = vmor %vm1098_vm4, %vm1099_vm2  ;;  %v1091_v9 = vsel %vm1088_vm5, %v1090_v8, %v1086_v63  ;;  %vm1113_vm8 = vweird.f32 %v3006_v33  ;;  %v197_v63 = vld [vmem:[#allocation2 + $0x398] sm:$0xff] }
  0xfb   :  { %v830_v36 = vpop.f32.mrf.mxu3  ;;  %v1095_v38 = vsub.f32 1.0, %v1094_v34  ;;  %v742_v39 = vadd.f32 %v741_v35, %v653_v27  ;;  %v654_v41 = vpop.f32.mrf.mxu1  ;;  %v566_v47 = vadd.f32 %v2901_v54, %v565_v40  ;;  %v3052_v34 = vld [vmem:[#allocation2 + $0x388] sm:$0xff] }
  0xfc   :  { %v267_v61 = vpack.c.bf16 %v3055_v37, %v3052_v34 }
  0xfd   :  { %v831_v51 = vadd.f32 %v830_v36, %v742_v39  ;;  %v1096_v52 = vmul.f32 %v2610_v31, %v1095_v38  ;;  %v655_v55 = vadd.f32 %v654_v41, %v566_v47  ;;  %v3057_v38 = vld [vmem:[#allocation2 + $0x390] sm:$0xff]  ;;  %v1117_v39 = vand.u32 2147483647, %v3006_v33  ;;  %v2391_v47 = vld [vmem:[#allocation7 + $0x8] sm:$0xf] }
  0xfe   :  { %v268_v62 = vpack.c.bf16 %v3062_v46, %v3057_v38 }
  0xff   :  { %v2612_v59 = vpop.eup %2611  ;;  %v2357_v60 = vmul.f32 -1.442695, %v831_v51  ;;  %v1097_v2 = vadd.f32 %v2610_v31, %v1096_v52  ;;  %v2392_v51 = vor.u32 %v2544_v48, %v2391_v47  ;;  %v2542_v52 = vld [vmem:[#allocation7 + $0xc] sm:$0xf]  ;;  %vm3083_vm12 = vcmp.eq.f32.partialorder %v1117_v39, 8.507059e+37  ;;  %v202_v48 = vld [vmem:[#allocation2 + $0x3c0] sm:$0xff] }
 0x100   :  { %v3028_v5 = vpop.eup %2613  ;;  %v3030_v6 = vadd.f32 1.0, %v2612_v59  ;;  %v2396_v58 = vor.u32 %v2542_v52, %v2393_v53  ;;  %v207_v52 = vld [vmem:[#allocation2 + $0x3e8] sm:$0xff] }
 0x101   :  { %v1109_v1 = vmul.f32 %v3028_v5, %v3006_v33  ;;  %2615 = vpow2.f32 %v2357_v60  ;;  %v1101_v3 = vsel %vm1100_vm6, %v2610_v31, %v1097_v2  ;;  %v266_v31 = vpack.c.bf16 %v3041_v23, %v3039_v22  ;;  %v201_v2 = vld [vmem:[#allocation2 + $0x3b8] sm:$0xff]  ;;  %1901 = vmatpush.bf16.msrb.mxu2 %v2392_v51  ;;  %v203_v51 = vld [vmem:[#allocation2 + $0x3c8] sm:$0xff] }
 0x102   :  { %2617 = vrcp.f32 %v3030_v6  ;;  %v743_v44 = vpop.f32.mrf.mxu2  ;;  %v1106_v10 = vsel %vm1103_vm7, %v1105_v0, %v1101_v3  ;;  %v568_v13 = vpop.f32.mrf.mxu0  ;;  %v1132_v40 = vand.u32 2147483647, %v3030_v6  ;;  %vm1114_vm9 = vweird.f32 %v3028_v5  ;;  %1990 = vmatpush.bf16.msrb.mxu3 %v2396_v58 }
 0x103   :  { %v832_v32 = vpop.f32.mrf.mxu3  ;;  %v1110_v11 = vsub.f32 1.0, %v1109_v1  ;;  %v744_v12 = vadd.f32 %v743_v44, %v655_v55  ;;  %v657_v14 = vpop.f32.mrf.mxu1  ;;  %v3036_v16 = vpack.c.bf16 %v1106_v10, %v1091_v9  ;;  %v569_v18 = vadd.f32 %v2901_v54, %v568_v13  ;;  %vm3079_vm11 = vmor %vm1113_vm8, %vm1114_vm9 }
 0x104   :  { %v1119_v55 = vand.u32 2147483648, %v3006_v33  ;;  %vm1128_vm13 = vweird.f32 %v3030_v6  ;;  %vm1133_vm15 = vcmp.eq.f32.partialorder %v1132_v40, 8.507059e+37  ;;  %v269_v10 = vpack.c.bf16 %v201_v2, %v197_v63 }
 0x105   :  { %v833_v20 = vadd.f32 %v832_v32, %v744_v12  ;;  %v658_v21 = vadd.f32 %v657_v14, %v569_v18  ;;  %607 = vmatmul.bf16.gmra.mxu0 %v262_v56  ;;  %v1111_v27 = vmul.f32 %v3028_v5, %v1110_v11  ;;  %v1134_v56 = vand.u32 2147483648, %v3030_v6  ;;  %v2383_v11 = vld [vmem:[#allocation7] sm:$0xf]  ;;  %v2541_v12 = vld [vmem:[#allocation7 + $0x4] sm:$0xf] }
 0x106   :  { %696 = vmatmul.bf16.gmra.mxu1 %v263_v57  ;;  %v1120_v32 = vor.u32 1.1754944e-38, %v1119_v55  ;;  %v271_v2 = vpack.c.bf16 %v207_v52, %v203_v51 }
 0x107   :  { %v2616_v24 = vpop.eup %2615  ;;  %v2358_v26 = vmul.f32 -1.442695, %v833_v20  ;;  %785 = vmatmul.bf16.gmra.mxu2 %v264_v4  ;;  %v1112_v49 = vadd.f32 %v3028_v5, %v1111_v27  ;;  %v1135_v9 = vor.u32 1.1754944e-38, %v1134_v56  ;;  %v2385_v20 = vld [vmem:[#allocation7 + $0x10] sm:$0xf0] }
 0x108   :  { %874 = vmatmul.bf16.gmra.mxu3 %v265_v15  ;;  %v3044_v28 = vpop.eup %2617  ;;  %v3046_v29 = vadd.f32 1.0, %v2616_v24 }
 0x109   :  { %v1124_v30 = vmul.f32 %v3044_v28, %v3030_v6  ;;  %2619 = vpow2.f32 %v2358_v26  ;;  %vm1129_vm10 = vweird.f32 %v3044_v28  ;;  %v1116_v1 = vsel %vm3079_vm11, %v3028_v5, %v1112_v49  ;;  %v2543_v6 = vld [vmem:[#allocation7 + $0xc] sm:$0xf0] }
 0x10a   :  { %2621 = vrcp.f32 %v3046_v29  ;;  %v746_v35 = vpop.f32.mrf.mxu2  ;;  %v570_v43 = vpop.f32.mrf.mxu0  ;;  %vm3098_vm14 = vmor %vm1128_vm13, %vm1129_vm10  ;;  %v2384_v18 = vor.u32 %v2543_v6, %v2383_v11  ;;  %vm1143_vm0 = vweird.f32 %v3046_v29  ;;  %v1147_v56 = vand.u32 2147483647, %v3046_v29 }
 0x10b   :  { %v835_v36 = vpop.f32.mrf.mxu3  ;;  %v1125_v41 = vsub.f32 1.0, %v1124_v30  ;;  %v747_v42 = vadd.f32 %v746_v35, %v658_v21  ;;  %v659_v45 = vpop.f32.mrf.mxu1  ;;  %v571_v50 = vadd.f32 %v2901_v54, %v570_v43  ;;  %v1121_v21 = vsel %vm3083_vm12, %v1120_v32, %v1116_v1  ;;  %v208_v1 = vld [vmem:[#allocation2 + $0x3f0] sm:$0xff] }
 0x10c   :  { %v2388_v35 = vor.u32 %v2541_v12, %v2385_v20  ;;  %1723 = vmatpush.bf16.msrb.mxu0 %v2384_v18  ;;  %vm1148_vm5 = vcmp.eq.f32.partialorder %v1147_v56, 8.507059e+37 }
 0x10d   :  { %v836_v57 = vadd.f32 %v835_v36, %v747_v42  ;;  %v1126_v59 = vmul.f32 %v3044_v28, %v1125_v41  ;;  %v660_v60 = vadd.f32 %v659_v45, %v571_v50  ;;  %v206_v50 = vld [vmem:[#allocation2 + $0x3e0] sm:$0xff] }
 0x10e   :  { %1812 = vmatpush.bf16.msrb.mxu1 %v2388_v35  ;;  %v270_v63 = vpack.c.bf16 %v206_v50, %v202_v48 }
 0x10f   :  { %v2620_v8 = vpop.eup %2619  ;;  %v2359_v0 = vmul.f32 -1.442695, %v836_v57  ;;  %v1127_v3 = vadd.f32 %v3044_v28, %v1126_v59  ;;  %v1149_v57 = vand.u32 2147483648, %v3046_v29 }
 0x110   :  { %v3092_v33 = vpop.eup %2621  ;;  %v3094_v44 = vadd.f32 1.0, %v2620_v8 }
 0x111   :  { %v1139_v5 = vmul.f32 %v3092_v33, %v3046_v29  ;;  %2623 = vpow2.f32 %v2359_v0  ;;  %v1131_v13 = vsel %vm3098_vm14, %v3044_v28, %v1127_v3  ;;  %vm1144_vm1 = vweird.f32 %v3092_v33  ;;  %v204_v0 = vld [vmem:[#allocation2 + $0x3d0] sm:$0xff]  ;;  %v205_v29 = vld [vmem:[#allocation2 + $0x3d8] sm:$0xff] }
 0x112   :  { %2625 = vrcp.f32 %v3094_v44  ;;  %v748_v14 = vpop.f32.mrf.mxu2  ;;  %v1136_v24 = vsel %vm1133_vm15, %v1135_v9, %v1131_v13  ;;  %v573_v30 = vpop.f32.mrf.mxu0  ;;  %v1164_v58 = vand.u32 2147483648, %v3094_v44  ;;  %vm3131_vm3 = vmor %vm1143_vm0, %vm1144_vm1  ;;  %vm1158_vm4 = vweird.f32 %v3094_v44 }
 0x113   :  { %v837_v15 = vpop.f32.mrf.mxu3  ;;  %v1140_v26 = vsub.f32 1.0, %v1139_v5  ;;  %v749_v27 = vadd.f32 %v748_v14, %v660_v60  ;;  %v662_v34 = vpop.f32.mrf.mxu1  ;;  %v3110_v36 = vpack.c.bf16 %v1136_v24, %v1121_v21  ;;  %v574_v37 = vadd.f32 %v2901_v54, %v573_v30  ;;  %v209_v5 = vld [vmem:[#allocation2 + $0x3f8] sm:$0xff] }
 0x114   :  { %v1165_v11 = vor.u32 1.1754944e-38, %v1164_v58  ;;  %v272_v13 = vpack.c.bf16 %v208_v1, %v204_v0 }
 0x115   :  { %v838_v28 = vadd.f32 %v837_v15, %v749_v27  ;;  %v663_v38 = vadd.f32 %v662_v34, %v574_v37  ;;  %612 = vmatmul.bf16.gmra.mxu0 %v266_v31  ;;  %v1141_v41 = vmul.f32 %v3092_v33, %v1140_v26  ;;  %v273_v26 = vpack.c.bf16 %v209_v5, %v205_v29 }
 0x116   :  { %701 = vmatmul.bf16.gmra.mxu1 %v267_v61  ;;  %v1162_v61 = vand.u32 2147483647, %v3094_v44 }
 0x117   :  { %v2624_v39 = vpop.eup %2623  ;;  %v2360_v40 = vmul.f32 -1.442695, %v838_v28  ;;  %790 = vmatmul.bf16.gmra.mxu2 %v268_v62  ;;  %v1142_v53 = vadd.f32 %v3092_v33, %v1141_v41 }
 0x118   :  { %879 = vmatmul.bf16.gmra.mxu3 %v269_v10  ;;  %v2626_v42 = vpop.eup %2625  ;;  %v3117_v43 = vadd.f32 1.0, %v2624_v39  ;;  %v1150_v10 = vor.u32 1.1754944e-38, %v1149_v57  ;;  %vm1163_vm7 = vcmp.eq.f32.partialorder %v1162_v61, 8.507059e+37 }
 0x119   :  { %v1154_v45 = vmul.f32 %v2626_v42, %v3094_v44  ;;  %2627 = vpow2.f32 %v2360_v40  ;;  %vm1159_vm2 = vweird.f32 %v2626_v42  ;;  %v1146_v3 = vsel %vm3131_vm3, %v3092_v33, %v1142_v53 }
 0x11a   :  { %2629 = vrcp.f32 %v3117_v43  ;;  %v751_v46 = vpop.f32.mrf.mxu2  ;;  %v575_v31 = vpop.f32.mrf.mxu0  ;;  %vm1160_vm6 = vmor %vm1158_vm4, %vm1159_vm2  ;;  %v1151_v14 = vsel %vm1148_vm5, %v1150_v10, %v1146_v3  ;;  %vm1173_vm8 = vweird.f32 %v3117_v43  ;;  %v1179_v50 = vand.u32 2147483648, %v3117_v43 }
 0x11b   :  { %v840_v47 = vpop.f32.mrf.mxu3  ;;  %v1155_v22 = vsub.f32 1.0, %v1154_v45  ;;  %v752_v23 = vadd.f32 %v751_v46, %v663_v38  ;;  %v664_v49 = vpop.f32.mrf.mxu1  ;;  %v576_v55 = vadd.f32 %v2901_v54, %v575_v31 }
 0x11d   :  { %v841_v59 = vadd.f32 %v840_v47, %v752_v23  ;;  %v1156_v60 = vmul.f32 %v2626_v42, %v1155_v22  ;;  %v665_v62 = vadd.f32 %v664_v49, %v576_v55  ;;  %v3161_v23 = vld [vmem:[%s3710_s2] ss:$0 sm:$0xff]  ;;  %v1177_v49 = vand.u32 2147483647, %v3117_v43  ;;  %s2852_s2 = smov [#allocation10]  }
 0x11e   :  { %s2204_s19 = sshll.u32 %s2852_s2, 4  ;;  %s2205_s19 = int_to_ptr.vmem [resolvable:$true] %s2204_s19 }
 0x11f   :  { %v2628_v7 = vpop.eup %2627  ;;  %v2361_v8 = vmul.f32 -1.442695, %v841_v59  ;;  %v1157_v32 = vadd.f32 %v2626_v42, %v1156_v60  ;;  %vm1178_vm13 = vcmp.eq.f32.partialorder %v1177_v49, 8.507059e+37 }
 0x120   :  { %v3139_v4 = vpop.eup %2629  ;;  %v3141_v9 = vadd.f32 1.0, %v2628_v7 }
 0x121   :  { %v1169_v6 = vmul.f32 %v3139_v4, %v3117_v43  ;;  %2631 = vpow2.f32 %v2361_v8  ;;  %v1161_v12 = vsel %vm1160_vm6, %v2626_v42, %v1157_v32  ;;  %vm1174_vm9 = vweird.f32 %v3139_v4 }
 0x122   :  { %2633 = vrcp.f32 %v3141_v9  ;;  %v753_v33 = vpop.f32.mrf.mxu2  ;;  %v1166_v15 = vsel %vm1163_vm7, %v1165_v11, %v1161_v12  ;;  %v578_v21 = vpop.f32.mrf.mxu0  ;;  %v1194_v51 = vand.u32 2147483648, %v3141_v9  ;;  %v1192_v55 = vand.u32 2147483647, %v3141_v9  ;;  %vm3170_vm11 = vmor %vm1173_vm8, %vm1174_vm9 }
 0x123   :  { %v842_v44 = vpop.f32.mrf.mxu3  ;;  %v1170_v18 = vsub.f32 1.0, %v1169_v6  ;;  %v754_v20 = vadd.f32 %v753_v33, %v665_v62  ;;  %v667_v24 = vpop.f32.mrf.mxu1  ;;  %v3147_v27 = vpack.c.bf16 %v1166_v15, %v1151_v14  ;;  %v579_v30 = vadd.f32 %v2901_v54, %v578_v21 }
 0x124   :  { %vm1188_vm12 = vweird.f32 %v3141_v9  ;;  %v1195_v43 = vor.u32 1.1754944e-38, %v1194_v51  ;;  %vm1193_vm15 = vcmp.eq.f32.partialorder %v1192_v55, 8.507059e+37 }
 0x125   :  { %v843_v34 = vadd.f32 %v842_v44, %v754_v20  ;;  %v668_v35 = vadd.f32 %v667_v24, %v579_v30  ;;  %617 = vmatmul.bf16.gmra.mxu0 %v270_v63  ;;  %v1171_v38 = vmul.f32 %v3139_v4, %v1170_v18 }
 0x126   :  { %706 = vmatmul.bf16.gmra.mxu1 %v271_v2  ;;  %v1180_v2 = vor.u32 1.1754944e-38, %v1179_v50 }
 0x127   :  { %v2632_v37 = vpop.eup %2631  ;;  %v2362_v28 = vmul.f32 -1.442695, %v843_v34  ;;  %795 = vmatmul.bf16.gmra.mxu2 %v272_v13  ;;  %v1172_v22 = vadd.f32 %v3139_v4, %v1171_v38 }
 0x128   :  { %884 = vmatmul.bf16.gmra.mxu3 %v273_v26  ;;  %v2634_v39 = vpop.eup %2633  ;;  %v3151_v40 = vadd.f32 1.0, %v2632_v37 }
 0x129   :  { %v1184_v41 = vmul.f32 %v2634_v39, %v3141_v9  ;;  %2635 = vpow2.f32 %v2362_v28  ;;  %vm1189_vm10 = vweird.f32 %v2634_v39  ;;  %v1176_v60 = vsel %vm3170_vm11, %v3139_v4, %v1172_v22 }
 0x12a   :  { %2637 = vrcp.f32 %v3151_v40  ;;  %v756_v42 = vpop.f32.mrf.mxu2  ;;  %v580_v47 = vpop.f32.mrf.mxu0  ;;  %vm1190_vm14 = vmor %vm1188_vm12, %vm1189_vm10  ;;  %v1181_v1 = vsel %vm1178_vm13, %v1180_v2, %v1176_v60  ;;  %vm1203_vm0 = vweird.f32 %v3151_v40  ;;  %v1209_v37 = vand.u32 2147483648, %v3151_v40 }
 0x12b   :  { %v845_v54 = vpop.f32.mrf.mxu3  ;;  %v1185_v45 = vsub.f32 1.0, %v1184_v41  ;;  %v757_v46 = vadd.f32 %v756_v42, %v668_v35  ;;  %v669_v48 = vpop.f32.mrf.mxu1  ;;  %v581_v31 = vadd.f32 %v3161_v23, %v580_v47  ;;  %v1207_v35 = vand.u32 2147483647, %v3151_v40 }
 0x12c   :  { %v1210_v49 = vor.u32 1.1754944e-38, %v1209_v37 }
 0x12d   :  { %v846_v52 = vadd.f32 %v845_v54, %v757_v46  ;;  %v1186_v53 = vmul.f32 %v2634_v39, %v1185_v45  ;;  %v670_v56 = vadd.f32 %v669_v48, %v581_v31  ;;  %vm1208_vm5 = vcmp.eq.f32.partialorder %v1207_v35, 8.507059e+37 }
 0x12f   :  { %v2636_v58 = vpop.eup %2635  ;;  %v2363_v59 = vmul.f32 -1.442695, %v846_v52  ;;  %v1187_v61 = vadd.f32 %v2634_v39, %v1186_v53 }
 0x130   :  { %v3178_v62 = vpop.eup %2637  ;;  %v3180_v63 = vadd.f32 1.0, %v2636_v58 }
 0x131   :  { %v1199_v25 = vmul.f32 %v3178_v62, %v3151_v40  ;;  %2639 = vpow2.f32 %v2363_v59  ;;  %v1191_v7 = vsel %vm1190_vm14, %v2634_v39, %v1187_v61  ;;  %vm1204_vm1 = vweird.f32 %v3178_v62 }
 0x132   :  { %2641 = vrcp.f32 %v3180_v63  ;;  %v758_v8 = vpop.f32.mrf.mxu2  ;;  %v1196_v3 = vsel %vm1193_vm15, %v1195_v43, %v1191_v7  ;;  %v583_v9 = vpop.f32.mrf.mxu0  ;;  %v1224_v28 = vand.u32 2147483648, %v3180_v63  ;;  %v1222_v41 = vand.u32 2147483647, %v3180_v63  ;;  %vm3207_vm3 = vmor %vm1203_vm0, %vm1204_vm1 }
 0x133   :  { %v847_v0 = vpop.f32.mrf.mxu3  ;;  %v1200_v32 = vsub.f32 1.0, %v1199_v25  ;;  %v759_v4 = vadd.f32 %v758_v8, %v670_v56  ;;  %v672_v29 = vpop.f32.mrf.mxu1  ;;  %v3185_v5 = vpack.c.bf16 %v1196_v3, %v1181_v1  ;;  %v584_v10 = vadd.f32 %v3161_v23, %v583_v9 }
 0x134   :  { %vm1218_vm4 = vweird.f32 %v3180_v63  ;;  %v1225_v40 = vor.u32 1.1754944e-38, %v1224_v28  ;;  %vm1223_vm7 = vcmp.eq.f32.partialorder %v1222_v41, 8.507059e+37 }
 0x135   :  { %v848_v11 = vadd.f32 %v847_v0, %v759_v4  ;;  %v673_v6 = vadd.f32 %v672_v29, %v584_v10  ;;  %1724 = vmatmul.bf16.vlgmr.msrb.gmra.mxu0 %v2949_v17  ;;  %v1201_v44 = vmul.f32 %v3178_v62, %v1200_v32 }
 0x136   :  { %1813 = vmatmul.bf16.vlgmr.msrb.gmra.mxu1 %v2949_v17 }
 0x137   :  { %v2640_v12 = vpop.eup %2639  ;;  %v2364_v33 = vmul.f32 -1.442695, %v848_v11  ;;  %1902 = vmatmul.bf16.vlgmr.msrb.gmra.mxu2 %v2949_v17 }
 0x138   :  { %1991 = vmatmul.bf16.vlgmr.msrb.gmra.mxu3 %v2949_v17  ;;  %v2642_v13 = vpop.eup %2641  ;;  %v3193_v14 = vadd.f32 1.0, %v2640_v12  ;;  %v1202_v17 = vadd.f32 %v3178_v62, %v1201_v44 }
 0x139   :  { %v1214_v15 = vmul.f32 %v2642_v13, %v3180_v63  ;;  %2643 = vpow2.f32 %v2364_v33  ;;  %vm1219_vm2 = vweird.f32 %v2642_v13 }
 0x13a   :  { %2645 = vrcp.f32 %v3193_v14  ;;  %v761_v18 = vpop.f32.mrf.mxu2  ;;  %v585_v26 = vpop.f32.mrf.mxu0  ;;  %v1206_v47 = vsel %vm3207_vm3, %v3178_v62, %v1202_v17  ;;  %vm1220_vm6 = vmor %vm1218_vm4, %vm1219_vm2  ;;  %vm1233_vm8 = vweird.f32 %v3193_v14  ;;  %v1239_v12 = vand.u32 2147483648, %v3193_v14 }
 0x13b   :  { %v850_v20 = vpop.f32.mrf.mxu3  ;;  %v1215_v21 = vsub.f32 1.0, %v1214_v15  ;;  %v762_v24 = vadd.f32 %v761_v18, %v673_v6  ;;  %v674_v30 = vpop.f32.mrf.mxu1  ;;  %v586_v34 = vadd.f32 %v3161_v23, %v585_v26  ;;  %v1211_v55 = vsel %vm1208_vm5, %v1210_v49, %v1206_v47 }
 0x13c   :  { %v1237_v6 = vand.u32 2147483647, %v3193_v14  ;;  %v1240_v35 = vor.u32 1.1754944e-38, %v1239_v12 }
 0x13d   :  { %v851_v38 = vadd.f32 %v850_v20, %v762_v24  ;;  %v1216_v39 = vmul.f32 %v2642_v13, %v1215_v21  ;;  %v675_v42 = vadd.f32 %v674_v30, %v586_v34 }
 0x13e   :  { %vm1238_vm13 = vcmp.eq.f32.partialorder %v1237_v6, 8.507059e+37 }
 0x13f   :  { %v2644_v45 = vpop.eup %2643  ;;  %v2365_v46 = vmul.f32 -1.442695, %v851_v38  ;;  %v1217_v48 = vadd.f32 %v2642_v13, %v1216_v39 }
 0x140   :  { %v3215_v22 = vpop.eup %2645  ;;  %v3217_v31 = vadd.f32 1.0, %v2644_v45 }
 0x141   :  { %v1229_v50 = vmul.f32 %v3215_v22, %v3193_v14  ;;  %2647 = vpow2.f32 %v2365_v46  ;;  %v1221_v51 = vsel %vm1220_vm6, %v2642_v13, %v1217_v48  ;;  %vm1234_vm9 = vweird.f32 %v3215_v22 }
 0x142   :  { %2649 = vrcp.f32 %v3217_v31  ;;  %v763_v52 = vpop.f32.mrf.mxu2  ;;  %v1226_v56 = vsel %vm1223_vm7, %v1225_v40, %v1221_v51  ;;  %v588_v59 = vpop.f32.mrf.mxu0  ;;  %v1254_v33 = vand.u32 2147483648, %v3217_v31  ;;  %v1252_v15 = vand.u32 2147483647, %v3217_v31  ;;  %vm3244_vm11 = vmor %vm1233_vm8, %vm1234_vm9 }
 0x143   :  { %v852_v53 = vpop.f32.mrf.mxu3  ;;  %v1230_v57 = vsub.f32 1.0, %v1229_v50  ;;  %v764_v58 = vadd.f32 %v763_v52, %v675_v42  ;;  %v677_v60 = vpop.f32.mrf.mxu1  ;;  %v3222_v61 = vpack.c.bf16 %v1226_v56, %v1211_v55  ;;  %v589_v62 = vadd.f32 %v3161_v23, %v588_v59 }
 0x144   :  { %vm1248_vm12 = vweird.f32 %v3217_v31  ;;  %v1255_v14 = vor.u32 1.1754944e-38, %v1254_v33  ;;  %vm1253_vm15 = vcmp.eq.f32.partialorder %v1252_v15, 8.507059e+37 }
 0x145   :  { %v853_v63 = vadd.f32 %v852_v53, %v764_v58  ;;  %v678_v2 = vadd.f32 %v677_v60, %v589_v62  ;;  %1729 = vmatmul.bf16.gmra.mxu0 %v3002_v19  ;;  %v1231_v7 = vmul.f32 %v3215_v22, %v1230_v57 }
 0x146   :  { %1818 = vmatmul.bf16.gmra.mxu1 %v3002_v19 }
 0x147   :  { %v2648_v43 = vpop.eup %2647  ;;  %v2366_v25 = vmul.f32 -1.442695, %v853_v63  ;;  %1907 = vmatmul.bf16.gmra.mxu2 %v3002_v19 }
 0x148   :  { %1996 = vmatmul.bf16.gmra.mxu3 %v3002_v19  ;;  %v2650_v8 = vpop.eup %2649  ;;  %v3230_v0 = vadd.f32 1.0, %v2648_v43  ;;  %v1232_v19 = vadd.f32 %v3215_v22, %v1231_v7 }
 0x149   :  { %v1244_v1 = vmul.f32 %v2650_v8, %v3217_v31  ;;  %2651 = vpow2.f32 %v2366_v25  ;;  %vm1249_vm10 = vweird.f32 %v2650_v8 }
 0x14a   :  { %2653 = vrcp.f32 %v3230_v0  ;;  %v766_v3 = vpop.f32.mrf.mxu2  ;;  %v590_v29 = vpop.f32.mrf.mxu0  ;;  %v1236_v26 = vsel %vm3244_vm11, %v3215_v22, %v1232_v19  ;;  %vm1250_vm14 = vmor %vm1248_vm12, %vm1249_vm10  ;;  %vm1263_vm0 = vweird.f32 %v3230_v0  ;;  %v1269_v43 = vand.u32 2147483648, %v3230_v0 }
 0x14b   :  { %v855_v32 = vpop.f32.mrf.mxu3  ;;  %v1245_v4 = vsub.f32 1.0, %v1244_v1  ;;  %v767_v9 = vadd.f32 %v766_v3, %v678_v2  ;;  %v679_v10 = vpop.f32.mrf.mxu1  ;;  %v591_v11 = vadd.f32 %v3161_v23, %v590_v29  ;;  %v1241_v41 = vsel %vm1238_vm13, %v1240_v35, %v1236_v26 }
 0x14c   :  { %v1267_v2 = vand.u32 2147483647, %v3230_v0  ;;  %v1270_v6 = vor.u32 1.1754944e-38, %v1269_v43 }
 0x14d   :  { %v856_v44 = vadd.f32 %v855_v32, %v767_v9  ;;  %v1246_v13 = vmul.f32 %v2650_v8, %v1245_v4  ;;  %v680_v18 = vadd.f32 %v679_v10, %v591_v11 }
 0x14e   :  { %vm1268_vm5 = vcmp.eq.f32.partialorder %v1267_v2, 8.507059e+37 }
 0x14f   :  { %v2652_v21 = vpop.eup %2651  ;;  %v2367_v24 = vmul.f32 -1.442695, %v856_v44  ;;  %v1247_v30 = vadd.f32 %v2650_v8, %v1246_v13 }
 0x150   :  { %v3252_v17 = vpop.eup %2653  ;;  %v3254_v34 = vadd.f32 1.0, %v2652_v21 }
 0x151   :  { %v1259_v37 = vmul.f32 %v3252_v17, %v3230_v0  ;;  %2655 = vpow2.f32 %v2367_v24  ;;  %v1251_v28 = vsel %vm1250_vm14, %v2650_v8, %v1247_v30  ;;  %vm1264_vm1 = vweird.f32 %v3252_v17 }
 0x152   :  { %2657 = vrcp.f32 %v3254_v34  ;;  %v768_v38 = vpop.f32.mrf.mxu2  ;;  %v1256_v42 = vsel %vm1253_vm15, %v1255_v14, %v1251_v28  ;;  %v593_v46 = vpop.f32.mrf.mxu0  ;;  %v1284_v25 = vand.u32 2147483648, %v3254_v34  ;;  %v1282_v1 = vand.u32 2147483647, %v3254_v34  ;;  %vm3281_vm3 = vmor %vm1263_vm0, %vm1264_vm1 }
 0x153   :  { %v857_v39 = vpop.f32.mrf.mxu3  ;;  %v1260_v54 = vsub.f32 1.0, %v1259_v37  ;;  %v769_v45 = vadd.f32 %v768_v38, %v680_v18  ;;  %v682_v47 = vpop.f32.mrf.mxu1  ;;  %v3259_v48 = vpack.c.bf16 %v1256_v42, %v1241_v41  ;;  %v594_v22 = vadd.f32 %v3161_v23, %v593_v46 }
 0x154   :  { %vm1278_vm4 = vweird.f32 %v3254_v34  ;;  %v1285_v0 = vor.u32 1.1754944e-38, %v1284_v25  ;;  %vm1283_vm7 = vcmp.eq.f32.partialorder %v1282_v1, 8.507059e+37 }
 0x155   :  { %v858_v31 = vadd.f32 %v857_v39, %v769_v45  ;;  %v683_v49 = vadd.f32 %v682_v47, %v594_v22  ;;  %1734 = vmatmul.bf16.gmra.mxu0 %v3036_v16  ;;  %v1261_v51 = vmul.f32 %v3252_v17, %v1260_v54 }
 0x156   :  { %1823 = vmatmul.bf16.gmra.mxu1 %v3036_v16 }
 0x157   :  { %v2656_v40 = vpop.eup %2655  ;;  %v2368_v50 = vmul.f32 -1.442695, %v858_v31  ;;  %1912 = vmatmul.bf16.gmra.mxu2 %v3036_v16 }
 0x158   :  { %2001 = vmatmul.bf16.gmra.mxu3 %v3036_v16  ;;  %v2658_v52 = vpop.eup %2657  ;;  %v3267_v53 = vadd.f32 1.0, %v2656_v40  ;;  %v1262_v16 = vadd.f32 %v3252_v17, %v1261_v51 }
 0x159   :  { %v1274_v55 = vmul.f32 %v2658_v52, %v3254_v34  ;;  %2659 = vpow2.f32 %v2368_v50  ;;  %vm1279_vm2 = vweird.f32 %v2658_v52 }
 0x15a   :  { %2661 = vrcp.f32 %v3267_v53  ;;  %v771_v56 = vpop.f32.mrf.mxu2  ;;  %v595_v60 = vpop.f32.mrf.mxu0  ;;  %v1266_v29 = vsel %vm3281_vm3, %v3252_v17, %v1262_v16  ;;  %vm1280_vm6 = vmor %vm1278_vm4, %vm1279_vm2  ;;  %vm1293_vm8 = vweird.f32 %v3267_v53  ;;  %v1299_v40 = vand.u32 2147483648, %v3267_v53 }
 0x15b   :  { %v860_v57 = vpop.f32.mrf.mxu3  ;;  %v1275_v58 = vsub.f32 1.0, %v1274_v55  ;;  %v772_v59 = vadd.f32 %v771_v56, %v683_v49  ;;  %v684_v62 = vpop.f32.mrf.mxu1  ;;  %v596_v63 = vadd.f32 %v3161_v23, %v595_v60  ;;  %v1271_v15 = vsel %vm1268_vm5, %v1270_v6, %v1266_v29 }
 0x15c   :  { %v1297_v49 = vand.u32 2147483647, %v3267_v53  ;;  %v1300_v2 = vor.u32 1.1754944e-38, %v1299_v40 }
 0x15d   :  { %v861_v7 = vadd.f32 %v860_v57, %v772_v59  ;;  %v1276_v8 = vmul.f32 %v2658_v52, %v1275_v58  ;;  %v685_v3 = vadd.f32 %v684_v62, %v596_v63 }
 0x15e   :  { %vm1298_vm13 = vcmp.eq.f32.partialorder %v1297_v49, 8.507059e+37 }
 0x15f   :  { %v2660_v4 = vpop.eup %2659  ;;  %v2369_v9 = vmul.f32 -1.442695, %v861_v7  ;;  %v1277_v10 = vadd.f32 %v2658_v52, %v1276_v8 }
 0x160   :  { %v3289_v19 = vpop.eup %2661  ;;  %v3291_v11 = vadd.f32 1.0, %v2660_v4 }
 0x161   :  { %v1289_v12 = vmul.f32 %v3289_v19, %v3267_v53  ;;  %2663 = vpow2.f32 %v2369_v9  ;;  %v1281_v33 = vsel %vm1280_vm6, %v2658_v52, %v1277_v10  ;;  %vm1294_vm9 = vweird.f32 %v3289_v19 }
 0x162   :  { %2665 = vrcp.f32 %v3291_v11  ;;  %v773_v44 = vpop.f32.mrf.mxu2  ;;  %v1286_v18 = vsel %vm1283_vm7, %v1285_v0, %v1281_v33  ;;  %v598_v24 = vpop.f32.mrf.mxu0  ;;  %v1314_v50 = vand.u32 2147483648, %v3291_v11  ;;  %v1312_v55 = vand.u32 2147483647, %v3291_v11  ;;  %vm3318_vm11 = vmor %vm1293_vm8, %vm1294_vm9 }
 0x163   :  { %v862_v13 = vpop.f32.mrf.mxu3  ;;  %v1290_v20 = vsub.f32 1.0, %v1289_v12  ;;  %v774_v21 = vadd.f32 %v773_v44, %v685_v3  ;;  %v687_v26 = vpop.f32.mrf.mxu1  ;;  %v3296_v30 = vpack.c.bf16 %v1286_v18, %v1271_v15  ;;  %v599_v17 = vadd.f32 %v3161_v23, %v598_v24 }
 0x164   :  { %vm1308_vm12 = vweird.f32 %v3291_v11  ;;  %v1315_v53 = vor.u32 1.1754944e-38, %v1314_v50  ;;  %vm1313_vm15 = vcmp.eq.f32.partialorder %v1312_v55, 8.507059e+37 }
 0x165   :  { %v863_v34 = vadd.f32 %v862_v13, %v774_v21  ;;  %v688_v35 = vadd.f32 %v687_v26, %v599_v17  ;;  %1739 = vmatmul.bf16.gmra.mxu0 %v3110_v36  ;;  %v1291_v28 = vmul.f32 %v3289_v19, %v1290_v20 }
 0x166   :  { %1828 = vmatmul.bf16.gmra.mxu1 %v3110_v36 }
 0x167   :  { %v2664_v14 = vpop.eup %2663  ;;  %v2370_v37 = vmul.f32 -1.442695, %v863_v34  ;;  %1917 = vmatmul.bf16.gmra.mxu2 %v3110_v36 }
 0x168   :  { %2006 = vmatmul.bf16.gmra.mxu3 %v3110_v36  ;;  %v2666_v38 = vpop.eup %2665  ;;  %v3304_v39 = vadd.f32 1.0, %v2664_v14  ;;  %v1292_v36 = vadd.f32 %v3289_v19, %v1291_v28 }
 0x169   :  { %v1304_v41 = vmul.f32 %v2666_v38, %v3291_v11  ;;  %2667 = vpow2.f32 %v2370_v37  ;;  %vm1309_vm10 = vweird.f32 %v2666_v38 }
 0x16a   :  { %2669 = vrcp.f32 %v3304_v39  ;;  %v776_v42 = vpop.f32.mrf.mxu2  ;;  %v600_v47 = vpop.f32.mrf.mxu0  ;;  %v1296_v60 = vsel %vm3318_vm11, %v3289_v19, %v1292_v36  ;;  %vm1310_vm14 = vmor %vm1308_vm12, %vm1309_vm10  ;;  %vm1323_vm0 = vweird.f32 %v3304_v39  ;;  %v1329_v14 = vand.u32 2147483648, %v3304_v39 }
 0x16b   :  { %v865_v54 = vpop.f32.mrf.mxu3  ;;  %v1305_v45 = vsub.f32 1.0, %v1304_v41  ;;  %v777_v46 = vadd.f32 %v776_v42, %v688_v35  ;;  %v689_v22 = vpop.f32.mrf.mxu1  ;;  %v601_v31 = vadd.f32 %v3161_v23, %v600_v47  ;;  %v1301_v1 = vsel %vm1298_vm13, %v1300_v2, %v1296_v60 }
 0x16c   :  { %v1327_v35 = vand.u32 2147483647, %v3304_v39  ;;  %v1330_v49 = vor.u32 1.1754944e-38, %v1329_v14 }
 0x16d   :  { %v866_v51 = vadd.f32 %v865_v54, %v777_v46  ;;  %v1306_v52 = vmul.f32 %v2666_v38, %v1305_v45  ;;  %v690_v56 = vadd.f32 %v689_v22, %v601_v31 }
 0x16e   :  { %vm1328_vm5 = vcmp.eq.f32.partialorder %v1327_v35, 8.507059e+37 }
 0x16f   :  { %v2668_v58 = vpop.eup %2667  ;;  %v2371_v59 = vmul.f32 -1.442695, %v866_v51  ;;  %v1307_v62 = vadd.f32 %v2666_v38, %v1306_v52 }
 0x170   :  { %v3326_v16 = vpop.eup %2669  ;;  %v3328_v63 = vadd.f32 1.0, %v2668_v58 }
 0x171   :  { %v1319_v43 = vmul.f32 %v3326_v16, %v3304_v39  ;;  %2671 = vpow2.f32 %v2371_v59  ;;  %v1311_v25 = vsel %vm1310_vm14, %v2666_v38, %v1307_v62  ;;  %vm1324_vm1 = vweird.f32 %v3326_v16 }
 0x172   :  { %2673 = vrcp.f32 %v3328_v63  ;;  %v778_v7 = vpop.f32.mrf.mxu2  ;;  %v1316_v3 = vsel %vm1313_vm15, %v1315_v53, %v1311_v25  ;;  %v603_v9 = vpop.f32.mrf.mxu0  ;;  %v1344_v37 = vand.u32 2147483648, %v3328_v63  ;;  %v1342_v41 = vand.u32 2147483647, %v3328_v63  ;;  %vm3355_vm3 = vmor %vm1323_vm0, %vm1324_vm1 }
 0x173   :  { %v867_v8 = vpop.f32.mrf.mxu3  ;;  %v1320_v32 = vsub.f32 1.0, %v1319_v43  ;;  %v779_v4 = vadd.f32 %v778_v7, %v690_v56  ;;  %v692_v29 = vpop.f32.mrf.mxu1  ;;  %v3333_v10 = vpack.c.bf16 %v1316_v3, %v1301_v1  ;;  %v604_v19 = vadd.f32 %v3161_v23, %v603_v9 }
 0x174   :  { %vm1338_vm4 = vweird.f32 %v3328_v63  ;;  %v1345_v39 = vor.u32 1.1754944e-38, %v1344_v37  ;;  %vm1343_vm7 = vcmp.eq.f32.partialorder %v1342_v41, 8.507059e+37 }
 0x175   :  { %v868_v11 = vadd.f32 %v867_v8, %v779_v4  ;;  %v693_v6 = vadd.f32 %v692_v29, %v604_v19  ;;  %1744 = vmatmul.bf16.gmra.mxu0 %v3147_v27  ;;  %v1321_v33 = vmul.f32 %v3326_v16, %v1320_v32 }
 0x176   :  { %1833 = vmatmul.bf16.gmra.mxu1 %v3147_v27 }
 0x177   :  { %v2672_v0 = vpop.eup %2671  ;;  %v2372_v12 = vmul.f32 -1.442695, %v868_v11  ;;  %1922 = vmatmul.bf16.gmra.mxu2 %v3147_v27 }
 0x178   :  { %2011 = vmatmul.bf16.gmra.mxu3 %v3147_v27  ;;  %v2674_v44 = vpop.eup %2673  ;;  %v3341_v13 = vadd.f32 1.0, %v2672_v0  ;;  %v1322_v27 = vadd.f32 %v3326_v16, %v1321_v33 }
 0x179   :  { %v1334_v15 = vmul.f32 %v2674_v44, %v3328_v63  ;;  %2675 = vpow2.f32 %v2372_v12  ;;  %vm1339_vm2 = vweird.f32 %v2674_v44 }
 0x17a   :  { %2677 = vrcp.f32 %v3341_v13  ;;  %v781_v18 = vpop.f32.mrf.mxu2  ;;  %v605_v26 = vpop.f32.mrf.mxu0  ;;  %v1326_v47 = vsel %vm3355_vm3, %v3326_v16, %v1322_v27  ;;  %vm1340_vm6 = vmor %vm1338_vm4, %vm1339_vm2  ;;  %vm1353_vm8 = vweird.f32 %v3341_v13  ;;  %v1359_v0 = vand.u32 2147483648, %v3341_v13 }
 0x17b   :  { %v870_v20 = vpop.f32.mrf.mxu3  ;;  %v1335_v21 = vsub.f32 1.0, %v1334_v15  ;;  %v782_v24 = vadd.f32 %v781_v18, %v693_v6  ;;  %v694_v17 = vpop.f32.mrf.mxu1  ;;  %v606_v34 = vadd.f32 %v3161_v23, %v605_v26  ;;  %v1331_v55 = vsel %vm1328_vm5, %v1330_v49, %v1326_v47 }
 0x17c   :  { %v1357_v6 = vand.u32 2147483647, %v3341_v13  ;;  %v1360_v35 = vor.u32 1.1754944e-38, %v1359_v0 }
 0x17d   :  { %v871_v28 = vadd.f32 %v870_v20, %v782_v24  ;;  %v1336_v38 = vmul.f32 %v2674_v44, %v1335_v21  ;;  %v695_v42 = vadd.f32 %v694_v17, %v606_v34 }
 0x17e   :  { %vm1358_vm13 = vcmp.eq.f32.partialorder %v1357_v6, 8.507059e+37 }
 0x17f   :  { %v2676_v45 = vpop.eup %2675  ;;  %v2373_v46 = vmul.f32 -1.442695, %v871_v28  ;;  %v1337_v22 = vadd.f32 %v2674_v44, %v1336_v38 }
 0x180   :  { %v3363_v36 = vpop.eup %2677  ;;  %v3365_v31 = vadd.f32 1.0, %v2676_v45 }
 0x181   :  { %v1349_v40 = vmul.f32 %v3363_v36, %v3341_v13  ;;  %2679 = vpow2.f32 %v2373_v46  ;;  %v1341_v50 = vsel %vm1340_vm6, %v2674_v44, %v1337_v22  ;;  %vm1354_vm9 = vweird.f32 %v3363_v36 }
 0x182   :  { %2681 = vrcp.f32 %v3365_v31  ;;  %v783_v51 = vpop.f32.mrf.mxu2  ;;  %v1346_v56 = vsel %vm1343_vm7, %v1345_v39, %v1341_v50  ;;  %v608_v59 = vpop.f32.mrf.mxu0  ;;  %v1374_v12 = vand.u32 2147483648, %v3365_v31  ;;  %v1372_v15 = vand.u32 2147483647, %v3365_v31  ;;  %vm3392_vm11 = vmor %vm1353_vm8, %vm1354_vm9 }
 0x183   :  { %v872_v52 = vpop.f32.mrf.mxu3  ;;  %v1350_v57 = vsub.f32 1.0, %v1349_v40  ;;  %v784_v58 = vadd.f32 %v783_v51, %v695_v42  ;;  %v697_v60 = vpop.f32.mrf.mxu1  ;;  %v3370_v62 = vpack.c.bf16 %v1346_v56, %v1331_v55  ;;  %v609_v16 = vadd.f32 %v3161_v23, %v608_v59 }
 0x184   :  { %vm1368_vm12 = vweird.f32 %v3365_v31  ;;  %v1375_v13 = vor.u32 1.1754944e-38, %v1374_v12  ;;  %vm1373_vm15 = vcmp.eq.f32.partialorder %v1372_v15, 8.507059e+37 }
 0x185   :  { %v873_v63 = vadd.f32 %v872_v52, %v784_v58  ;;  %v698_v2 = vadd.f32 %v697_v60, %v609_v16  ;;  %1749 = vmatmul.bf16.gmra.mxu0 %v3185_v5  ;;  %v1351_v25 = vmul.f32 %v3363_v36, %v1350_v57 }
 0x186   :  { %1838 = vmatmul.bf16.gmra.mxu1 %v3185_v5 }
 0x187   :  { %v2680_v53 = vpop.eup %2679  ;;  %v2374_v43 = vmul.f32 -1.442695, %v873_v63  ;;  %1927 = vmatmul.bf16.gmra.mxu2 %v3185_v5 }
 0x188   :  { %2016 = vmatmul.bf16.gmra.mxu3 %v3185_v5  ;;  %v2682_v7 = vpop.eup %2681  ;;  %v3378_v8 = vadd.f32 1.0, %v2680_v53  ;;  %v1352_v5 = vadd.f32 %v3363_v36, %v1351_v25 }
 0x189   :  { %v1364_v1 = vmul.f32 %v2682_v7, %v3365_v31  ;;  %2683 = vpow2.f32 %v2374_v43  ;;  %vm1369_vm10 = vweird.f32 %v2682_v7 }
 0x18a   :  { %2685 = vrcp.f32 %v3378_v8  ;;  %v786_v3 = vpop.f32.mrf.mxu2  ;;  %v610_v29 = vpop.f32.mrf.mxu0  ;;  %v1356_v26 = vsel %vm3392_vm11, %v3363_v36, %v1352_v5  ;;  %vm1370_vm14 = vmor %vm1368_vm12, %vm1369_vm10  ;;  %vm1383_vm0 = vweird.f32 %v3378_v8  ;;  %v1389_v53 = vand.u32 2147483648, %v3378_v8 }
 0x18b   :  { %v875_v32 = vpop.f32.mrf.mxu3  ;;  %v1365_v4 = vsub.f32 1.0, %v1364_v1  ;;  %v787_v9 = vadd.f32 %v786_v3, %v698_v2  ;;  %v699_v19 = vpop.f32.mrf.mxu1  ;;  %v611_v11 = vadd.f32 %v3161_v23, %v610_v29  ;;  %v1361_v41 = vsel %vm1358_vm13, %v1360_v35, %v1356_v26 }
 0x18c   :  { %v1387_v2 = vand.u32 2147483647, %v3378_v8  ;;  %v1390_v6 = vor.u32 1.1754944e-38, %v1389_v53 }
 0x18d   :  { %v876_v33 = vadd.f32 %v875_v32, %v787_v9  ;;  %v1366_v44 = vmul.f32 %v2682_v7, %v1365_v4  ;;  %v700_v18 = vadd.f32 %v699_v19, %v611_v11 }
 0x18e   :  { %vm1388_vm5 = vcmp.eq.f32.partialorder %v1387_v2, 8.507059e+37 }
 0x18f   :  { %v2684_v21 = vpop.eup %2683  ;;  %v2375_v24 = vmul.f32 -1.442695, %v876_v33  ;;  %v1367_v17 = vadd.f32 %v2682_v7, %v1366_v44 }
 0x190   :  { %v3400_v27 = vpop.eup %2685  ;;  %v3402_v34 = vadd.f32 1.0, %v2684_v21 }
 0x191   :  { %v1379_v14 = vmul.f32 %v3400_v27, %v3378_v8  ;;  %2687 = vpow2.f32 %v2375_v24  ;;  %v1371_v37 = vsel %vm1370_vm14, %v2682_v7, %v1367_v17  ;;  %vm1384_vm1 = vweird.f32 %v3400_v27 }
 0x192   :  { %2689 = vrcp.f32 %v3402_v34  ;;  %v788_v28 = vpop.f32.mrf.mxu2  ;;  %v1376_v42 = vsel %vm1373_vm15, %v1375_v13, %v1371_v37  ;;  %v613_v46 = vpop.f32.mrf.mxu0  ;;  %v1404_v43 = vand.u32 2147483648, %v3402_v34  ;;  %v1402_v1 = vand.u32 2147483647, %v3402_v34  ;;  %vm3429_vm3 = vmor %vm1383_vm0, %vm1384_vm1 }
 0x193   :  { %v877_v38 = vpop.f32.mrf.mxu3  ;;  %v1380_v54 = vsub.f32 1.0, %v1379_v14  ;;  %v789_v45 = vadd.f32 %v788_v28, %v700_v18  ;;  %v702_v47 = vpop.f32.mrf.mxu1  ;;  %v3407_v22 = vpack.c.bf16 %v1376_v42, %v1361_v41  ;;  %v614_v36 = vadd.f32 %v3161_v23, %v613_v46 }
 0x194   :  { %vm1398_vm4 = vweird.f32 %v3402_v34  ;;  %v1405_v8 = vor.u32 1.1754944e-38, %v1404_v43  ;;  %vm1403_vm7 = vcmp.eq.f32.partialorder %v1402_v1, 8.507059e+37 }
 0x195   :  { %v878_v31 = vadd.f32 %v877_v38, %v789_v45  ;;  %v703_v49 = vadd.f32 %v702_v47, %v614_v36  ;;  %1754 = vmatmul.bf16.gmra.mxu0 %v3222_v61  ;;  %v1381_v50 = vmul.f32 %v3400_v27, %v1380_v54 }
 0x196   :  { %1843 = vmatmul.bf16.gmra.mxu1 %v3222_v61 }
 0x197   :  { %v2688_v39 = vpop.eup %2687  ;;  %v2376_v40 = vmul.f32 -1.442695, %v878_v31  ;;  %1932 = vmatmul.bf16.gmra.mxu2 %v3222_v61  ;;  %v1546_v31 = vld [vmem:[#allocation8] sm:$0xf] }
 0x198   :  { %2021 = vmatmul.bf16.gmra.mxu3 %v3222_v61  ;;  %v2690_v51 = vpop.eup %2689  ;;  %v3415_v52 = vadd.f32 1.0, %v2688_v39  ;;  %v1382_v61 = vadd.f32 %v3400_v27, %v1381_v50 }
 0x199   :  { %v1394_v55 = vmul.f32 %v2690_v51, %v3402_v34  ;;  %2691 = vpow2.f32 %v2376_v40  ;;  %vm1399_vm2 = vweird.f32 %v2690_v51 }
 0x19a   :  { %2693 = vrcp.f32 %v3415_v52  ;;  %v791_v56 = vpop.f32.mrf.mxu2  ;;  %v615_v60 = vpop.f32.mrf.mxu0  ;;  %v1386_v29 = vsel %vm3429_vm3, %v3400_v27, %v1382_v61  ;;  %vm1400_vm6 = vmor %vm1398_vm4, %vm1399_vm2  ;;  %vm1413_vm8 = vweird.f32 %v3415_v52  ;;  %v1417_v39 = vand.u32 2147483647, %v3415_v52 }
 0x19b   :  { %v880_v57 = vpop.f32.mrf.mxu3  ;;  %v1395_v58 = vsub.f32 1.0, %v1394_v55  ;;  %v792_v59 = vadd.f32 %v791_v56, %v703_v49  ;;  %v704_v16 = vpop.f32.mrf.mxu1  ;;  %v616_v63 = vadd.f32 %v3161_v23, %v615_v60  ;;  %v1391_v15 = vsel %vm1388_vm5, %v1390_v6, %v1386_v29 }
 0x19c   :  { %v1419_v40 = vand.u32 2147483648, %v3415_v52  ;;  %vm1418_vm13 = vcmp.eq.f32.partialorder %v1417_v39, 8.507059e+37 }
 0x19d   :  { %v881_v25 = vadd.f32 %v880_v57, %v792_v59  ;;  %v1396_v7 = vmul.f32 %v2690_v51, %v1395_v58  ;;  %v705_v3 = vadd.f32 %v704_v16, %v616_v63  ;;  %v3464_v58 = vperm.slane %v1546_v31, 0 }
 0x19e   :  { %v3466_v59 = vperm.slane %v1546_v31, 1  ;;  %v1420_v43 = vor.u32 1.1754944e-38, %v1419_v40 }
 0x19f   :  { %v2692_v4 = vpop.eup %2691  ;;  %v2377_v9 = vmul.f32 -1.442695, %v881_v25  ;;  %v1397_v19 = vadd.f32 %v2690_v51, %v1396_v7 }
 0x1a0   :  { %v3437_v5 = vpop.eup %2693  ;;  %v3439_v11 = vadd.f32 1.0, %v2692_v4 }
 0x1a1   :  { %v1409_v0 = vmul.f32 %v3437_v5, %v3415_v52  ;;  %2695 = vpow2.f32 %v2377_v9  ;;  %v1401_v12 = vsel %vm1400_vm6, %v2690_v51, %v1397_v19  ;;  %vm1414_vm9 = vweird.f32 %v3437_v5 }
 0x1a2   :  { %2697 = vrcp.f32 %v3439_v11  ;;  %v793_v33 = vpop.f32.mrf.mxu2  ;;  %v1406_v18 = vsel %vm1403_vm7, %v1405_v8, %v1401_v12  ;;  %v618_v24 = vpop.f32.mrf.mxu0  ;;  %v1434_v50 = vand.u32 2147483648, %v3439_v11  ;;  %v1432_v56 = vand.u32 2147483647, %v3439_v11  ;;  %vm3470_vm11 = vmor %vm1413_vm8, %vm1414_vm9 }
 0x1a3   :  { %v882_v44 = vpop.f32.mrf.mxu3  ;;  %v1410_v20 = vsub.f32 1.0, %v1409_v0  ;;  %v794_v21 = vadd.f32 %v793_v33, %v705_v3  ;;  %v707_v26 = vpop.f32.mrf.mxu1  ;;  %v3444_v17 = vpack.c.bf16 %v1406_v18, %v1391_v15  ;;  %v619_v27 = vadd.f32 %v3161_v23, %v618_v24 }
 0x1a4   :  { %vm1428_vm12 = vweird.f32 %v3439_v11  ;;  %v1435_v52 = vor.u32 1.1754944e-38, %v1434_v50  ;;  %vm1433_vm15 = vcmp.eq.f32.partialorder %v1432_v56, 8.507059e+37  ;;  %v3496_v15 = vperm.slane %v1546_v31, 3 }
 0x1a5   :  { %v883_v34 = vadd.f32 %v882_v44, %v794_v21  ;;  %v708_v35 = vadd.f32 %v707_v26, %v619_v27  ;;  %1759 = vmatmul.bf16.gmra.mxu0 %v3259_v48  ;;  %v1411_v37 = vmul.f32 %v3437_v5, %v1410_v20  ;;  %v3494_v44 = vperm.slane %v1546_v31, 2 }
 0x1a6   :  { %1848 = vmatmul.bf16.gmra.mxu1 %v3259_v48 }
 0x1a7   :  { %v2696_v13 = vpop.eup %2695  ;;  %v2378_v14 = vmul.f32 -1.442695, %v883_v34  ;;  %1937 = vmatmul.bf16.gmra.mxu2 %v3259_v48 }
 0x1a8   :  { %2026 = vmatmul.bf16.gmra.mxu3 %v3259_v48  ;;  %v2698_v28 = vpop.eup %2697  ;;  %v3452_v38 = vadd.f32 1.0, %v2696_v13  ;;  %v1412_v48 = vadd.f32 %v3437_v5, %v1411_v37 }
 0x1a9   :  { %v1424_v41 = vmul.f32 %v2698_v28, %v3439_v11  ;;  %2699 = vpow2.f32 %v2378_v14  ;;  %vm1429_vm10 = vweird.f32 %v2698_v28 }
 0x1aa   :  { %2701 = vrcp.f32 %v3452_v38  ;;  %v796_v42 = vpop.f32.mrf.mxu2  ;;  %v620_v47 = vpop.f32.mrf.mxu0  ;;  %v1416_v61 = vsel %vm3470_vm11, %v3437_v5, %v1412_v48  ;;  %vm1430_vm14 = vmor %vm1428_vm12, %vm1429_vm10  ;;  %vm1443_vm0 = vweird.f32 %v3452_v38 }
 0x1ab   :  { %v885_v54 = vpop.f32.mrf.mxu3  ;;  %v1425_v45 = vsub.f32 1.0, %v1424_v41  ;;  %v797_v46 = vadd.f32 %v796_v42, %v708_v35  ;;  %v709_v36 = vpop.f32.mrf.mxu1  ;;  %v621_v49 = vadd.f32 %v3161_v23, %v620_v47  ;;  %v1421_v32 = vsel %vm1418_vm13, %v1420_v43, %v1416_v61 }
 0x1ac   :  { %v1449_v42 = vand.u32 2147483648, %v3452_v38 }
 0x1ad   :  { %v886_v51 = vadd.f32 %v885_v54, %v797_v46  ;;  %v1426_v55 = vmul.f32 %v2698_v28, %v1425_v45  ;;  %v710_v57 = vadd.f32 %v709_v36, %v621_v49  ;;  %v1447_v45 = vand.u32 2147483647, %v3452_v38 }
 0x1ae   :  { %v1450_v50 = vor.u32 1.1754944e-38, %v1449_v42 }
 0x1af   :  { %v2700_v60 = vpop.eup %2699  ;;  %v2379_v16 = vmul.f32 -1.442695, %v886_v51  ;;  %v1427_v63 = vadd.f32 %v2698_v28, %v1426_v55  ;;  %vm1448_vm6 = vcmp.eq.f32.partialorder %v1447_v45, 8.507059e+37 }
 0x1b0   :  { %v3478_v2 = vpop.eup %2701  ;;  %v3480_v53 = vadd.f32 1.0, %v2700_v60 }
 0x1b1   :  { %v1439_v25 = vmul.f32 %v3478_v2, %v3452_v38  ;;  %2703 = vpow2.f32 %v2379_v16  ;;  %v1431_v7 = vsel %vm1430_vm14, %v2698_v28, %v1427_v63  ;;  %vm1444_vm1 = vweird.f32 %v3478_v2 }
 0x1b2   :  { %2705 = vrcp.f32 %v3480_v53  ;;  %v798_v1 = vpop.f32.mrf.mxu2  ;;  %v1436_v4 = vsel %vm1433_vm15, %v1435_v52, %v1431_v7  ;;  %v1725_v19 = vpop.f32.mrf.mxu0  ;;  %v1464_v54 = vand.u32 2147483648, %v3480_v53  ;;  %v1462_v47 = vand.u32 2147483647, %v3480_v53  ;;  %vm3518_vm3 = vmor %vm1443_vm0, %vm1444_vm1 }
 0x1b3   :  { %v887_v3 = vpop.f32.mrf.mxu3  ;;  %v1440_v9 = vsub.f32 1.0, %v1439_v25  ;;  %v799_v29 = vadd.f32 %v798_v1, %v710_v57  ;;  %v1814_v5 = vpop.f32.mrf.mxu1  ;;  %v3486_v11 = vpack.c.bf16 %v1436_v4, %v1421_v32  ;;  %v1726_v6 = vadd.f32 %v1725_v19, %v3464_v58 }
 0x1b4   :  { %v1815_v8 = vadd.f32 %v1814_v5, %v3466_v59  ;;  %vm1458_vm4 = vweird.f32 %v3480_v53  ;;  %v1465_v38 = vor.u32 1.1754944e-38, %v1464_v54  ;;  %vm1463_vm7 = vcmp.eq.f32.partialorder %v1462_v47, 8.507059e+37 }
 0x1b5   :  { %v888_v0 = vadd.f32 %v887_v3, %v799_v29  ;;  %2072 = vst [vmem:[#allocation10] sm:$0xff] %v1726_v6  ;;  %1764 = vmatmul.bf16.gmra.mxu0 %v3296_v30  ;;  %v1441_v18 = vmul.f32 %v3478_v2, %v1440_v9 }
 0x1b6   :  { %1853 = vmatmul.bf16.gmra.mxu1 %v3296_v30  ;;  %2073 = vst [vmem:[#allocation10 + $0x8] sm:$0xff] %v1815_v8 }
 0x1b7   :  { %v2704_v12 = vpop.eup %2703  ;;  %v2380_v33 = vmul.f32 -1.442695, %v888_v0  ;;  %1942 = vmatmul.bf16.gmra.mxu2 %v3296_v30  ;;  %v1442_v37 = vadd.f32 %v3478_v2, %v1441_v18 }
 0x1b8   :  { %2031 = vmatmul.bf16.gmra.mxu3 %v3296_v30  ;;  %v2706_v20 = vpop.eup %2705  ;;  %v3499_v21 = vadd.f32 1.0, %v2704_v12 }
 0x1b9   :  { %v1454_v24 = vmul.f32 %v2706_v20, %v3480_v53  ;;  %2707 = vpow2.f32 %v2380_v33  ;;  %vm1459_vm2 = vweird.f32 %v2706_v20  ;;  %v1446_v48 = vsel %vm3518_vm3, %v3478_v2, %v1442_v37 }
 0x1ba   :  { %2709 = vrcp.f32 %v3499_v21  ;;  %v1903_v26 = vpop.f32.mrf.mxu2  ;;  %v1727_v13 = vpop.f32.mrf.mxu0  ;;  %vm1460_vm5 = vmor %vm1458_vm4, %vm1459_vm2  ;;  %v1451_v23 = vsel %vm1448_vm6, %v1450_v50, %v1446_v48  ;;  %vm1473_vm8 = vweird.f32 %v3499_v21  ;;  %v1479_v12 = vand.u32 2147483648, %v3499_v21 }
 0x1bb   :  { %v1992_v27 = vpop.f32.mrf.mxu3  ;;  %v1455_v30 = vsub.f32 1.0, %v1454_v24  ;;  %v1904_v34 = vadd.f32 %v1903_v26, %v3494_v44  ;;  %v1816_v14 = vpop.f32.mrf.mxu1  ;;  %v1728_v28 = vadd.f32 %v1727_v13, %v3464_v58  ;;  %v1477_v18 = vand.u32 2147483647, %v3499_v21 }
 0x1bc   :  { %v1993_v35 = vadd.f32 %v1992_v27, %v3496_v15  ;;  %v1817_v41 = vadd.f32 %v1816_v14, %v3466_v59 }
 0x1bd   :  { %2074 = vst [vmem:[#allocation10 + $0x10] sm:$0xff] %v1904_v34  ;;  %v1456_v46 = vmul.f32 %v2706_v20, %v1455_v30  ;;  %v1480_v30 = vor.u32 1.1754944e-38, %v1479_v12  ;;  %vm1478_vm14 = vcmp.eq.f32.partialorder %v1477_v18, 8.507059e+37 }
 0x1be   :  { %2075 = vst [vmem:[#allocation10 + $0x18] sm:$0xff] %v1993_v35 }
 0x1bf   :  { %v2708_v31 = vpop.eup %2707  ;;  %2076 = vst [vmem:[#allocation10 + $0x20] sm:$0xff] %v1728_v28  ;;  %v1457_v49 = vadd.f32 %v2706_v20, %v1456_v46 }
 0x1c0   :  { %v3526_v39 = vpop.eup %2709  ;;  %v3528_v40 = vadd.f32 1.0, %v2708_v31  ;;  %2077 = vst [vmem:[#allocation10 + $0x28] sm:$0xff] %v1817_v41 }
 0x1c1   :  { %v1469_v51 = vmul.f32 %v3526_v39, %v3499_v21  ;;  %v1461_v55 = vsel %vm1460_vm5, %v2706_v20, %v1457_v49  ;;  %vm1474_vm9 = vweird.f32 %v3526_v39 }
 0x1c2   :  { %2711 = vrcp.f32 %v3528_v40  ;;  %v1905_v56 = vpop.f32.mrf.mxu2  ;;  %v1466_v60 = vsel %vm1463_vm7, %v1465_v38, %v1461_v55  ;;  %v1730_v2 = vpop.f32.mrf.mxu0  ;;  %v1494_v33 = vand.u32 2147483648, %v3528_v40  ;;  %v1492_v24 = vand.u32 2147483647, %v3528_v40  ;;  %vm1475_vm11 = vmor %vm1473_vm8, %vm1474_vm9 }
 0x1c3   :  { %v1994_v57 = vpop.f32.mrf.mxu3  ;;  %v1470_v16 = vsub.f32 1.0, %v1469_v51  ;;  %v1906_v61 = vadd.f32 %v1905_v56, %v3494_v44  ;;  %v1819_v53 = vpop.f32.mrf.mxu1  ;;  %v3535_v43 = vpack.c.bf16 %v1466_v60, %v1451_v23  ;;  %v1731_v52 = vadd.f32 %v1730_v2, %v3464_v58 }
 0x1c4   :  { %v1995_v63 = vadd.f32 %v1994_v57, %v3496_v15  ;;  %v1820_v25 = vadd.f32 %v1819_v53, %v3466_v59  ;;  %vm1488_vm12 = vweird.f32 %v3528_v40  ;;  %v1495_v34 = vor.u32 1.1754944e-38, %v1494_v33 }
 0x1c5   :  { %2078 = vst [vmem:[#allocation10 + $0x30] sm:$0xff] %v1906_v61  ;;  %1769 = vmatmul.bf16.gmra.mxu0 %v3333_v10  ;;  %v1471_v7 = vmul.f32 %v3526_v39, %v1470_v16  ;;  %vm1493_vm15 = vcmp.eq.f32.partialorder %v1492_v24, 8.507059e+37 }
 0x1c6   :  { %2079 = vst [vmem:[#allocation10 + $0x38] sm:$0xff] %v1995_v63  ;;  %1858 = vmatmul.bf16.gmra.mxu1 %v3333_v10 }
 0x1c7   :  { %2080 = vst [vmem:[#allocation10 + $0x40] sm:$0xff] %v1731_v52  ;;  %1947 = vmatmul.bf16.gmra.mxu2 %v3333_v10 }
 0x1c8   :  { %2036 = vmatmul.bf16.gmra.mxu3 %v3333_v10  ;;  %v2712_v1 = vpop.eup %2711  ;;  %2081 = vst [vmem:[#allocation10 + $0x48] sm:$0xff] %v1820_v25  ;;  %v1472_v10 = vadd.f32 %v3526_v39, %v1471_v7 }
 0x1c9   :  { %v1484_v3 = vmul.f32 %v2712_v1, %v3528_v40  ;;  %vm1489_vm10 = vweird.f32 %v2712_v1 }
 0x1ca   :  { %v1908_v32 = vpop.f32.mrf.mxu2  ;;  %v1732_v5 = vpop.f32.mrf.mxu0  ;;  %v1476_v26 = vsel %vm1475_vm11, %v3526_v39, %v1472_v10  ;;  %vm1490_vm13 = vmor %vm1488_vm12, %vm1489_vm10 }
 0x1cb   :  { %v1997_v4 = vpop.f32.mrf.mxu3  ;;  %v1485_v9 = vsub.f32 1.0, %v1484_v3  ;;  %v1909_v29 = vadd.f32 %v1908_v32, %v3494_v44  ;;  %v1821_v6 = vpop.f32.mrf.mxu1  ;;  %v1733_v8 = vadd.f32 %v1732_v5, %v3464_v58  ;;  %v1481_v37 = vsel %vm1478_vm14, %v1480_v30, %v1476_v26 }
 0x1cc   :  { %v1998_v19 = vadd.f32 %v1997_v4, %v3496_v15  ;;  %v1822_v0 = vadd.f32 %v1821_v6, %v3466_v59 }
 0x1cd   :  { %2082 = vst [vmem:[#allocation10 + $0x50] sm:$0xff] %v1909_v29  ;;  %v1486_v20 = vmul.f32 %v2712_v1, %v1485_v9 }
 0x1ce   :  { %2083 = vst [vmem:[#allocation10 + $0x58] sm:$0xff] %v1998_v19 }
 0x1cf   :  { %2084 = vst [vmem:[#allocation10 + $0x60] sm:$0xff] %v1733_v8  ;;  %v1487_v27 = vadd.f32 %v2712_v1, %v1486_v20 }
 0x1d0   :  { %2085 = vst [vmem:[#allocation10 + $0x68] sm:$0xff] %v1822_v0 }
 0x1d1   :  { %v1491_v35 = vsel %vm1490_vm13, %v2712_v1, %v1487_v27 }
 0x1d2   :  { %v1910_v13 = vpop.f32.mrf.mxu2  ;;  %v1496_v28 = vsel %vm1493_vm15, %v1495_v34, %v1491_v35  ;;  %v1735_v42 = vpop.f32.mrf.mxu0 }
 0x1d3   :  { %v1999_v14 = vpop.f32.mrf.mxu3  ;;  %v1911_v21 = vadd.f32 %v1910_v13, %v3494_v44  ;;  %v1824_v54 = vpop.f32.mrf.mxu1  ;;  %v3564_v45 = vpack.c.bf16 %v1496_v28, %v1481_v37  ;;  %v1736_v46 = vadd.f32 %v1735_v42, %v3464_v58 }
 0x1d4   :  { %v2000_v41 = vadd.f32 %v1999_v14, %v3496_v15  ;;  %v1825_v47 = vadd.f32 %v1824_v54, %v3466_v59 }
 0x1d5   :  { %2086 = vst [vmem:[#allocation10 + $0x70] sm:$0xff] %v1911_v21  ;;  %1774 = vmatmul.bf16.gmra.mxu0 %v3370_v62 }
 0x1d6   :  { %2087 = vst [vmem:[#allocation10 + $0x78] sm:$0xff] %v2000_v41  ;;  %1863 = vmatmul.bf16.gmra.mxu1 %v3370_v62 }
 0x1d7   :  { %2088 = vst [vmem:[#allocation10 + $0x80] sm:$0xff] %v1736_v46  ;;  %1952 = vmatmul.bf16.gmra.mxu2 %v3370_v62 }
 0x1d8   :  { %2041 = vmatmul.bf16.gmra.mxu3 %v3370_v62  ;;  %2089 = vst [vmem:[#allocation10 + $0x88] sm:$0xff] %v1825_v47 }
 0x1da   :  { %v1913_v36 = vpop.f32.mrf.mxu2  ;;  %v1737_v39 = vpop.f32.mrf.mxu0 }
 0x1db   :  { %v2002_v31 = vpop.f32.mrf.mxu3  ;;  %v1914_v48 = vadd.f32 %v1913_v36, %v3494_v44  ;;  %v1826_v40 = vpop.f32.mrf.mxu1  ;;  %v1738_v50 = vadd.f32 %v1737_v39, %v3464_v58 }
 0x1dc   :  { %v2003_v49 = vadd.f32 %v2002_v31, %v3496_v15  ;;  %v1827_v38 = vadd.f32 %v1826_v40, %v3466_v59 }
 0x1dd   :  { %2090 = vst [vmem:[#allocation10 + $0x90] sm:$0xff] %v1914_v48 }
 0x1de   :  { %2091 = vst [vmem:[#allocation10 + $0x98] sm:$0xff] %v2003_v49 }
 0x1df   :  { %2092 = vst [vmem:[#allocation10 + $0xa0] sm:$0xff] %v1738_v50 }
 0x1e0   :  { %2093 = vst [vmem:[#allocation10 + $0xa8] sm:$0xff] %v1827_v38 }
 0x1e2   :  { %v1915_v51 = vpop.f32.mrf.mxu2  ;;  %v1740_v57 = vpop.f32.mrf.mxu0 }
 0x1e3   :  { %v2004_v55 = vpop.f32.mrf.mxu3  ;;  %v1916_v62 = vadd.f32 %v1915_v51, %v3494_v44  ;;  %v1829_v23 = vpop.f32.mrf.mxu1  ;;  %v1741_v60 = vadd.f32 %v1740_v57, %v3464_v58 }
 0x1e4   :  { %v2005_v56 = vadd.f32 %v2004_v55, %v3496_v15  ;;  %v1830_v16 = vadd.f32 %v1829_v23, %v3466_v59 }
 0x1e5   :  { %2094 = vst [vmem:[#allocation10 + $0xb0] sm:$0xff] %v1916_v62  ;;  %1779 = vmatmul.bf16.gmra.mxu0 %v3407_v22 }
 0x1e6   :  { %2095 = vst [vmem:[#allocation10 + $0xb8] sm:$0xff] %v2005_v56  ;;  %1868 = vmatmul.bf16.gmra.mxu1 %v3407_v22 }
 0x1e7   :  { %2096 = vst [vmem:[#allocation10 + $0xc0] sm:$0xff] %v1741_v60  ;;  %1957 = vmatmul.bf16.gmra.mxu2 %v3407_v22 }
 0x1e8   :  { %2046 = vmatmul.bf16.gmra.mxu3 %v3407_v22  ;;  %2097 = vst [vmem:[#allocation10 + $0xc8] sm:$0xff] %v1830_v16 }
 0x1ea   :  { %v1918_v61 = vpop.f32.mrf.mxu2  ;;  %v1742_v52 = vpop.f32.mrf.mxu0 }
 0x1eb   :  { %v2007_v63 = vpop.f32.mrf.mxu3  ;;  %v1919_v2 = vadd.f32 %v1918_v61, %v3494_v44  ;;  %v1831_v25 = vpop.f32.mrf.mxu1  ;;  %v1743_v7 = vadd.f32 %v1742_v52, %v3464_v58 }
 0x1ec   :  { %v2008_v53 = vadd.f32 %v2007_v63, %v3496_v15  ;;  %v1832_v1 = vadd.f32 %v1831_v25, %v3466_v59 }
 0x1ed   :  { %2098 = vst [vmem:[#allocation10 + $0xd0] sm:$0xff] %v1919_v2 }
 0x1ee   :  { %2099 = vst [vmem:[#allocation10 + $0xd8] sm:$0xff] %v2008_v53 }
 0x1ef   :  { %2100 = vst [vmem:[#allocation10 + $0xe0] sm:$0xff] %v1743_v7 }
 0x1f0   :  { %2101 = vst [vmem:[#allocation10 + $0xe8] sm:$0xff] %v1832_v1 }
 0x1f2   :  { %v1920_v3 = vpop.f32.mrf.mxu2  ;;  %v1745_v9 = vpop.f32.mrf.mxu0 }
 0x1f3   :  { %v2009_v32 = vpop.f32.mrf.mxu3  ;;  %v1921_v22 = vadd.f32 %v1920_v3, %v3494_v44  ;;  %v1834_v29 = vpop.f32.mrf.mxu1  ;;  %v1746_v19 = vadd.f32 %v1745_v9, %v3464_v58 }
 0x1f4   :  { %v2010_v4 = vadd.f32 %v2009_v32, %v3496_v15  ;;  %v1835_v5 = vadd.f32 %v1834_v29, %v3466_v59 }
 0x1f5   :  { %2102 = vst [vmem:[#allocation10 + $0xf0] sm:$0xff] %v1921_v22  ;;  %1784 = vmatmul.bf16.gmra.mxu0 %v3444_v17 }
 0x1f6   :  { %2103 = vst [vmem:[#allocation10 + $0xf8] sm:$0xff] %v2010_v4  ;;  %1873 = vmatmul.bf16.gmra.mxu1 %v3444_v17 }
 0x1f7   :  { %2104 = vst [vmem:[#allocation10 + $0x100] sm:$0xff] %v1746_v19  ;;  %1962 = vmatmul.bf16.gmra.mxu2 %v3444_v17 }
 0x1f8   :  { %2051 = vmatmul.bf16.gmra.mxu3 %v3444_v17  ;;  %2105 = vst [vmem:[#allocation10 + $0x108] sm:$0xff] %v1835_v5 }
 0x1fa   :  { %v1923_v6 = vpop.f32.mrf.mxu2  ;;  %v1747_v12 = vpop.f32.mrf.mxu0 }
 0x1fb   :  { %v2012_v10 = vpop.f32.mrf.mxu3  ;;  %v1924_v8 = vadd.f32 %v1923_v6, %v3494_v44  ;;  %v1836_v33 = vpop.f32.mrf.mxu1  ;;  %v1748_v18 = vadd.f32 %v1747_v12, %v3464_v58 }
 0x1fc   :  { %v2013_v0 = vadd.f32 %v2012_v10, %v3496_v15  ;;  %v1837_v20 = vadd.f32 %v1836_v33, %v3466_v59 }
 0x1fd   :  { %2106 = vst [vmem:[#allocation10 + $0x110] sm:$0xff] %v1924_v8 }
 0x1fe   :  { %2107 = vst [vmem:[#allocation10 + $0x118] sm:$0xff] %v2013_v0 }
 0x1ff   :  { %2108 = vst [vmem:[#allocation10 + $0x120] sm:$0xff] %v1748_v18 }
 0x200   :  { %2109 = vst [vmem:[#allocation10 + $0x128] sm:$0xff] %v1837_v20 }
 0x202   :  { %v1925_v24 = vpop.f32.mrf.mxu2  ;;  %v1750_v30 = vpop.f32.mrf.mxu0 }
 0x203   :  { %v2014_v26 = vpop.f32.mrf.mxu3  ;;  %v1926_v17 = vadd.f32 %v1925_v24, %v3494_v44  ;;  %v1839_v34 = vpop.f32.mrf.mxu1  ;;  %v1751_v35 = vadd.f32 %v1750_v30, %v3464_v58 }
 0x204   :  { %v2015_v27 = vadd.f32 %v2014_v26, %v3496_v15  ;;  %v1840_v13 = vadd.f32 %v1839_v34, %v3466_v59 }
 0x205   :  { %2110 = vst [vmem:[#allocation10 + $0x130] sm:$0xff] %v1926_v17  ;;  %1789 = vmatmul.bf16.gmra.mxu0 %v3486_v11 }
 0x206   :  { %2111 = vst [vmem:[#allocation10 + $0x138] sm:$0xff] %v2015_v27  ;;  %1878 = vmatmul.bf16.gmra.mxu1 %v3486_v11 }
 0x207   :  { %2112 = vst [vmem:[#allocation10 + $0x140] sm:$0xff] %v1751_v35  ;;  %1967 = vmatmul.bf16.gmra.mxu2 %v3486_v11 }
 0x208   :  { %2056 = vmatmul.bf16.gmra.mxu3 %v3486_v11  ;;  %2113 = vst [vmem:[#allocation10 + $0x148] sm:$0xff] %v1840_v13 }
 0x20a   :  { %v1928_v14 = vpop.f32.mrf.mxu2  ;;  %v1752_v41 = vpop.f32.mrf.mxu0 }
 0x20b   :  { %v2017_v37 = vpop.f32.mrf.mxu3  ;;  %v1929_v28 = vadd.f32 %v1928_v14, %v3494_v44  ;;  %v1841_v42 = vpop.f32.mrf.mxu1  ;;  %v1753_v54 = vadd.f32 %v1752_v41, %v3464_v58 }
 0x20c   :  { %v2018_v21 = vadd.f32 %v2017_v37, %v3496_v15  ;;  %v1842_v46 = vadd.f32 %v1841_v42, %v3466_v59 }
 0x20d   :  { %2114 = vst [vmem:[#allocation10 + $0x150] sm:$0xff] %v1929_v28 }
 0x20e   :  { %2115 = vst [vmem:[#allocation10 + $0x158] sm:$0xff] %v2018_v21 }
 0x20f   :  { %2116 = vst [vmem:[#allocation10 + $0x160] sm:$0xff] %v1753_v54 }
 0x210   :  { %2117 = vst [vmem:[#allocation10 + $0x168] sm:$0xff] %v1842_v46 }
 0x212   :  { %v1930_v47 = vpop.f32.mrf.mxu2  ;;  %v1755_v48 = vpop.f32.mrf.mxu0 }
 0x213   :  { %v2019_v36 = vpop.f32.mrf.mxu3  ;;  %v1931_v11 = vadd.f32 %v1930_v47, %v3494_v44  ;;  %v1844_v49 = vpop.f32.mrf.mxu1  ;;  %v1756_v39 = vadd.f32 %v1755_v48, %v3464_v58 }
 0x214   :  { %v2020_v31 = vadd.f32 %v2019_v36, %v3496_v15  ;;  %v1845_v40 = vadd.f32 %v1844_v49, %v3466_v59 }
 0x215   :  { %2118 = vst [vmem:[#allocation10 + $0x170] sm:$0xff] %v1931_v11  ;;  %1794 = vmatmul.bf16.gmra.mxu0 %v3535_v43 }
 0x216   :  { %2119 = vst [vmem:[#allocation10 + $0x178] sm:$0xff] %v2020_v31  ;;  %1883 = vmatmul.bf16.gmra.mxu1 %v3535_v43 }
 0x217   :  { %2120 = vst [vmem:[#allocation10 + $0x180] sm:$0xff] %v1756_v39  ;;  %1972 = vmatmul.bf16.gmra.mxu2 %v3535_v43 }
 0x218   :  { %2061 = vmatmul.bf16.gmra.mxu3 %v3535_v43  ;;  %2121 = vst [vmem:[#allocation10 + $0x188] sm:$0xff] %v1845_v40 }
 0x21a   :  { %v1933_v50 = vpop.f32.mrf.mxu2  ;;  %v1757_v62 = vpop.f32.mrf.mxu0 }
 0x21b   :  { %v2022_v38 = vpop.f32.mrf.mxu3  ;;  %v1934_v51 = vadd.f32 %v1933_v50, %v3494_v44  ;;  %v1846_v56 = vpop.f32.mrf.mxu1  ;;  %v1758_v57 = vadd.f32 %v1757_v62, %v3464_v58 }
 0x21c   :  { %v2023_v55 = vadd.f32 %v2022_v38, %v3496_v15  ;;  %v1847_v23 = vadd.f32 %v1846_v56, %v3466_v59 }
 0x21d   :  { %2122 = vst [vmem:[#allocation10 + $0x190] sm:$0xff] %v1934_v51 }
 0x21e   :  { %2123 = vst [vmem:[#allocation10 + $0x198] sm:$0xff] %v2023_v55 }
 0x21f   :  { %2124 = vst [vmem:[#allocation10 + $0x1a0] sm:$0xff] %v1758_v57 }
 0x220   :  { %2125 = vst [vmem:[#allocation10 + $0x1a8] sm:$0xff] %v1847_v23 }
 0x222   :  { %v1935_v60 = vpop.f32.mrf.mxu2  ;;  %v1760_v63 = vpop.f32.mrf.mxu0 }
 0x223   :  { %v2024_v16 = vpop.f32.mrf.mxu3  ;;  %v1936_v43 = vadd.f32 %v1935_v60, %v3494_v44  ;;  %v1849_v2 = vpop.f32.mrf.mxu1  ;;  %v1761_v53 = vadd.f32 %v1760_v63, %v3464_v58 }
 0x224   :  { %v2025_v61 = vadd.f32 %v2024_v16, %v3496_v15  ;;  %v1850_v52 = vadd.f32 %v1849_v2, %v3466_v59 }
 0x225   :  { %2126 = vst [vmem:[#allocation10 + $0x1b0] sm:$0xff] %v1936_v43  ;;  %1799 = vmatmul.bf16.gmra.mxu0 %v3564_v45 }
 0x226   :  { %2127 = vst [vmem:[#allocation10 + $0x1b8] sm:$0xff] %v2025_v61  ;;  %1888 = vmatmul.bf16.gmra.mxu1 %v3564_v45 }
 0x227   :  { %2128 = vst [vmem:[#allocation10 + $0x1c0] sm:$0xff] %v1761_v53  ;;  %1977 = vmatmul.bf16.gmra.mxu2 %v3564_v45 }
 0x228   :  { %2066 = vmatmul.bf16.gmra.mxu3 %v3564_v45  ;;  %2129 = vst [vmem:[#allocation10 + $0x1c8] sm:$0xff] %v1850_v52 }
 0x22a   :  { %v1938_v25 = vpop.f32.mrf.mxu2  ;;  %v1762_v32 = vpop.f32.mrf.mxu0 }
 0x22b   :  { %v2027_v7 = vpop.f32.mrf.mxu3  ;;  %v1939_v1 = vadd.f32 %v1938_v25, %v3494_v44  ;;  %v1851_v22 = vpop.f32.mrf.mxu1  ;;  %v1763_v4 = vadd.f32 %v1762_v32, %v3464_v58 }
 0x22c   :  { %v2028_v3 = vadd.f32 %v2027_v7, %v3496_v15  ;;  %v1852_v9 = vadd.f32 %v1851_v22, %v3466_v59 }
 0x22d   :  { %2130 = vst [vmem:[#allocation10 + $0x1d0] sm:$0xff] %v1939_v1 }
 0x22e   :  { %2131 = vst [vmem:[#allocation10 + $0x1d8] sm:$0xff] %v2028_v3 }
 0x22f   :  { %2132 = vst [vmem:[#allocation10 + $0x1e0] sm:$0xff] %v1763_v4 }
 0x230   :  { %2133 = vst [vmem:[#allocation10 + $0x1e8] sm:$0xff] %v1852_v9 }
 0x232   :  { %v1940_v29 = vpop.f32.mrf.mxu2  ;;  %v1765_v6 = vpop.f32.mrf.mxu0 }
 0x233   :  { %v2029_v19 = vpop.f32.mrf.mxu3  ;;  %v1941_v45 = vadd.f32 %v1940_v29, %v3494_v44  ;;  %v1854_v10 = vpop.f32.mrf.mxu1  ;;  %v1766_v8 = vadd.f32 %v1765_v6, %v3464_v58 }
 0x234   :  { %v2030_v5 = vadd.f32 %v2029_v19, %v3496_v15  ;;  %v1855_v0 = vadd.f32 %v1854_v10, %v3466_v59 }
 0x235   :  { %2134 = vst [vmem:[#allocation10 + $0x1f0] sm:$0xff] %v1941_v45 }
 0x236   :  { %2135 = vst [vmem:[#allocation10 + $0x1f8] sm:$0xff] %v2030_v5 }
 0x237   :  { %2136 = vst [vmem:[#allocation10 + $0x200] sm:$0xff] %v1766_v8 }
 0x238   :  { %2137 = vst [vmem:[#allocation10 + $0x208] sm:$0xff] %v1855_v0 }
 0x23a   :  { %v1943_v12 = vpop.f32.mrf.mxu2  ;;  %v1767_v24 = vpop.f32.mrf.mxu0 }
 0x23b   :  { %v2032_v33 = vpop.f32.mrf.mxu3  ;;  %v1944_v18 = vadd.f32 %v1943_v12, %v3494_v44  ;;  %v1856_v26 = vpop.f32.mrf.mxu1  ;;  %v1768_v17 = vadd.f32 %v1767_v24, %v3464_v58 }
 0x23c   :  { %v2033_v20 = vadd.f32 %v2032_v33, %v3496_v15  ;;  %v1857_v27 = vadd.f32 %v1856_v26, %v3466_v59 }
 0x23d   :  { %2138 = vst [vmem:[#allocation10 + $0x210] sm:$0xff] %v1944_v18 }
 0x23e   :  { %2139 = vst [vmem:[#allocation10 + $0x218] sm:$0xff] %v2033_v20 }
 0x23f   :  { %2140 = vst [vmem:[#allocation10 + $0x220] sm:$0xff] %v1768_v17 }
 0x240   :  { %2141 = vst [vmem:[#allocation10 + $0x228] sm:$0xff] %v1857_v27 }
 0x242   :  { %v1945_v30 = vpop.f32.mrf.mxu2  ;;  %v1770_v14 = vpop.f32.mrf.mxu0 }
 0x243   :  { %v2034_v34 = vpop.f32.mrf.mxu3  ;;  %v1946_v35 = vadd.f32 %v1945_v30, %v3494_v44  ;;  %v1859_v37 = vpop.f32.mrf.mxu1  ;;  %v1771_v28 = vadd.f32 %v1770_v14, %v3464_v58 }
 0x244   :  { %v2035_v13 = vadd.f32 %v2034_v34, %v3496_v15  ;;  %v1860_v21 = vadd.f32 %v1859_v37, %v3466_v59 }
 0x245   :  { %2142 = vst [vmem:[#allocation10 + $0x230] sm:$0xff] %v1946_v35 }
 0x246   :  { %2143 = vst [vmem:[#allocation10 + $0x238] sm:$0xff] %v2035_v13 }
 0x247   :  { %2144 = vst [vmem:[#allocation10 + $0x240] sm:$0xff] %v1771_v28 }
 0x248   :  { %2145 = vst [vmem:[#allocation10 + $0x248] sm:$0xff] %v1860_v21 }
 0x24a   :  { %v1948_v41 = vpop.f32.mrf.mxu2  ;;  %v1772_v47 = vpop.f32.mrf.mxu0 }
 0x24b   :  { %v2037_v42 = vpop.f32.mrf.mxu3  ;;  %v1949_v54 = vadd.f32 %v1948_v41, %v3494_v44  ;;  %v1861_v36 = vpop.f32.mrf.mxu1  ;;  %v1773_v11 = vadd.f32 %v1772_v47, %v3464_v58 }
 0x24c   :  { %v2038_v46 = vadd.f32 %v2037_v42, %v3496_v15  ;;  %v1862_v31 = vadd.f32 %v1861_v36, %v3466_v59 }
 0x24d   :  { %2146 = vst [vmem:[#allocation10 + $0x250] sm:$0xff] %v1949_v54 }
 0x24e   :  { %2147 = vst [vmem:[#allocation10 + $0x258] sm:$0xff] %v2038_v46 }
 0x24f   :  { %2148 = vst [vmem:[#allocation10 + $0x260] sm:$0xff] %v1773_v11 }
 0x250   :  { %2149 = vst [vmem:[#allocation10 + $0x268] sm:$0xff] %v1862_v31 }
 0x252   :  { %v1950_v48 = vpop.f32.mrf.mxu2  ;;  %v1775_v50 = vpop.f32.mrf.mxu0 }
 0x253   :  { %v2039_v49 = vpop.f32.mrf.mxu3  ;;  %v1951_v39 = vadd.f32 %v1950_v48, %v3494_v44  ;;  %v1864_v38 = vpop.f32.mrf.mxu1  ;;  %v1776_v51 = vadd.f32 %v1775_v50, %v3464_v58 }
 0x254   :  { %v2040_v40 = vadd.f32 %v2039_v49, %v3496_v15  ;;  %v1865_v55 = vadd.f32 %v1864_v38, %v3466_v59 }
 0x255   :  { %2150 = vst [vmem:[#allocation10 + $0x270] sm:$0xff] %v1951_v39 }
 0x256   :  { %2151 = vst [vmem:[#allocation10 + $0x278] sm:$0xff] %v2040_v40 }
 0x257   :  { %2152 = vst [vmem:[#allocation10 + $0x280] sm:$0xff] %v1776_v51 }
 0x258   :  { %2153 = vst [vmem:[#allocation10 + $0x288] sm:$0xff] %v1865_v55 }
 0x25a   :  { %v1953_v62 = vpop.f32.mrf.mxu2  ;;  %v1777_v60 = vpop.f32.mrf.mxu0 }
 0x25b   :  { %v2042_v56 = vpop.f32.mrf.mxu3  ;;  %v1954_v57 = vadd.f32 %v1953_v62, %v3494_v44  ;;  %v1866_v16 = vpop.f32.mrf.mxu1  ;;  %v1778_v43 = vadd.f32 %v1777_v60, %v3464_v58 }
 0x25c   :  { %v2043_v23 = vadd.f32 %v2042_v56, %v3496_v15  ;;  %v1867_v61 = vadd.f32 %v1866_v16, %v3466_v59 }
 0x25d   :  { %2154 = vst [vmem:[#allocation10 + $0x290] sm:$0xff] %v1954_v57 }
 0x25e   :  { %2155 = vst [vmem:[#allocation10 + $0x298] sm:$0xff] %v2043_v23 }
 0x25f   :  { %2156 = vst [vmem:[#allocation10 + $0x2a0] sm:$0xff] %v1778_v43 }
 0x260   :  { %2157 = vst [vmem:[#allocation10 + $0x2a8] sm:$0xff] %v1867_v61 }
 0x262   :  { %v1955_v63 = vpop.f32.mrf.mxu2  ;;  %v1780_v25 = vpop.f32.mrf.mxu0 }
 0x263   :  { %v2044_v2 = vpop.f32.mrf.mxu3  ;;  %v1956_v53 = vadd.f32 %v1955_v63, %v3494_v44  ;;  %v1869_v7 = vpop.f32.mrf.mxu1  ;;  %v1781_v1 = vadd.f32 %v1780_v25, %v3464_v58 }
 0x264   :  { %v2045_v52 = vadd.f32 %v2044_v2, %v3496_v15  ;;  %v1870_v3 = vadd.f32 %v1869_v7, %v3466_v59 }
 0x265   :  { %2158 = vst [vmem:[#allocation10 + $0x2b0] sm:$0xff] %v1956_v53 }
 0x266   :  { %2159 = vst [vmem:[#allocation10 + $0x2b8] sm:$0xff] %v2045_v52 }
 0x267   :  { %2160 = vst [vmem:[#allocation10 + $0x2c0] sm:$0xff] %v1781_v1 }
 0x268   :  { %2161 = vst [vmem:[#allocation10 + $0x2c8] sm:$0xff] %v1870_v3 }
 0x26a   :  { %v1958_v32 = vpop.f32.mrf.mxu2  ;;  %v1782_v29 = vpop.f32.mrf.mxu0 }
 0x26b   :  { %v2047_v22 = vpop.f32.mrf.mxu3  ;;  %v1959_v4 = vadd.f32 %v1958_v32, %v3494_v44  ;;  %v1871_v19 = vpop.f32.mrf.mxu1  ;;  %v1783_v45 = vadd.f32 %v1782_v29, %v3464_v58 }
 0x26c   :  { %v2048_v9 = vadd.f32 %v2047_v22, %v3496_v15  ;;  %v1872_v5 = vadd.f32 %v1871_v19, %v3466_v59 }
 0x26d   :  { %2162 = vst [vmem:[#allocation10 + $0x2d0] sm:$0xff] %v1959_v4 }
 0x26e   :  { %2163 = vst [vmem:[#allocation10 + $0x2d8] sm:$0xff] %v2048_v9 }
 0x26f   :  { %2164 = vst [vmem:[#allocation10 + $0x2e0] sm:$0xff] %v1783_v45 }
 0x270   :  { %2165 = vst [vmem:[#allocation10 + $0x2e8] sm:$0xff] %v1872_v5 }
 0x272   :  { %v1960_v6 = vpop.f32.mrf.mxu2  ;;  %v1785_v12 = vpop.f32.mrf.mxu0 }
 0x273   :  { %v2049_v10 = vpop.f32.mrf.mxu3  ;;  %v1961_v8 = vadd.f32 %v1960_v6, %v3494_v44  ;;  %v1874_v33 = vpop.f32.mrf.mxu1  ;;  %v1786_v18 = vadd.f32 %v1785_v12, %v3464_v58 }
 0x274   :  { %v2050_v0 = vadd.f32 %v2049_v10, %v3496_v15  ;;  %v1875_v20 = vadd.f32 %v1874_v33, %v3466_v59 }
 0x275   :  { %2166 = vst [vmem:[#allocation10 + $0x2f0] sm:$0xff] %v1961_v8 }
 0x276   :  { %2167 = vst [vmem:[#allocation10 + $0x2f8] sm:$0xff] %v2050_v0 }
 0x277   :  { %2168 = vst [vmem:[#allocation10 + $0x300] sm:$0xff] %v1786_v18 }
 0x278   :  { %2169 = vst [vmem:[#allocation10 + $0x308] sm:$0xff] %v1875_v20 }
 0x27a   :  { %v1963_v24 = vpop.f32.mrf.mxu2  ;;  %v1787_v30 = vpop.f32.mrf.mxu0 }
 0x27b   :  { %v2052_v26 = vpop.f32.mrf.mxu3  ;;  %v1964_v17 = vadd.f32 %v1963_v24, %v3494_v44  ;;  %v1876_v34 = vpop.f32.mrf.mxu1  ;;  %v1788_v35 = vadd.f32 %v1787_v30, %v3464_v58 }
 0x27c   :  { %v2053_v27 = vadd.f32 %v2052_v26, %v3496_v15  ;;  %v1877_v13 = vadd.f32 %v1876_v34, %v3466_v59 }
 0x27d   :  { %2170 = vst [vmem:[#allocation10 + $0x310] sm:$0xff] %v1964_v17 }
 0x27e   :  { %2171 = vst [vmem:[#allocation10 + $0x318] sm:$0xff] %v2053_v27 }
 0x27f   :  { %2172 = vst [vmem:[#allocation10 + $0x320] sm:$0xff] %v1788_v35 }
 0x280   :  { %2173 = vst [vmem:[#allocation10 + $0x328] sm:$0xff] %v1877_v13 }
 0x282   :  { %v1965_v14 = vpop.f32.mrf.mxu2  ;;  %v1790_v41 = vpop.f32.mrf.mxu0 }
 0x283   :  { %v2054_v37 = vpop.f32.mrf.mxu3  ;;  %v1966_v28 = vadd.f32 %v1965_v14, %v3494_v44  ;;  %v1879_v42 = vpop.f32.mrf.mxu1  ;;  %v1791_v54 = vadd.f32 %v1790_v41, %v3464_v58 }
 0x284   :  { %v2055_v21 = vadd.f32 %v2054_v37, %v3496_v15  ;;  %v1880_v46 = vadd.f32 %v1879_v42, %v3466_v59 }
 0x285   :  { %2174 = vst [vmem:[#allocation10 + $0x330] sm:$0xff] %v1966_v28 }
 0x286   :  { %2175 = vst [vmem:[#allocation10 + $0x338] sm:$0xff] %v2055_v21 }
 0x287   :  { %2176 = vst [vmem:[#allocation10 + $0x340] sm:$0xff] %v1791_v54 }
 0x288   :  { %2177 = vst [vmem:[#allocation10 + $0x348] sm:$0xff] %v1880_v46 }
 0x28a   :  { %v1968_v47 = vpop.f32.mrf.mxu2  ;;  %v1792_v48 = vpop.f32.mrf.mxu0 }
 0x28b   :  { %v2057_v36 = vpop.f32.mrf.mxu3  ;;  %v1969_v11 = vadd.f32 %v1968_v47, %v3494_v44  ;;  %v1881_v49 = vpop.f32.mrf.mxu1  ;;  %v1793_v39 = vadd.f32 %v1792_v48, %v3464_v58 }
 0x28c   :  { %v2058_v31 = vadd.f32 %v2057_v36, %v3496_v15  ;;  %v1882_v40 = vadd.f32 %v1881_v49, %v3466_v59 }
 0x28d   :  { %2178 = vst [vmem:[#allocation10 + $0x350] sm:$0xff] %v1969_v11 }
 0x28e   :  { %2179 = vst [vmem:[#allocation10 + $0x358] sm:$0xff] %v2058_v31 }
 0x28f   :  { %2180 = vst [vmem:[#allocation10 + $0x360] sm:$0xff] %v1793_v39 }
 0x290   :  { %2181 = vst [vmem:[#allocation10 + $0x368] sm:$0xff] %v1882_v40 }
 0x292   :  { %v1970_v50 = vpop.f32.mrf.mxu2  ;;  %v1795_v62 = vpop.f32.mrf.mxu0 }
 0x293   :  { %v2059_v38 = vpop.f32.mrf.mxu3  ;;  %v1971_v51 = vadd.f32 %v1970_v50, %v3494_v44  ;;  %v1884_v56 = vpop.f32.mrf.mxu1  ;;  %v1796_v57 = vadd.f32 %v1795_v62, %v3464_v58 }
 0x294   :  { %v2060_v55 = vadd.f32 %v2059_v38, %v3496_v15  ;;  %v1885_v23 = vadd.f32 %v1884_v56, %v3466_v59 }
 0x295   :  { %2182 = vst [vmem:[#allocation10 + $0x370] sm:$0xff] %v1971_v51 }
 0x296   :  { %2183 = vst [vmem:[#allocation10 + $0x378] sm:$0xff] %v2060_v55 }
 0x297   :  { %2184 = vst [vmem:[#allocation10 + $0x380] sm:$0xff] %v1796_v57 }
 0x298   :  { %2185 = vst [vmem:[#allocation10 + $0x388] sm:$0xff] %v1885_v23 }
 0x29a   :  { %v1973_v60 = vpop.f32.mrf.mxu2  ;;  %v1797_v63 = vpop.f32.mrf.mxu0 }
 0x29b   :  { %v2062_v16 = vpop.f32.mrf.mxu3  ;;  %v1974_v43 = vadd.f32 %v1973_v60, %v3494_v44  ;;  %v1886_v2 = vpop.f32.mrf.mxu1  ;;  %v1798_v53 = vadd.f32 %v1797_v63, %v3464_v58 }
 0x29c   :  { %v2063_v61 = vadd.f32 %v2062_v16, %v3496_v15  ;;  %v1887_v52 = vadd.f32 %v1886_v2, %v3466_v59 }
 0x29d   :  { %2186 = vst [vmem:[#allocation10 + $0x390] sm:$0xff] %v1974_v43 }
 0x29e   :  { %2187 = vst [vmem:[#allocation10 + $0x398] sm:$0xff] %v2063_v61 }
 0x29f   :  { %2188 = vst [vmem:[#allocation10 + $0x3a0] sm:$0xff] %v1798_v53 }
 0x2a0   :  { %2189 = vst [vmem:[#allocation10 + $0x3a8] sm:$0xff] %v1887_v52 }
 0x2a2   :  { %v1975_v25 = vpop.f32.mrf.mxu2  ;;  %v1800_v32 = vpop.f32.mrf.mxu0 }
 0x2a3   :  { %v2064_v7 = vpop.f32.mrf.mxu3  ;;  %v1976_v1 = vadd.f32 %v1975_v25, %v3494_v44  ;;  %v1889_v22 = vpop.f32.mrf.mxu1  ;;  %v1801_v4 = vadd.f32 %v1800_v32, %v3464_v58 }
 0x2a4   :  { %v2065_v3 = vadd.f32 %v2064_v7, %v3496_v15  ;;  %v1890_v9 = vadd.f32 %v1889_v22, %v3466_v59 }
 0x2a5   :  { %2190 = vst [vmem:[#allocation10 + $0x3b0] sm:$0xff] %v1976_v1 }
 0x2a6   :  { %2191 = vst [vmem:[#allocation10 + $0x3b8] sm:$0xff] %v2065_v3 }
 0x2a7   :  { %2192 = vst [vmem:[#allocation10 + $0x3c0] sm:$0xff] %v1801_v4 }
 0x2a8   :  { %2193 = vst [vmem:[#allocation10 + $0x3c8] sm:$0xff] %v1890_v9 }
 0x2aa   :  { %v1978_v29 = vpop.f32.mrf.mxu2  ;;  %v1802_v6 = vpop.f32.mrf.mxu0 }
 0x2ab   :  { %v2067_v19 = vpop.f32.mrf.mxu3  ;;  %v1979_v45 = vadd.f32 %v1978_v29, %v3494_v44  ;;  %v1891_v10 = vpop.f32.mrf.mxu1  ;;  %v1803_v8 = vadd.f32 %v1802_v6, %v3464_v58 }
 0x2ac   :  { %v2068_v5 = vadd.f32 %v2067_v19, %v3496_v15  ;;  %v1892_v0 = vadd.f32 %v1891_v10, %v3466_v59 }
 0x2ad   :  { %2194 = vst [vmem:[#allocation10 + $0x3d0] sm:$0xff] %v1979_v45 }
 0x2ae   :  { %2195 = vst [vmem:[#allocation10 + $0x3d8] sm:$0xff] %v2068_v5 }
 0x2af   :  { %2196 = vst [vmem:[#allocation10 + $0x3e0] sm:$0xff] %v1803_v8 }
 0x2b0   :  { %2197 = vst [vmem:[#allocation10 + $0x3e8] sm:$0xff] %v1892_v0 }
 0x2b2   :  { %v1980_v12 = vpop.f32.mrf.mxu2 }
 0x2b3   :  { %v2069_v33 = vpop.f32.mrf.mxu3  ;;  %v1981_v18 = vadd.f32 %v1980_v12, %v3494_v44 }
 0x2b4   :  { %v2070_v20 = vadd.f32 %v2069_v33, %v3496_v15 }
 0x2b5   :  { %2198 = vst [vmem:[#allocation10 + $0x3f0] sm:$0xff] %v1981_v18 }
 0x2b6   :  { %2199 = vst [vmem:[#allocation10 + $0x3f8] sm:$0xff] %v2070_v20 }
 0x2b7   :  { %2212 = dma.vmem_to_hbm [thread:$0]  %s2205_s19, 16384, %s2207_s22, [#allocation4], %s2846_s30, %s2846_s30, %s2847_s6  }
 0x2b8   :  { %2840 = dma.done.wait [#allocation4], 16384  }
 0x2b9   :  { %2841 = vsyncadd [#allocation4], 4294950912 }
 0x2ba   :  { %2217 = vsyncpa [#allocation3], 1 }
 0x2bb   :  { %2218 = vsyncpa [#allocation6], 1 }
 0x2bc   :  { %2219 = vsyncpa [#allocation9], 1 }
 0x2bd   :  { %2220 = vsyncpa [#allocation4], 1 }

// kernel: tpu_custom_call.1
= control target key start
LH: loop header
LB: loop body
LE: loop exit
PB: predicated region body
PF: predicated region fallthrough
CT: control target
= control target key end

     0   :  { %10 = vsyncpa [#allocation3], 0  ;;  %s3708_s0 = inlined_call_operand.hbm [shape: f32[256,512], index: 0, kind: input, shape index: {}]   ;;  %s3709_s1 = inlined_call_operand.hbm [shape: bf16[512,128], index: 1, kind: input, shape index: {}]   ;;  %s3710_s2 = inlined_call_operand.vmem [shape: f32[1,128], index: 2, kind: input, shape index: {}]   ;;  %s3711_s3 = inlined_call_operand.hbm [shape: bf16[128,512], index: 3, kind: input, shape index: {}]   ;;  %s3712_s4 = inlined_call_operand.hbm [shape: f32[1,512], index: 4, kind: input, shape index: {}]   ;;  %s3713_s5 = inlined_call_operand.hbm [shape: f32[256,512], index: 5, kind: output, shape index: {}]  }
   0x1   :  { %11 = vsyncpa [#allocation6], 0 }
   0x2   :  { %12 = vsyncpa [#allocation9], 0  ;;  %s31_s20 = sshll.u32 %s3709_s1, 4  ;;  %s32_s20 = int_to_ptr.hbm [resolvable:$true] %s31_s20 }
   0x3   :  { %13 = vsyncpa [#allocation4], 0  ;;  %s2842_s21 = smov [#allocation5]   ;;  %s18_s25 = sshll.u32 %s3708_s0, 4  ;;  %s19_s25 = int_to_ptr.hbm [resolvable:$true] %s18_s25 }
   0x4   :  { %s33_s22 = sshll.u32 %s2842_s21, 4  ;;  %s2843_s26 = smov 64   ;;  %s34_s22 = int_to_ptr.vmem [resolvable:$true] %s33_s22 }
   0x5   :  { %s2844_s27 = smov 4   ;;  %s2845_s28 = smov [#allocation2]  }
   0x6   :  { %39 = dma.hbm_to_vmem [thread:$0]  %s32_s20, 4096, %s34_s22, [#allocation6], %s2843_s26, %s2843_s26, %s2844_s27  }
   0x7   :  { %s20_s29 = sshll.u32 %s2845_s28, 4  ;;  %s2846_s30 = smov 512   ;;  %s21_s29 = int_to_ptr.vmem [resolvable:$true] %s20_s29 }
   0x8   :  { %s2847_s6 = smov 32   ;;  %s46_s8 = sshll.u32 %s3711_s3, 4  ;;  %s47_s8 = int_to_ptr.hbm [resolvable:$true] %s46_s8 }
   0x9   :  { %26 = dma.hbm_to_vmem [thread:$0]  %s19_s25, 16384, %s21_s29, [#allocation3], %s2846_s30, %s2846_s30, %s2847_s6  }
   0xa   :  { %s2848_s9 = smov [#allocation7]   ;;  %s60_s12 = sshll.u32 %s3712_s4, 4  ;;  %s61_s12 = int_to_ptr.hbm [resolvable:$true] %s60_s12 }
   0xb   :  { %s48_s0 = sshll.u32 %s2848_s9, 4  ;;  %s2849_s13 = smov 256   ;;  %s49_s0 = int_to_ptr.vmem [resolvable:$true] %s48_s0 }
   0xc   :  { %s2850_s14 = smov 16   ;;  %s2851_s15 = smov [#allocation8]  }
   0xd   :  { %54 = dma.hbm_to_vmem [thread:$0]  %s47_s8, 4096, %s49_s0, [#allocation6], %s2849_s13, %s2849_s13, %s2850_s14  }
   0xe   :  { %s62_s16 = sshll.u32 %s2851_s15, 4  ;;  %s63_s16 = int_to_ptr.vmem [resolvable:$true] %s62_s16 }
   0xf   :  { %65 = dma.hbm_to_vmem [thread:$0]  %s61_s12, 64, %s63_s16, [#allocation9]  }
  0x10   :  { %2834 = dma.done.wait [#allocation3], 16384  }
  0x11   :  { %2835 = vsyncadd [#allocation3], 4294950912 }
  0x12   :  { %2836 = dma.done.wait [#allocation6], 8192  }
  0x13   :  { %2837 = vsyncadd [#allocation6], 4294959104 }
  0x14   :  { %2838 = dma.done.wait [#allocation9], 64  }
  0x15   :  { %2839 = vsyncadd [#allocation9], 4294967232  ;;  %v2516_v0 = vld [vmem:[#allocation5 + $0x38] sm:$0xff]  ;;  %v2515_v4 = vld [vmem:[#allocation5 + $0x30] sm:$0xff]  ;;  %s2206_s22 = sshll.u32 %s3713_s5, 4  ;;  %s2207_s22 = int_to_ptr.hbm [resolvable:$true] %s2206_s22 }
  0x16   :  { %v2524_v1 = vld [vmem:[#allocation5 + $0x78] sm:$0xff]  ;;  %534 = vmatpush.bf16.msra.mxu0 %v2516_v0  ;;  %v2523_v5 = vld [vmem:[#allocation5 + $0x70] sm:$0xff]  ;;  %v2514_v8 = vld [vmem:[#allocation5 + $0x28] sm:$0xff] }
  0x17   :  { %v2532_v2 = vld [vmem:[#allocation5 + $0xb8] sm:$0xff]  ;;  %623 = vmatpush.bf16.msra.mxu1 %v2524_v1  ;;  %v2531_v6 = vld [vmem:[#allocation5 + $0xb0] sm:$0xff]  ;;  %v2522_v9 = vld [vmem:[#allocation5 + $0x68] sm:$0xff] }
  0x18   :  { %v2540_v3 = vld [vmem:[#allocation5 + $0xf8] sm:$0xff]  ;;  %712 = vmatpush.bf16.msra.mxu2 %v2532_v2  ;;  %v2539_v7 = vld [vmem:[#allocation5 + $0xf0] sm:$0xff]  ;;  %v2530_v10 = vld [vmem:[#allocation5 + $0xa8] sm:$0xff] }
  0x19   :  { %801 = vmatpush.bf16.msra.mxu3 %v2540_v3  ;;  %v2538_v11 = vld [vmem:[#allocation5 + $0xe8] sm:$0xff]  ;;  %v2513_v12 = vld [vmem:[#allocation5 + $0x20] sm:$0xff]  ;;  %v2512_v16 = vld [vmem:[#allocation5 + $0x18] sm:$0xff] }
  0x1a   :  { %535 = vmatpush.bf16.msra.mxu0 %v2515_v4  ;;  %v2521_v13 = vld [vmem:[#allocation5 + $0x60] sm:$0xff]  ;;  %v2520_v17 = vld [vmem:[#allocation5 + $0x58] sm:$0xff]  ;;  %v2511_v20 = vld [vmem:[#allocation5 + $0x10] sm:$0xff] }
  0x1b   :  { %624 = vmatpush.bf16.msra.mxu1 %v2523_v5  ;;  %v2529_v14 = vld [vmem:[#allocation5 + $0xa0] sm:$0xff]  ;;  %v2528_v18 = vld [vmem:[#allocation5 + $0x98] sm:$0xff]  ;;  %v2519_v21 = vld [vmem:[#allocation5 + $0x50] sm:$0xff] }
  0x1c   :  { %713 = vmatpush.bf16.msra.mxu2 %v2531_v6  ;;  %v2537_v15 = vld [vmem:[#allocation5 + $0xe0] sm:$0xff]  ;;  %v2536_v19 = vld [vmem:[#allocation5 + $0xd8] sm:$0xff]  ;;  %v2527_v22 = vld [vmem:[#allocation5 + $0x90] sm:$0xff] }
  0x1d   :  { %802 = vmatpush.bf16.msra.mxu3 %v2539_v7  ;;  %v2535_v23 = vld [vmem:[#allocation5 + $0xd0] sm:$0xff]  ;;  %v2510_v24 = vld [vmem:[#allocation5 + $0x8] sm:$0xff]  ;;  %v2509_v28 = vld [vmem:[#allocation5] sm:$0xff] }
  0x1e   :  { %536 = vmatpush.bf16.msra.mxu0 %v2514_v8  ;;  %v2518_v25 = vld [vmem:[#allocation5 + $0x48] sm:$0xff]  ;;  %v2517_v29 = vld [vmem:[#allocation5 + $0x40] sm:$0xff]  ;;  %v2572_v36 = vld [vmem:[#allocation7 + $0xf4] sm:$0xf0] }
  0x1f   :  { %625 = vmatpush.bf16.msra.mxu1 %v2522_v9  ;;  %v2526_v26 = vld [vmem:[#allocation5 + $0x88] sm:$0xff]  ;;  %v82_v30 = vld [vmem:[#allocation2] sm:$0xff]  ;;  %v2505_v38 = vld [vmem:[#allocation7 + $0xf8] sm:$0xf0] }
  0x20   :  { %714 = vmatpush.bf16.msra.mxu2 %v2530_v10  ;;  %v2534_v27 = vld [vmem:[#allocation5 + $0xc8] sm:$0xff]  ;;  %v86_v31 = vld [vmem:[#allocation2 + $0x20] sm:$0xff]  ;;  %v84_v40 = vld [vmem:[#allocation2 + $0x10] sm:$0xff] }
  0x21   :  { %803 = vmatpush.bf16.msra.mxu3 %v2538_v11  ;;  %v83_v32 = vld [vmem:[#allocation2 + $0x8] sm:$0xff]  ;;  %v2525_v34 = vld [vmem:[#allocation5 + $0x80] sm:$0xff]  ;;  %v88_v41 = vld [vmem:[#allocation2 + $0x30] sm:$0xff]  ;;  %v210_v50 = vpack.c.bf16 %v86_v31, %v82_v30 }
  0x22   :  { %537 = vmatpush.bf16.msra.mxu0 %v2513_v12  ;;  %v2503_v33 = vld [vmem:[#allocation7 + $0xe8] sm:$0xf]  ;;  %v2533_v35 = vld [vmem:[#allocation5 + $0xc0] sm:$0xff]  ;;  %v2570_v37 = vld [vmem:[#allocation7 + $0xec] sm:$0xf]  ;;  %v212_v52 = vpack.c.bf16 %v88_v41, %v84_v40 }
  0x23   :  { %626 = vmatpush.bf16.msra.mxu1 %v2521_v13  ;;  %v87_v39 = vld [vmem:[#allocation2 + $0x28] sm:$0xff]  ;;  %v85_v42 = vld [vmem:[#allocation2 + $0x18] sm:$0xff]  ;;  %v2495_v44 = vld [vmem:[#allocation7 + $0xe0] sm:$0xf]  ;;  %v2504_v45 = vor.u32 %v2572_v36, %v2503_v33  ;;  %v2508_v46 = vor.u32 %v2570_v37, %v2505_v38 }
  0x24   :  { %715 = vmatpush.bf16.msra.mxu2 %v2529_v14  ;;  %v89_v43 = vld [vmem:[#allocation2 + $0x38] sm:$0xff]  ;;  %v2571_v47 = vld [vmem:[#allocation7 + $0xec] sm:$0xf0]  ;;  %v2569_v48 = vld [vmem:[#allocation7 + $0xe4] sm:$0xf]  ;;  %v211_v51 = vpack.c.bf16 %v87_v39, %v83_v32 }
  0x25   :  { %804 = vmatpush.bf16.msra.mxu3 %v2537_v15  ;;  %v2497_v49 = vld [vmem:[#allocation7 + $0xf0] sm:$0xf0]  ;;  %v213_v53 = vpack.c.bf16 %v89_v43, %v85_v42  ;;  %v2496_v54 = vor.u32 %v2571_v47, %v2495_v44  ;;  %v2487_v56 = vld [vmem:[#allocation7 + $0xc8] sm:$0xf]  ;;  %v2568_v57 = vld [vmem:[#allocation7 + $0xd4] sm:$0xf0] }
  0x26   :  { %538 = vmatpush.bf16.msra.mxu0 %v2512_v16  ;;  %v2500_v55 = vor.u32 %v2569_v48, %v2497_v49  ;;  %v2566_v58 = vld [vmem:[#allocation7 + $0xcc] sm:$0xf]  ;;  %v2488_v59 = vor.u32 %v2568_v57, %v2487_v56  ;;  %v2489_v60 = vld [vmem:[#allocation7 + $0xd8] sm:$0xf0]  ;;  %v2479_v61 = vld [vmem:[#allocation7 + $0xc0] sm:$0xf] }
  0x27   :  { %627 = vmatpush.bf16.msra.mxu1 %v2520_v17  ;;  %v2567_v62 = vld [vmem:[#allocation7 + $0xcc] sm:$0xf0]  ;;  %v2492_v63 = vor.u32 %v2566_v58, %v2489_v60  ;;  %v2565_v1 = vld [vmem:[#allocation7 + $0xc4] sm:$0xf]  ;;  %v2481_v2 = vld [vmem:[#allocation7 + $0xd0] sm:$0xf0] }
  0x28   :  { %716 = vmatpush.bf16.msra.mxu2 %v2528_v18  ;;  %v2480_v0 = vor.u32 %v2567_v62, %v2479_v61  ;;  %v2484_v3 = vor.u32 %v2565_v1, %v2481_v2  ;;  %v90_v4 = vld [vmem:[#allocation2 + $0x40] sm:$0xff]  ;;  %v91_v6 = vld [vmem:[#allocation2 + $0x48] sm:$0xff]  ;;  %v92_v8 = vld [vmem:[#allocation2 + $0x50] sm:$0xff] }
  0x29   :  { %805 = vmatpush.bf16.msra.mxu3 %v2536_v19  ;;  %v94_v5 = vld [vmem:[#allocation2 + $0x60] sm:$0xff]  ;;  %v95_v7 = vld [vmem:[#allocation2 + $0x68] sm:$0xff]  ;;  %v96_v9 = vld [vmem:[#allocation2 + $0x70] sm:$0xff] }
  0x2a   :  { %539 = vmatpush.bf16.msra.mxu0 %v2511_v20  ;;  %v93_v10 = vld [vmem:[#allocation2 + $0x58] sm:$0xff]  ;;  %v214_v12 = vpack.c.bf16 %v94_v5, %v90_v4  ;;  %v215_v13 = vpack.c.bf16 %v95_v7, %v91_v6  ;;  %v216_v14 = vpack.c.bf16 %v96_v9, %v92_v8  ;;  %v98_v16 = vld [vmem:[#allocation2 + $0x80] sm:$0xff]  ;;  %v99_v18 = vld [vmem:[#allocation2 + $0x88] sm:$0xff] }
  0x2b   :  { %628 = vmatpush.bf16.msra.mxu1 %v2519_v21  ;;  %v97_v11 = vld [vmem:[#allocation2 + $0x78] sm:$0xff]  ;;  %v102_v17 = vld [vmem:[#allocation2 + $0xa0] sm:$0xff]  ;;  %v103_v19 = vld [vmem:[#allocation2 + $0xa8] sm:$0xff] }
  0x2c   :  { %717 = vmatpush.bf16.msra.mxu2 %v2527_v22  ;;  %v217_v15 = vpack.c.bf16 %v97_v11, %v93_v10  ;;  %v100_v20 = vld [vmem:[#allocation2 + $0x90] sm:$0xff]  ;;  %v101_v22 = vld [vmem:[#allocation2 + $0x98] sm:$0xff]  ;;  %v2562_v30 = vld [vmem:[#allocation7 + $0xac] sm:$0xf] }
  0x2d   :  { %806 = vmatpush.bf16.msra.mxu3 %v2535_v23  ;;  %v104_v21 = vld [vmem:[#allocation2 + $0xb0] sm:$0xff]  ;;  %v105_v23 = vld [vmem:[#allocation2 + $0xb8] sm:$0xff]  ;;  %v2463_v33 = vld [vmem:[#allocation7 + $0xa0] sm:$0xf] }
  0x2e   :  { %540 = vmatpush.bf16.msra.mxu0 %v2510_v24  ;;  %v218_v24 = vpack.c.bf16 %v102_v17, %v98_v16  ;;  %v2473_v32 = vld [vmem:[#allocation7 + $0xb8] sm:$0xf0]  ;;  %v2561_v37 = vld [vmem:[#allocation7 + $0xa4] sm:$0xf]  ;;  %v2465_v38 = vld [vmem:[#allocation7 + $0xb0] sm:$0xf0] }
  0x2f   :  { %629 = vmatpush.bf16.msra.mxu1 %v2518_v25  ;;  %v219_v25 = vpack.c.bf16 %v103_v19, %v99_v18  ;;  %v2468_v39 = vor.u32 %v2561_v37, %v2465_v38  ;;  %v106_v40 = vld [vmem:[#allocation2 + $0xc0] sm:$0xff]  ;;  %v107_v42 = vld [vmem:[#allocation2 + $0xc8] sm:$0xff]  ;;  %v108_v44 = vld [vmem:[#allocation2 + $0xd0] sm:$0xff] }
  0x30   :  { %718 = vmatpush.bf16.msra.mxu2 %v2526_v26  ;;  %v220_v26 = vpack.c.bf16 %v104_v21, %v100_v20  ;;  %v110_v41 = vld [vmem:[#allocation2 + $0xe0] sm:$0xff]  ;;  %v111_v43 = vld [vmem:[#allocation2 + $0xe8] sm:$0xff]  ;;  %v113_v47 = vld [vmem:[#allocation2 + $0xf8] sm:$0xff] }
  0x31   :  { %807 = vmatpush.bf16.msra.mxu3 %v2534_v27  ;;  %v221_v27 = vpack.c.bf16 %v105_v23, %v101_v22  ;;  %v222_v48 = vpack.c.bf16 %v110_v41, %v106_v40  ;;  %v223_v49 = vpack.c.bf16 %v111_v43, %v107_v42  ;;  %v116_v56 = vld [vmem:[#allocation2 + $0x110] sm:$0xff]  ;;  %v117_v58 = vld [vmem:[#allocation2 + $0x118] sm:$0xff]  ;;  %v2558_v2 = vld [vmem:[#allocation7 + $0x8c] sm:$0xf] }
  0x32   :  { %541 = vmatpush.bf16.msra.mxu0 %v2509_v28  ;;  %v2471_v28 = vld [vmem:[#allocation7 + $0xa8] sm:$0xf]  ;;  %v120_v57 = vld [vmem:[#allocation2 + $0x130] sm:$0xff]  ;;  %v2560_v1 = vld [vmem:[#allocation7 + $0x94] sm:$0xf0] }
  0x33   :  { %630 = vmatpush.bf16.msra.mxu1 %v2517_v29  ;;  %v2564_v29 = vld [vmem:[#allocation7 + $0xb4] sm:$0xf0]  ;;  %v228_v62 = vpack.c.bf16 %v120_v57, %v116_v56  ;;  %v2457_v4 = vld [vmem:[#allocation7 + $0x98] sm:$0xf0]  ;;  %v2447_v5 = vld [vmem:[#allocation7 + $0x80] sm:$0xf] }
  0x34   :  { %719 = vmatpush.bf16.msra.mxu2 %v2525_v34  ;;  %v2472_v31 = vor.u32 %v2564_v29, %v2471_v28  ;;  %v2563_v34 = vld [vmem:[#allocation7 + $0xac] sm:$0xf0]  ;;  %v2460_v7 = vor.u32 %v2558_v2, %v2457_v4  ;;  %v2557_v9 = vld [vmem:[#allocation7 + $0x84] sm:$0xf]  ;;  %v2449_v10 = vld [vmem:[#allocation7 + $0x90] sm:$0xf0] }
  0x35   :  { %808 = vmatpush.bf16.msra.mxu3 %v2533_v35  ;;  %542 = vmatmul.bf16.vlgmr.msra.gmra.mxu0 %v210_v50  ;;  %v2476_v35 = vor.u32 %v2562_v30, %v2473_v32  ;;  %v2464_v36 = vor.u32 %v2563_v34, %v2463_v33  ;;  %v2559_v6 = vld [vmem:[#allocation7 + $0x8c] sm:$0xf0]  ;;  %v2452_v11 = vor.u32 %v2557_v9, %v2449_v10  ;;  %v125_v18 = vld [vmem:[#allocation2 + $0x158] sm:$0xff]  ;;  %v2554_v38 = vld [vmem:[#allocation7 + $0x6c] sm:$0xf] }
  0x36   :  { %631 = vmatmul.bf16.vlgmr.msra.gmra.mxu1 %v211_v51  ;;  %1716 = vmatpush.bf16.msrb.mxu0 %v2496_v54  ;;  %v115_v54 = vld [vmem:[#allocation2 + $0x108] sm:$0xff]  ;;  %v2448_v8 = vor.u32 %v2559_v6, %v2447_v5  ;;  %v124_v16 = vld [vmem:[#allocation2 + $0x150] sm:$0xff]  ;;  %v129_v19 = vld [vmem:[#allocation2 + $0x178] sm:$0xff] }
  0x37   :  { %720 = vmatmul.bf16.vlgmr.msra.gmra.mxu2 %v212_v52  ;;  %1805 = vmatpush.bf16.msrb.mxu1 %v2500_v55  ;;  %v114_v52 = vld [vmem:[#allocation2 + $0x100] sm:$0xff]  ;;  %v119_v55 = vld [vmem:[#allocation2 + $0x128] sm:$0xff]  ;;  %v128_v17 = vld [vmem:[#allocation2 + $0x170] sm:$0xff]  ;;  %v233_v23 = vpack.c.bf16 %v129_v19, %v125_v18 }
  0x38   :  { %1894 = vmatpush.bf16.msrb.mxu2 %v2504_v45  ;;  %809 = vmatmul.bf16.vlgmr.msra.gmra.mxu3 %v213_v53  ;;  %v112_v45 = vld [vmem:[#allocation2 + $0xf0] sm:$0xff]  ;;  %v118_v53 = vld [vmem:[#allocation2 + $0x120] sm:$0xff]  ;;  %v227_v61 = vpack.c.bf16 %v119_v55, %v115_v54  ;;  %v232_v22 = vpack.c.bf16 %v128_v17, %v124_v16  ;;  %v133_v30 = vld [vmem:[#allocation2 + $0x198] sm:$0xff] }
  0x39   :  { %1983 = vmatpush.bf16.msrb.mxu3 %v2508_v46  ;;  %v109_v46 = vld [vmem:[#allocation2 + $0xd8] sm:$0xff]  ;;  %v224_v50 = vpack.c.bf16 %v112_v45, %v108_v44  ;;  %v226_v60 = vpack.c.bf16 %v118_v53, %v114_v52  ;;  %v132_v28 = vld [vmem:[#allocation2 + $0x190] sm:$0xff]  ;;  %v138_v42 = vld [vmem:[#allocation2 + $0x1c0] sm:$0xff] }
  0x3a   :  { %1717 = vmatpush.bf16.msrb.mxu0 %v2480_v0  ;;  %v225_v51 = vpack.c.bf16 %v113_v47, %v109_v46  ;;  %v2455_v0 = vld [vmem:[#allocation7 + $0x88] sm:$0xf]  ;;  %v136_v29 = vld [vmem:[#allocation2 + $0x1b0] sm:$0xff]  ;;  %v2556_v37 = vld [vmem:[#allocation7 + $0x74] sm:$0xf0] }
  0x3b   :  { %1806 = vmatpush.bf16.msrb.mxu1 %v2484_v3  ;;  %v2456_v3 = vor.u32 %v2560_v1, %v2455_v0  ;;  %v236_v34 = vpack.c.bf16 %v136_v29, %v132_v28  ;;  %v2441_v40 = vld [vmem:[#allocation7 + $0x78] sm:$0xf0]  ;;  %v142_v43 = vld [vmem:[#allocation2 + $0x1e0] sm:$0xff]  ;;  %v139_v44 = vld [vmem:[#allocation2 + $0x1c8] sm:$0xff] }
  0x3c   :  { %1895 = vmatpush.bf16.msrb.mxu2 %v2488_v59  ;;  %v121_v59 = vld [vmem:[#allocation2 + $0x138] sm:$0xff]  ;;  %v2444_v41 = vor.u32 %v2554_v38, %v2441_v40  ;;  %v143_v45 = vld [vmem:[#allocation2 + $0x1e8] sm:$0xff]  ;;  %v140_v46 = vld [vmem:[#allocation2 + $0x1d0] sm:$0xff] }
  0x3d   :  { %1984 = vmatpush.bf16.msrb.mxu3 %v2492_v63  ;;  %v229_v63 = vpack.c.bf16 %v121_v59, %v117_v58  ;;  %v144_v47 = vld [vmem:[#allocation2 + $0x1f0] sm:$0xff]  ;;  %v2901_v54 = vld [vmem:[%s3710_s2] ss:$0 sm:$0xff]  ;;  %v147_v57 = vld [vmem:[#allocation2 + $0x208] sm:$0xff] }
  0x3e   :  { %1718 = vmatpush.bf16.msrb.mxu0 %v2464_v36  ;;  %v2439_v36 = vld [vmem:[#allocation7 + $0x68] sm:$0xf]  ;;  %v240_v52 = vpack.c.bf16 %v144_v47, %v140_v46  ;;  %v146_v55 = vld [vmem:[#allocation2 + $0x200] sm:$0xff]  ;;  %v148_v59 = vld [vmem:[#allocation2 + $0x210] sm:$0xff] }
  0x3f   :  { %1807 = vmatpush.bf16.msrb.mxu1 %v2468_v39  ;;  %v2440_v39 = vor.u32 %v2556_v37, %v2439_v36  ;;  %v150_v56 = vld [vmem:[#allocation2 + $0x220] sm:$0xff]  ;;  %v151_v58 = vld [vmem:[#allocation2 + $0x228] sm:$0xff]  ;;  %v2555_v6 = vld [vmem:[#allocation7 + $0x6c] sm:$0xf0] }
  0x40   :  { %1896 = vmatpush.bf16.msrb.mxu2 %v2472_v31  ;;  %v137_v31 = vld [vmem:[#allocation2 + $0x1b8] sm:$0xff]  ;;  %v243_v0 = vpack.c.bf16 %v151_v58, %v147_v57  ;;  %v2431_v5 = vld [vmem:[#allocation7 + $0x60] sm:$0xf]  ;;  %v2433_v10 = vld [vmem:[#allocation7 + $0x70] sm:$0xf0] }
  0x41   :  { %1985 = vmatpush.bf16.msrb.mxu3 %v2476_v35  ;;  %v237_v35 = vpack.c.bf16 %v137_v31, %v133_v30  ;;  %v2432_v9 = vor.u32 %v2555_v6, %v2431_v5  ;;  %v157_v28 = vld [vmem:[#allocation2 + $0x258] sm:$0xff]  ;;  %v168_v5 = vld [vmem:[#allocation2 + $0x2b0] sm:$0xff] }
  0x42   :  { %1719 = vmatpush.bf16.msrb.mxu0 %v2448_v8  ;;  %v161_v29 = vld [vmem:[#allocation2 + $0x278] sm:$0xff] }
  0x43   :  { %1808 = vmatpush.bf16.msrb.mxu1 %v2452_v11  ;;  %v249_v38 = vpack.c.bf16 %v161_v29, %v157_v28  ;;  %v165_v6 = vld [vmem:[#allocation2 + $0x298] sm:$0xff] }
  0x44   :  { %1897 = vmatpush.bf16.msrb.mxu2 %v2456_v3 }
  0x45   :  { %547 = vmatmul.bf16.gmra.mxu0 %v214_v12  ;;  %1986 = vmatpush.bf16.msrb.mxu3 %v2460_v7  ;;  %v122_v12 = vld [vmem:[#allocation2 + $0x140] sm:$0xff] }
  0x46   :  { %636 = vmatmul.bf16.gmra.mxu1 %v215_v13  ;;  %v126_v13 = vld [vmem:[#allocation2 + $0x160] sm:$0xff]  ;;  %1720 = vmatpush.bf16.msrb.mxu0 %v2432_v9 }
  0x47   :  { %725 = vmatmul.bf16.gmra.mxu2 %v216_v14  ;;  %v123_v14 = vld [vmem:[#allocation2 + $0x148] sm:$0xff]  ;;  %v230_v20 = vpack.c.bf16 %v126_v13, %v122_v12  ;;  %v2553_v7 = vld [vmem:[#allocation7 + $0x64] sm:$0xf] }
  0x48   :  { %814 = vmatmul.bf16.gmra.mxu3 %v217_v15  ;;  %v127_v15 = vld [vmem:[#allocation2 + $0x168] sm:$0xff]  ;;  %1898 = vmatpush.bf16.msrb.mxu2 %v2440_v39  ;;  %v2436_v11 = vor.u32 %v2553_v7, %v2433_v10  ;;  %v169_v7 = vld [vmem:[#allocation2 + $0x2b8] sm:$0xff] }
  0x49   :  { %v231_v21 = vpack.c.bf16 %v127_v15, %v123_v14  ;;  %1987 = vmatpush.bf16.msrb.mxu3 %v2444_v41 }
  0x4a   :  { %1809 = vmatpush.bf16.msrb.mxu1 %v2436_v11 }
  0x55   :  { %552 = vmatmul.bf16.gmra.mxu0 %v218_v24  ;;  %v130_v24 = vld [vmem:[#allocation2 + $0x180] sm:$0xff] }
  0x56   :  { %641 = vmatmul.bf16.gmra.mxu1 %v219_v25  ;;  %v134_v25 = vld [vmem:[#allocation2 + $0x1a0] sm:$0xff] }
  0x57   :  { %730 = vmatmul.bf16.gmra.mxu2 %v220_v26  ;;  %v131_v26 = vld [vmem:[#allocation2 + $0x188] sm:$0xff]  ;;  %v234_v32 = vpack.c.bf16 %v134_v25, %v130_v24 }
  0x58   :  { %819 = vmatmul.bf16.gmra.mxu3 %v221_v27  ;;  %v135_v27 = vld [vmem:[#allocation2 + $0x1a8] sm:$0xff] }
  0x59   :  { %v235_v33 = vpack.c.bf16 %v135_v27, %v131_v26  ;;  %v155_v24 = vld [vmem:[#allocation2 + $0x248] sm:$0xff]  ;;  %v156_v26 = vld [vmem:[#allocation2 + $0x250] sm:$0xff] }
  0x5a   :  { %v159_v25 = vld [vmem:[#allocation2 + $0x268] sm:$0xff]  ;;  %v160_v27 = vld [vmem:[#allocation2 + $0x270] sm:$0xff] }
  0x5b   :  { %v248_v37 = vpack.c.bf16 %v160_v27, %v156_v26 }
  0x65   :  { %557 = vmatmul.bf16.gmra.mxu0 %v222_v48  ;;  %v141_v48 = vld [vmem:[#allocation2 + $0x1d8] sm:$0xff] }
  0x66   :  { %646 = vmatmul.bf16.gmra.mxu1 %v223_v49  ;;  %v145_v49 = vld [vmem:[#allocation2 + $0x1f8] sm:$0xff] }
  0x67   :  { %735 = vmatmul.bf16.gmra.mxu2 %v224_v50  ;;  %v238_v50 = vpack.c.bf16 %v142_v43, %v138_v42  ;;  %v241_v53 = vpack.c.bf16 %v145_v49, %v141_v48 }
  0x68   :  { %824 = vmatmul.bf16.gmra.mxu3 %v225_v51  ;;  %v239_v51 = vpack.c.bf16 %v143_v45, %v139_v44 }
  0x75   :  { %562 = vmatmul.bf16.gmra.mxu0 %v226_v60  ;;  %v152_v60 = vld [vmem:[#allocation2 + $0x230] sm:$0xff] }
  0x76   :  { %651 = vmatmul.bf16.gmra.mxu1 %v227_v61  ;;  %v149_v61 = vld [vmem:[#allocation2 + $0x218] sm:$0xff]  ;;  %v244_v3 = vpack.c.bf16 %v152_v60, %v148_v59  ;;  %v162_v60 = vld [vmem:[#allocation2 + $0x280] sm:$0xff] }
  0x77   :  { %740 = vmatmul.bf16.gmra.mxu2 %v228_v62  ;;  %v153_v62 = vld [vmem:[#allocation2 + $0x238] sm:$0xff] }
  0x78   :  { %829 = vmatmul.bf16.gmra.mxu3 %v229_v63  ;;  %v242_v63 = vpack.c.bf16 %v150_v56, %v146_v55  ;;  %v245_v4 = vpack.c.bf16 %v153_v62, %v149_v61  ;;  %v2425_v56 = vld [vmem:[#allocation7 + $0x58] sm:$0xf0]  ;;  %v166_v61 = vld [vmem:[#allocation2 + $0x2a0] sm:$0xff] }
  0x79   :  { %v250_v11 = vpack.c.bf16 %v166_v61, %v162_v60  ;;  %v172_v60 = vld [vmem:[#allocation2 + $0x2d0] sm:$0xff] }
  0x7a   :  { %v176_v61 = vld [vmem:[#allocation2 + $0x2f0] sm:$0xff] }
  0x85   :  { %567 = vmatmul.bf16.gmra.mxu0 %v230_v20 }
  0x86   :  { %656 = vmatmul.bf16.gmra.mxu1 %v231_v21  ;;  %v154_v21 = vld [vmem:[#allocation2 + $0x240] sm:$0xff] }
  0x87   :  { %745 = vmatmul.bf16.gmra.mxu2 %v232_v22  ;;  %v158_v22 = vld [vmem:[#allocation2 + $0x260] sm:$0xff] }
  0x88   :  { %834 = vmatmul.bf16.gmra.mxu3 %v233_v23 }
  0x95   :  { %572 = vmatmul.bf16.gmra.mxu0 %v234_v32  ;;  %v246_v32 = vpack.c.bf16 %v158_v22, %v154_v21 }
  0x96   :  { %661 = vmatmul.bf16.gmra.mxu1 %v235_v33  ;;  %v247_v33 = vpack.c.bf16 %v159_v25, %v155_v24  ;;  %v2417_v24 = vld [vmem:[#allocation7 + $0x50] sm:$0xf0] }
  0x97   :  { %750 = vmatmul.bf16.gmra.mxu2 %v236_v34 }
  0x98   :  { %839 = vmatmul.bf16.gmra.mxu3 %v237_v35 }
  0xa5   :  { %577 = vmatmul.bf16.gmra.mxu0 %v238_v50  ;;  %v2423_v50 = vld [vmem:[#allocation7 + $0x48] sm:$0xf] }
  0xa6   :  { %666 = vmatmul.bf16.gmra.mxu1 %v239_v51  ;;  %v2552_v51 = vld [vmem:[#allocation7 + $0x54] sm:$0xf0] }
  0xa7   :  { %755 = vmatmul.bf16.gmra.mxu2 %v240_v52  ;;  %v2550_v52 = vld [vmem:[#allocation7 + $0x4c] sm:$0xf]  ;;  %v2424_v55 = vor.u32 %v2552_v51, %v2423_v50 }
  0xa8   :  { %844 = vmatmul.bf16.gmra.mxu3 %v241_v53  ;;  %v2428_v58 = vor.u32 %v2550_v52, %v2425_v56 }
  0xa9   :  { %1899 = vmatpush.bf16.msrb.mxu2 %v2424_v55 }
  0xaa   :  { %1988 = vmatpush.bf16.msrb.mxu3 %v2428_v58 }
  0xb2   :  { %v543_v1 = vpop.f32.mrf.mxu0 }
  0xb3   :  { %v632_v2 = vpop.f32.mrf.mxu1  ;;  %v544_v8 = vadd.f32 %v2901_v54, %v543_v1  ;;  %v167_v1 = vld [vmem:[#allocation2 + $0x2a8] sm:$0xff] }
  0xb5   :  { %v633_v12 = vadd.f32 %v632_v2, %v544_v8  ;;  %582 = vmatmul.bf16.gmra.mxu0 %v242_v63  ;;  %v164_v2 = vld [vmem:[#allocation2 + $0x290] sm:$0xff] }
  0xb6   :  { %671 = vmatmul.bf16.gmra.mxu1 %v243_v0  ;;  %v163_v0 = vld [vmem:[#allocation2 + $0x288] sm:$0xff] }
  0xb7   :  { %760 = vmatmul.bf16.gmra.mxu2 %v244_v3 }
  0xb8   :  { %849 = vmatmul.bf16.gmra.mxu3 %v245_v4 }
  0xba   :  { %v721_v13 = vpop.f32.mrf.mxu2  ;;  %v545_v16 = vpop.f32.mrf.mxu0 }
  0xbb   :  { %v810_v14 = vpop.f32.mrf.mxu3  ;;  %v722_v15 = vadd.f32 %v721_v13, %v633_v12  ;;  %v634_v17 = vpop.f32.mrf.mxu1  ;;  %v546_v18 = vadd.f32 %v2901_v54, %v545_v16  ;;  %v251_v12 = vpack.c.bf16 %v167_v1, %v163_v0 }
  0xbd   :  { %v811_v19 = vadd.f32 %v810_v14, %v722_v15  ;;  %v635_v20 = vadd.f32 %v634_v17, %v546_v18  ;;  %v252_v17 = vpack.c.bf16 %v168_v5, %v164_v2  ;;  %v253_v18 = vpack.c.bf16 %v169_v7, %v165_v6  ;;  %v177_v2 = vld [vmem:[#allocation2 + $0x2f8] sm:$0xff] }
  0xbf   :  { %v2349_v23 = vmul.f32 -1.442695, %v811_v19  ;;  %v2415_v19 = vld [vmem:[#allocation7 + $0x40] sm:$0xf] }
  0xc1   :  { %2585 = vpow2.f32 %v2349_v23  ;;  %v2549_v23 = vld [vmem:[#allocation7 + $0x44] sm:$0xf] }
  0xc2   :  { %v723_v30 = vpop.f32.mrf.mxu2  ;;  %v548_v35 = vpop.f32.mrf.mxu0  ;;  %v2420_v26 = vor.u32 %v2549_v23, %v2417_v24 }
  0xc3   :  { %v812_v31 = vpop.f32.mrf.mxu3  ;;  %v724_v34 = vadd.f32 %v723_v30, %v635_v20  ;;  %v637_v36 = vpop.f32.mrf.mxu1  ;;  %v549_v39 = vadd.f32 %v2901_v54, %v548_v35  ;;  %v2551_v20 = vld [vmem:[#allocation7 + $0x4c] sm:$0xf0] }
  0xc4   :  { %v2416_v22 = vor.u32 %v2551_v20, %v2415_v19  ;;  %1810 = vmatpush.bf16.msrb.mxu1 %v2420_v26 }
  0xc5   :  { %v813_v40 = vadd.f32 %v812_v31, %v724_v34  ;;  %v638_v41 = vadd.f32 %v637_v36, %v549_v39  ;;  %587 = vmatmul.bf16.gmra.mxu0 %v246_v32  ;;  %v170_v36 = vld [vmem:[#allocation2 + $0x2c0] sm:$0xff] }
  0xc6   :  { %676 = vmatmul.bf16.gmra.mxu1 %v247_v33  ;;  %1721 = vmatpush.bf16.msrb.mxu0 %v2416_v22 }
  0xc7   :  { %v2586_v42 = vpop.eup %2585  ;;  %v2350_v43 = vmul.f32 -1.442695, %v813_v40  ;;  %765 = vmatmul.bf16.gmra.mxu2 %v248_v37 }
  0xc8   :  { %854 = vmatmul.bf16.gmra.mxu3 %v249_v38  ;;  %v2906_v44 = vadd.f32 1.0, %v2586_v42  ;;  %v171_v42 = vld [vmem:[#allocation2 + $0x2c8] sm:$0xff] }
  0xc9   :  { %2587 = vpow2.f32 %v2350_v43  ;;  %v175_v43 = vld [vmem:[#allocation2 + $0x2e8] sm:$0xff] }
  0xca   :  { %2589 = vrcp.f32 %v2906_v44  ;;  %v726_v45 = vpop.f32.mrf.mxu2  ;;  %v550_v48 = vpop.f32.mrf.mxu0  ;;  %vm1023_vm0 = vweird.f32 %v2906_v44  ;;  %v255_v56 = vpack.c.bf16 %v175_v43, %v171_v42 }
  0xcb   :  { %v815_v46 = vpop.f32.mrf.mxu3  ;;  %v727_v47 = vadd.f32 %v726_v45, %v638_v41  ;;  %v639_v49 = vpop.f32.mrf.mxu1  ;;  %v551_v53 = vadd.f32 %v2901_v54, %v550_v48  ;;  %v174_v41 = vld [vmem:[#allocation2 + $0x2e0] sm:$0xff]  ;;  %v1029_v48 = vand.u32 2147483648, %v2906_v44 }
  0xcc   :  { %v254_v55 = vpack.c.bf16 %v174_v41, %v170_v36  ;;  %v2548_v41 = vld [vmem:[#allocation7 + $0x34] sm:$0xf0] }
  0xcd   :  { %v816_v57 = vadd.f32 %v815_v46, %v727_v47  ;;  %v640_v59 = vadd.f32 %v639_v49, %v551_v53  ;;  %v1027_v47 = vand.u32 2147483647, %v2906_v44  ;;  %v1030_v5 = vor.u32 1.1754944e-38, %v1029_v48 }
  0xcf   :  { %v2588_v62 = vpop.eup %2587  ;;  %v2351_v63 = vmul.f32 -1.442695, %v816_v57  ;;  %vm1028_vm5 = vcmp.eq.f32.partialorder %v1027_v47, 8.507059e+37  ;;  %v2409_v47 = vld [vmem:[#allocation7 + $0x38] sm:$0xf0] }
  0xd0   :  { %v2910_v3 = vpop.eup %2589  ;;  %v2912_v4 = vadd.f32 1.0, %v2588_v62 }
  0xd1   :  { %v1019_v8 = vmul.f32 %v2910_v3, %v2906_v44  ;;  %2591 = vpow2.f32 %v2351_v63  ;;  %vm1024_vm1 = vweird.f32 %v2910_v3  ;;  %v173_v44 = vld [vmem:[#allocation2 + $0x2d8] sm:$0xff] }
  0xd2   :  { %2593 = vrcp.f32 %v2912_v4  ;;  %v728_v9 = vpop.f32.mrf.mxu2  ;;  %v553_v15 = vpop.f32.mrf.mxu0  ;;  %v1044_v49 = vand.u32 2147483648, %v2912_v4  ;;  %v1042_v52 = vand.u32 2147483647, %v2912_v4  ;;  %vm2933_vm3 = vmor %vm1023_vm0, %vm1024_vm1  ;;  %vm1038_vm4 = vweird.f32 %v2912_v4 }
  0xd3   :  { %v817_v10 = vpop.f32.mrf.mxu3  ;;  %v1020_v13 = vsub.f32 1.0, %v1019_v8  ;;  %v729_v14 = vadd.f32 %v728_v9, %v640_v59  ;;  %v642_v16 = vpop.f32.mrf.mxu1  ;;  %v554_v21 = vadd.f32 %v2901_v54, %v553_v15  ;;  %v256_v9 = vpack.c.bf16 %v176_v61, %v172_v60  ;;  %v180_v60 = vld [vmem:[#allocation2 + $0x310] sm:$0xff] }
  0xd4   :  { %v1045_v6 = vor.u32 1.1754944e-38, %v1044_v49  ;;  %vm1043_vm7 = vcmp.eq.f32.partialorder %v1042_v52, 8.507059e+37  ;;  %v184_v61 = vld [vmem:[#allocation2 + $0x330] sm:$0xff] }
  0xd5   :  { %v818_v25 = vadd.f32 %v817_v10, %v729_v14  ;;  %v643_v27 = vadd.f32 %v642_v16, %v554_v21  ;;  %592 = vmatmul.bf16.gmra.mxu0 %v250_v11  ;;  %v1021_v30 = vmul.f32 %v2910_v3, %v1020_v13  ;;  %v257_v16 = vpack.c.bf16 %v177_v2, %v173_v44  ;;  %v181_v2 = vld [vmem:[#allocation2 + $0x318] sm:$0xff] }
  0xd6   :  { %681 = vmatmul.bf16.gmra.mxu1 %v251_v12 }
  0xd7   :  { %v2592_v28 = vpop.eup %2591  ;;  %v2352_v29 = vmul.f32 -1.442695, %v818_v25  ;;  %770 = vmatmul.bf16.gmra.mxu2 %v252_v17  ;;  %v1022_v45 = vadd.f32 %v2910_v3, %v1021_v30  ;;  %v2962_v30 = vld [vmem:[#allocation2 + $0x320] sm:$0xff] }
  0xd8   :  { %859 = vmatmul.bf16.gmra.mxu3 %v253_v18  ;;  %v2594_v31 = vpop.eup %2593  ;;  %v2919_v32 = vadd.f32 1.0, %v2592_v28 }
  0xd9   :  { %v1034_v33 = vmul.f32 %v2594_v31, %v2912_v4  ;;  %2595 = vpow2.f32 %v2352_v29  ;;  %vm1039_vm2 = vweird.f32 %v2594_v31  ;;  %v1026_v62 = vsel %vm2933_vm3, %v2910_v3, %v1022_v45 }
  0xda   :  { %2597 = vrcp.f32 %v2919_v32  ;;  %v731_v34 = vpop.f32.mrf.mxu2  ;;  %v555_v39 = vpop.f32.mrf.mxu0  ;;  %vm1040_vm6 = vmor %vm1038_vm4, %vm1039_vm2  ;;  %v1031_v10 = vsel %vm1028_vm5, %v1030_v5, %v1026_v62  ;;  %vm1053_vm8 = vweird.f32 %v2919_v32  ;;  %v1059_v48 = vand.u32 2147483648, %v2919_v32  ;;  %v185_v5 = vld [vmem:[#allocation2 + $0x338] sm:$0xff] }
  0xdb   :  { %v820_v35 = vpop.f32.mrf.mxu3  ;;  %v1035_v37 = vsub.f32 1.0, %v1034_v33  ;;  %v732_v38 = vadd.f32 %v731_v34, %v643_v27  ;;  %v644_v40 = vpop.f32.mrf.mxu1  ;;  %v556_v46 = vadd.f32 %v2901_v54, %v555_v39  ;;  %v2959_v27 = vld [vmem:[#allocation2 + $0x300] sm:$0xff]  ;;  %v1057_v33 = vand.u32 2147483647, %v2919_v32  ;;  %v183_v39 = vld [vmem:[#allocation2 + $0x328] sm:$0xff] }
  0xdd   :  { %v821_v50 = vadd.f32 %v820_v35, %v732_v38  ;;  %v1036_v51 = vmul.f32 %v2594_v31, %v1035_v37  ;;  %v645_v53 = vadd.f32 %v644_v40, %v556_v46  ;;  %v2407_v40 = vld [vmem:[#allocation7 + $0x28] sm:$0xf]  ;;  %v2546_v46 = vld [vmem:[#allocation7 + $0x2c] sm:$0xf]  ;;  %vm1058_vm13 = vcmp.eq.f32.partialorder %v1057_v33, 8.507059e+37 }
  0xde   :  { %v2408_v45 = vor.u32 %v2548_v41, %v2407_v40 }
  0xdf   :  { %v2596_v58 = vpop.eup %2595  ;;  %v2353_v59 = vmul.f32 -1.442695, %v821_v50  ;;  %v1037_v63 = vadd.f32 %v2594_v31, %v1036_v51  ;;  %v2412_v51 = vor.u32 %v2546_v46, %v2409_v47 }
  0xe0   :  { %v2941_v0 = vpop.eup %2597  ;;  %v2943_v1 = vadd.f32 1.0, %v2596_v58  ;;  %1900 = vmatpush.bf16.msrb.mxu2 %v2408_v45  ;;  %v191_v45 = vld [vmem:[#allocation2 + $0x368] sm:$0xff] }
  0xe1   :  { %v1049_v7 = vmul.f32 %v2941_v0, %v2919_v32  ;;  %2599 = vpow2.f32 %v2353_v59  ;;  %v1041_v8 = vsel %vm1040_vm6, %v2594_v31, %v1037_v63  ;;  %v2964_v31 = vld [vmem:[#allocation2 + $0x308] sm:$0xff]  ;;  %vm1054_vm9 = vweird.f32 %v2941_v0  ;;  %1989 = vmatpush.bf16.msrb.mxu3 %v2412_v51 }
  0xe2   :  { %2601 = vrcp.f32 %v2943_v1  ;;  %v733_v3 = vpop.f32.mrf.mxu2  ;;  %v1046_v11 = vsel %vm1043_vm7, %v1045_v6, %v1041_v8  ;;  %v558_v14 = vpop.f32.mrf.mxu0  ;;  %v1072_v34 = vand.u32 2147483647, %v2943_v1  ;;  %v1074_v49 = vand.u32 2147483648, %v2943_v1  ;;  %vm2983_vm11 = vmor %vm1053_vm8, %vm1054_vm9 }
  0xe3   :  { %v822_v4 = vpop.f32.mrf.mxu3  ;;  %v1050_v12 = vsub.f32 1.0, %v1049_v7  ;;  %v734_v13 = vadd.f32 %v733_v3, %v645_v53  ;;  %v647_v15 = vpop.f32.mrf.mxu1  ;;  %v2949_v17 = vpack.c.bf16 %v1046_v11, %v1031_v10  ;;  %v559_v18 = vadd.f32 %v2901_v54, %v558_v14 }
  0xe4   :  { %vm1068_vm12 = vweird.f32 %v2943_v1  ;;  %v1060_v6 = vor.u32 1.1754944e-38, %v1059_v48  ;;  %v1075_v7 = vor.u32 1.1754944e-38, %v1074_v49  ;;  %vm1073_vm15 = vcmp.eq.f32.partialorder %v1072_v34, 8.507059e+37 }
  0xe5   :  { %v823_v19 = vadd.f32 %v822_v4, %v734_v13  ;;  %v648_v20 = vadd.f32 %v647_v15, %v559_v18  ;;  %597 = vmatmul.bf16.gmra.mxu0 %v254_v55  ;;  %v1051_v23 = vmul.f32 %v2941_v0, %v1050_v12  ;;  %v258_v55 = vpack.c.bf16 %v2962_v30, %v2959_v27  ;;  %v2547_v18 = vld [vmem:[#allocation7 + $0x2c] sm:$0xf0] }
  0xe6   :  { %686 = vmatmul.bf16.gmra.mxu1 %v255_v56  ;;  %v259_v56 = vpack.c.bf16 %v183_v39, %v2964_v31  ;;  %v260_v4 = vpack.c.bf16 %v184_v61, %v180_v60  ;;  %v261_v15 = vpack.c.bf16 %v185_v5, %v181_v2  ;;  %v188_v61 = vld [vmem:[#allocation2 + $0x350] sm:$0xff] }
  0xe7   :  { %v2600_v21 = vpop.eup %2599  ;;  %v2354_v22 = vmul.f32 -1.442695, %v823_v19  ;;  %775 = vmatmul.bf16.gmra.mxu2 %v256_v9  ;;  %v1052_v42 = vadd.f32 %v2941_v0, %v1051_v23  ;;  %v2401_v23 = vld [vmem:[#allocation7 + $0x30] sm:$0xf0] }
  0xe8   :  { %864 = vmatmul.bf16.gmra.mxu3 %v257_v16  ;;  %v2953_v24 = vpop.eup %2601  ;;  %v2955_v25 = vadd.f32 1.0, %v2600_v21  ;;  %v2399_v16 = vld [vmem:[#allocation7 + $0x20] sm:$0xf] }
  0xe9   :  { %v1064_v26 = vmul.f32 %v2953_v24, %v2943_v1  ;;  %2603 = vpow2.f32 %v2354_v22  ;;  %vm1069_vm10 = vweird.f32 %v2953_v24  ;;  %v1056_v62 = vsel %vm2983_vm11, %v2941_v0, %v1052_v42  ;;  %v2545_v22 = vld [vmem:[#allocation7 + $0x24] sm:$0xf] }
  0xea   :  { %2605 = vrcp.f32 %v2955_v25  ;;  %v736_v28 = vpop.f32.mrf.mxu2  ;;  %v560_v37 = vpop.f32.mrf.mxu0  ;;  %vm1070_vm14 = vmor %vm1068_vm12, %vm1069_vm10  ;;  %v1061_v9 = vsel %vm1058_vm13, %v1060_v6, %v1056_v62  ;;  %v2400_v21 = vor.u32 %v2547_v18, %v2399_v16  ;;  %vm1083_vm0 = vweird.f32 %v2955_v25  ;;  %v190_v42 = vld [vmem:[#allocation2 + $0x360] sm:$0xff]  ;;  %v192_v62 = vld [vmem:[#allocation2 + $0x370] sm:$0xff] }
  0xeb   :  { %v825_v29 = vpop.f32.mrf.mxu3  ;;  %v1065_v35 = vsub.f32 1.0, %v1064_v26  ;;  %v737_v36 = vadd.f32 %v736_v28, %v648_v20  ;;  %v649_v38 = vpop.f32.mrf.mxu1  ;;  %v561_v43 = vadd.f32 %v2901_v54, %v560_v37  ;;  %v2404_v26 = vor.u32 %v2545_v22, %v2401_v23  ;;  %v186_v37 = vld [vmem:[#allocation2 + $0x340] sm:$0xff] }
  0xec   :  { %1722 = vmatpush.bf16.msrb.mxu0 %v2400_v21  ;;  %v1087_v48 = vand.u32 2147483647, %v2955_v25  ;;  %v1089_v49 = vand.u32 2147483648, %v2955_v25  ;;  %v3039_v22 = vld [vmem:[#allocation2 + $0x380] sm:$0xff] }
  0xed   :  { %v826_v50 = vadd.f32 %v825_v29, %v737_v36  ;;  %v1066_v52 = vmul.f32 %v2953_v24, %v1065_v35  ;;  %v650_v53 = vadd.f32 %v649_v38, %v561_v43  ;;  %1811 = vmatpush.bf16.msrb.mxu1 %v2404_v26  ;;  %v187_v43 = vld [vmem:[#allocation2 + $0x348] sm:$0xff]  ;;  %v3041_v23 = vld [vmem:[#allocation2 + $0x3a0] sm:$0xff] }
  0xee   :  { %v263_v57 = vpack.c.bf16 %v191_v45, %v187_v43  ;;  %vm1088_vm5 = vcmp.eq.f32.partialorder %v1087_v48, 8.507059e+37  ;;  %v2544_v48 = vld [vmem:[#allocation7 + $0x14] sm:$0xf0] }
  0xef   :  { %v2604_v58 = vpop.eup %2603  ;;  %v2355_v59 = vmul.f32 -1.442695, %v826_v50  ;;  %v1067_v63 = vadd.f32 %v2953_v24, %v1066_v52 }
  0xf0   :  { %v2992_v44 = vpop.eup %2605  ;;  %v2994_v32 = vadd.f32 1.0, %v2604_v58 }
  0xf1   :  { %v1079_v8 = vmul.f32 %v2992_v44, %v2955_v25  ;;  %2607 = vpow2.f32 %v2355_v59  ;;  %v1071_v0 = vsel %vm1070_vm14, %v2953_v24, %v1067_v63  ;;  %vm1084_vm1 = vweird.f32 %v2992_v44  ;;  %v189_v25 = vld [vmem:[#allocation2 + $0x358] sm:$0xff] }
  0xf2   :  { %2609 = vrcp.f32 %v2994_v32  ;;  %v738_v1 = vpop.f32.mrf.mxu2  ;;  %v1076_v10 = vsel %vm1073_vm15, %v1075_v7, %v1071_v0  ;;  %v563_v13 = vpop.f32.mrf.mxu0  ;;  %v1104_v50 = vand.u32 2147483648, %v2994_v32  ;;  %vm3020_vm3 = vmor %vm1083_vm0, %vm1084_vm1  ;;  %vm1098_vm4 = vweird.f32 %v2994_v32  ;;  %v193_v7 = vld [vmem:[#allocation2 + $0x378] sm:$0xff] }
  0xf3   :  { %v827_v3 = vpop.f32.mrf.mxu3  ;;  %v1080_v11 = vsub.f32 1.0, %v1079_v8  ;;  %v739_v12 = vadd.f32 %v738_v1, %v650_v53  ;;  %v652_v14 = vpop.f32.mrf.mxu1  ;;  %v3002_v19 = vpack.c.bf16 %v1076_v10, %v1061_v9  ;;  %v564_v20 = vadd.f32 %v2901_v54, %v563_v13 }
  0xf4   :  { %v1102_v53 = vand.u32 2147483647, %v2994_v32  ;;  %v1090_v8 = vor.u32 1.1754944e-38, %v1089_v49  ;;  %v1105_v0 = vor.u32 1.1754944e-38, %v1104_v50 }
  0xf5   :  { %v828_v24 = vadd.f32 %v827_v3, %v739_v12  ;;  %v653_v27 = vadd.f32 %v652_v14, %v564_v20  ;;  %602 = vmatmul.bf16.gmra.mxu0 %v258_v55  ;;  %v1081_v30 = vmul.f32 %v2992_v44, %v1080_v11 }
  0xf6   :  { %691 = vmatmul.bf16.gmra.mxu1 %v259_v56  ;;  %v262_v56 = vpack.c.bf16 %v190_v42, %v186_v37  ;;  %vm1103_vm7 = vcmp.eq.f32.partialorder %v1102_v53, 8.507059e+37  ;;  %v3055_v37 = vld [vmem:[#allocation2 + $0x3a8] sm:$0xff]  ;;  %v2393_v53 = vld [vmem:[#allocation7 + $0x18] sm:$0xf0] }
  0xf7   :  { %v2608_v28 = vpop.eup %2607  ;;  %v2356_v29 = vmul.f32 -1.442695, %v828_v24  ;;  %780 = vmatmul.bf16.gmra.mxu2 %v260_v4  ;;  %v1082_v46 = vadd.f32 %v2992_v44, %v1081_v30  ;;  %v264_v4 = vpack.c.bf16 %v192_v62, %v188_v61 }
  0xf8   :  { %869 = vmatmul.bf16.gmra.mxu3 %v261_v15  ;;  %v2610_v31 = vpop.eup %2609  ;;  %v3006_v33 = vadd.f32 1.0, %v2608_v28  ;;  %v265_v15 = vpack.c.bf16 %v193_v7, %v189_v25 }
  0xf9   :  { %v1094_v34 = vmul.f32 %v2610_v31, %v2994_v32  ;;  %2611 = vpow2.f32 %v2356_v29  ;;  %vm1099_vm2 = vweird.f32 %v2610_v31  ;;  %v1086_v63 = vsel %vm3020_vm3, %v2992_v44, %v1082_v46  ;;  %v3062_v46 = vld [vmem:[#allocation2 + $0x3b0] sm:$0xff] }
  0xfa   :  { %2613 = vrcp.f32 %v3006_v33  ;;  %v741_v35 = vpop.f32.mrf.mxu2  ;;  %v565_v40 = vpop.f32.mrf.mxu0  ;;  %vm1100_vm6 = vmor %vm1098_vm4, %vm1099_vm2  ;;  %v1091_v9 = vsel %vm1088_vm5, %v1090_v8, %v1086_v63  ;;  %vm1113_vm8 = vweird.f32 %v3006_v33  ;;  %v197_v63 = vld [vmem:[#allocation2 + $0x398] sm:$0xff] }
  0xfb   :  { %v830_v36 = vpop.f32.mrf.mxu3  ;;  %v1095_v38 = vsub.f32 1.0, %v1094_v34  ;;  %v742_v39 = vadd.f32 %v741_v35, %v653_v27  ;;  %v654_v41 = vpop.f32.mrf.mxu1  ;;  %v566_v47 = vadd.f32 %v2901_v54, %v565_v40  ;;  %v3052_v34 = vld [vmem:[#allocation2 + $0x388] sm:$0xff] }
  0xfc   :  { %v267_v61 = vpack.c.bf16 %v3055_v37, %v3052_v34 }
  0xfd   :  { %v831_v51 = vadd.f32 %v830_v36, %v742_v39  ;;  %v1096_v52 = vmul.f32 %v2610_v31, %v1095_v38  ;;  %v655_v55 = vadd.f32 %v654_v41, %v566_v47  ;;  %v3057_v38 = vld [vmem:[#allocation2 + $0x390] sm:$0xff]  ;;  %v1117_v39 = vand.u32 2147483647, %v3006_v33  ;;  %v2391_v47 = vld [vmem:[#allocation7 + $0x8] sm:$0xf] }
  0xfe   :  { %v268_v62 = vpack.c.bf16 %v3062_v46, %v3057_v38 }
  0xff   :  { %v2612_v59 = vpop.eup %2611  ;;  %v2357_v60 = vmul.f32 -1.442695, %v831_v51  ;;  %v1097_v2 = vadd.f32 %v2610_v31, %v1096_v52  ;;  %v2392_v51 = vor.u32 %v2544_v48, %v2391_v47  ;;  %v2542_v52 = vld [vmem:[#allocation7 + $0xc] sm:$0xf]  ;;  %vm3083_vm12 = vcmp.eq.f32.partialorder %v1117_v39, 8.507059e+37  ;;  %v202_v48 = vld [vmem:[#allocation2 + $0x3c0] sm:$0xff] }
 0x100   :  { %v3028_v5 = vpop.eup %2613  ;;  %v3030_v6 = vadd.f32 1.0, %v2612_v59  ;;  %v2396_v58 = vor.u32 %v2542_v52, %v2393_v53  ;;  %v207_v52 = vld [vmem:[#allocation2 + $0x3e8] sm:$0xff] }
 0x101   :  { %v1109_v1 = vmul.f32 %v3028_v5, %v3006_v33  ;;  %2615 = vpow2.f32 %v2357_v60  ;;  %v1101_v3 = vsel %vm1100_vm6, %v2610_v31, %v1097_v2  ;;  %v266_v31 = vpack.c.bf16 %v3041_v23, %v3039_v22  ;;  %v201_v2 = vld [vmem:[#allocation2 + $0x3b8] sm:$0xff]  ;;  %1901 = vmatpush.bf16.msrb.mxu2 %v2392_v51  ;;  %v203_v51 = vld [vmem:[#allocation2 + $0x3c8] sm:$0xff] }
 0x102   :  { %2617 = vrcp.f32 %v3030_v6  ;;  %v743_v44 = vpop.f32.mrf.mxu2  ;;  %v1106_v10 = vsel %vm1103_vm7, %v1105_v0, %v1101_v3  ;;  %v568_v13 = vpop.f32.mrf.mxu0  ;;  %v1132_v40 = vand.u32 2147483647, %v3030_v6  ;;  %vm1114_vm9 = vweird.f32 %v3028_v5  ;;  %1990 = vmatpush.bf16.msrb.mxu3 %v2396_v58 }
 0x103   :  { %v832_v32 = vpop.f32.mrf.mxu3  ;;  %v1110_v11 = vsub.f32 1.0, %v1109_v1  ;;  %v744_v12 = vadd.f32 %v743_v44, %v655_v55  ;;  %v657_v14 = vpop.f32.mrf.mxu1  ;;  %v3036_v16 = vpack.c.bf16 %v1106_v10, %v1091_v9  ;;  %v569_v18 = vadd.f32 %v2901_v54, %v568_v13  ;;  %vm3079_vm11 = vmor %vm1113_vm8, %vm1114_vm9 }
 0x104   :  { %v1119_v55 = vand.u32 2147483648, %v3006_v33  ;;  %vm1128_vm13 = vweird.f32 %v3030_v6  ;;  %vm1133_vm15 = vcmp.eq.f32.partialorder %v1132_v40, 8.507059e+37  ;;  %v269_v10 = vpack.c.bf16 %v201_v2, %v197_v63 }
 0x105   :  { %v833_v20 = vadd.f32 %v832_v32, %v744_v12  ;;  %v658_v21 = vadd.f32 %v657_v14, %v569_v18  ;;  %607 = vmatmul.bf16.gmra.mxu0 %v262_v56  ;;  %v1111_v27 = vmul.f32 %v3028_v5, %v1110_v11  ;;  %v1134_v56 = vand.u32 2147483648, %v3030_v6  ;;  %v2383_v11 = vld [vmem:[#allocation7] sm:$0xf]  ;;  %v2541_v12 = vld [vmem:[#allocation7 + $0x4] sm:$0xf] }
 0x106   :  { %696 = vmatmul.bf16.gmra.mxu1 %v263_v57  ;;  %v1120_v32 = vor.u32 1.1754944e-38, %v1119_v55  ;;  %v271_v2 = vpack.c.bf16 %v207_v52, %v203_v51 }
 0x107   :  { %v2616_v24 = vpop.eup %2615  ;;  %v2358_v26 = vmul.f32 -1.442695, %v833_v20  ;;  %785 = vmatmul.bf16.gmra.mxu2 %v264_v4  ;;  %v1112_v49 = vadd.f32 %v3028_v5, %v1111_v27  ;;  %v1135_v9 = vor.u32 1.1754944e-38, %v1134_v56  ;;  %v2385_v20 = vld [vmem:[#allocation7 + $0x10] sm:$0xf0] }
 0x108   :  { %874 = vmatmul.bf16.gmra.mxu3 %v265_v15  ;;  %v3044_v28 = vpop.eup %2617  ;;  %v3046_v29 = vadd.f32 1.0, %v2616_v24 }
 0x109   :  { %v1124_v30 = vmul.f32 %v3044_v28, %v3030_v6  ;;  %2619 = vpow2.f32 %v2358_v26  ;;  %vm1129_vm10 = vweird.f32 %v3044_v28  ;;  %v1116_v1 = vsel %vm3079_vm11, %v3028_v5, %v1112_v49  ;;  %v2543_v6 = vld [vmem:[#allocation7 + $0xc] sm:$0xf0] }
 0x10a   :  { %2621 = vrcp.f32 %v3046_v29  ;;  %v746_v35 = vpop.f32.mrf.mxu2  ;;  %v570_v43 = vpop.f32.mrf.mxu0  ;;  %vm3098_vm14 = vmor %vm1128_vm13, %vm1129_vm10  ;;  %v2384_v18 = vor.u32 %v2543_v6, %v2383_v11  ;;  %vm1143_vm0 = vweird.f32 %v3046_v29  ;;  %v1147_v56 = vand.u32 2147483647, %v3046_v29 }
 0x10b   :  { %v835_v36 = vpop.f32.mrf.mxu3  ;;  %v1125_v41 = vsub.f32 1.0, %v1124_v30  ;;  %v747_v42 = vadd.f32 %v746_v35, %v658_v21  ;;  %v659_v45 = vpop.f32.mrf.mxu1  ;;  %v571_v50 = vadd.f32 %v2901_v54, %v570_v43  ;;  %v1121_v21 = vsel %vm3083_vm12, %v1120_v32, %v1116_v1  ;;  %v208_v1 = vld [vmem:[#allocation2 + $0x3f0] sm:$0xff] }
 0x10c   :  { %v2388_v35 = vor.u32 %v2541_v12, %v2385_v20  ;;  %1723 = vmatpush.bf16.msrb.mxu0 %v2384_v18  ;;  %vm1148_vm5 = vcmp.eq.f32.partialorder %v1147_v56, 8.507059e+37 }
 0x10d   :  { %v836_v57 = vadd.f32 %v835_v36, %v747_v42  ;;  %v1126_v59 = vmul.f32 %v3044_v28, %v1125_v41  ;;  %v660_v60 = vadd.f32 %v659_v45, %v571_v50  ;;  %v206_v50 = vld [vmem:[#allocation2 + $0x3e0] sm:$0xff] }
 0x10e   :  { %1812 = vmatpush.bf16.msrb.mxu1 %v2388_v35  ;;  %v270_v63 = vpack.c.bf16 %v206_v50, %v202_v48 }
 0x10f   :  { %v2620_v8 = vpop.eup %2619  ;;  %v2359_v0 = vmul.f32 -1.442695, %v836_v57  ;;  %v1127_v3 = vadd.f32 %v3044_v28, %v1126_v59  ;;  %v1149_v57 = vand.u32 2147483648, %v3046_v29 }
 0x110   :  { %v3092_v33 = vpop.eup %2621  ;;  %v3094_v44 = vadd.f32 1.0, %v2620_v8 }
 0x111   :  { %v1139_v5 = vmul.f32 %v3092_v33, %v3046_v29  ;;  %2623 = vpow2.f32 %v2359_v0  ;;  %v1131_v13 = vsel %vm3098_vm14, %v3044_v28, %v1127_v3  ;;  %vm1144_vm1 = vweird.f32 %v3092_v33  ;;  %v204_v0 = vld [vmem:[#allocation2 + $0x3d0] sm:$0xff]  ;;  %v205_v29 = vld [vmem:[#allocation2 + $0x3d8] sm:$0xff] }
 0x112   :  { %2625 = vrcp.f32 %v3094_v44  ;;  %v748_v14 = vpop.f32.mrf.mxu2  ;;  %v1136_v24 = vsel %vm1133_vm15, %v1135_v9, %v1131_v13  ;;  %v573_v30 = vpop.f32.mrf.mxu0  ;;  %v1164_v58 = vand.u32 2147483648, %v3094_v44  ;;  %vm3131_vm3 = vmor %vm1143_vm0, %vm1144_vm1  ;;  %vm1158_vm4 = vweird.f32 %v3094_v44 }
 0x113   :  { %v837_v15 = vpop.f32.mrf.mxu3  ;;  %v1140_v26 = vsub.f32 1.0, %v1139_v5  ;;  %v749_v27 = vadd.f32 %v748_v14, %v660_v60  ;;  %v662_v34 = vpop.f32.mrf.mxu1  ;;  %v3110_v36 = vpack.c.bf16 %v1136_v24, %v1121_v21  ;;  %v574_v37 = vadd.f32 %v2901_v54, %v573_v30  ;;  %v209_v5 = vld [vmem:[#allocation2 + $0x3f8] sm:$0xff] }
 0x114   :  { %v1165_v11 = vor.u32 1.1754944e-38, %v1164_v58  ;;  %v272_v13 = vpack.c.bf16 %v208_v1, %v204_v0 }
 0x115   :  { %v838_v28 = vadd.f32 %v837_v15, %v749_v27  ;;  %v663_v38 = vadd.f32 %v662_v34, %v574_v37  ;;  %612 = vmatmul.bf16.gmra.mxu0 %v266_v31  ;;  %v1141_v41 = vmul.f32 %v3092_v33, %v1140_v26  ;;  %v273_v26 = vpack.c.bf16 %v209_v5, %v205_v29 }
 0x116   :  { %701 = vmatmul.bf16.gmra.mxu1 %v267_v61  ;;  %v1162_v61 = vand.u32 2147483647, %v3094_v44 }
 0x117   :  { %v2624_v39 = vpop.eup %2623  ;;  %v2360_v40 = vmul.f32 -1.442695, %v838_v28  ;;  %790 = vmatmul.bf16.gmra.mxu2 %v268_v62  ;;  %v1142_v53 = vadd.f32 %v3092_v33, %v1141_v41 }
 0x118   :  { %879 = vmatmul.bf16.gmra.mxu3 %v269_v10  ;;  %v2626_v42 = vpop.eup %2625  ;;  %v3117_v43 = vadd.f32 1.0, %v2624_v39  ;;  %v1150_v10 = vor.u32 1.1754944e-38, %v1149_v57  ;;  %vm1163_vm7 = vcmp.eq.f32.partialorder %v1162_v61, 8.507059e+37 }
 0x119   :  { %v1154_v45 = vmul.f32 %v2626_v42, %v3094_v44  ;;  %2627 = vpow2.f32 %v2360_v40  ;;  %vm1159_vm2 = vweird.f32 %v2626_v42  ;;  %v1146_v3 = vsel %vm3131_vm3, %v3092_v33, %v1142_v53 }
 0x11a   :  { %2629 = vrcp.f32 %v3117_v43  ;;  %v751_v46 = vpop.f32.mrf.mxu2  ;;  %v575_v31 = vpop.f32.mrf.mxu0  ;;  %vm1160_vm6 = vmor %vm1158_vm4, %vm1159_vm2  ;;  %v1151_v14 = vsel %vm1148_vm5, %v1150_v10, %v1146_v3  ;;  %vm1173_vm8 = vweird.f32 %v3117_v43  ;;  %v1179_v50 = vand.u32 2147483648, %v3117_v43 }
 0x11b   :  { %v840_v47 = vpop.f32.mrf.mxu3  ;;  %v1155_v22 = vsub.f32 1.0, %v1154_v45  ;;  %v752_v23 = vadd.f32 %v751_v46, %v663_v38  ;;  %v664_v49 = vpop.f32.mrf.mxu1  ;;  %v576_v55 = vadd.f32 %v2901_v54, %v575_v31 }
 0x11d   :  { %v841_v59 = vadd.f32 %v840_v47, %v752_v23  ;;  %v1156_v60 = vmul.f32 %v2626_v42, %v1155_v22  ;;  %v665_v62 = vadd.f32 %v664_v49, %v576_v55  ;;  %v3161_v23 = vld [vmem:[%s3710_s2] ss:$0 sm:$0xff]  ;;  %v1177_v49 = vand.u32 2147483647, %v3117_v43  ;;  %s2852_s2 = smov [#allocation10]  }
 0x11e   :  { %s2204_s19 = sshll.u32 %s2852_s2, 4  ;;  %s2205_s19 = int_to_ptr.vmem [resolvable:$true] %s2204_s19 }
 0x11f   :  { %v2628_v7 = vpop.eup %2627  ;;  %v2361_v8 = vmul.f32 -1.442695, %v841_v59  ;;  %v1157_v32 = vadd.f32 %v2626_v42, %v1156_v60  ;;  %vm1178_vm13 = vcmp.eq.f32.partialorder %v1177_v49, 8.507059e+37 }
 0x120   :  { %v3139_v4 = vpop.eup %2629  ;;  %v3141_v9 = vadd.f32 1.0, %v2628_v7 }
 0x121   :  { %v1169_v6 = vmul.f32 %v3139_v4, %v3117_v43  ;;  %2631 = vpow2.f32 %v2361_v8  ;;  %v1161_v12 = vsel %vm1160_vm6, %v2626_v42, %v1157_v32  ;;  %vm1174_vm9 = vweird.f32 %v3139_v4 }
 0x122   :  { %2633 = vrcp.f32 %v3141_v9  ;;  %v753_v33 = vpop.f32.mrf.mxu2  ;;  %v1166_v15 = vsel %vm1163_vm7, %v1165_v11, %v1161_v12  ;;  %v578_v21 = vpop.f32.mrf.mxu0  ;;  %v1194_v51 = vand.u32 2147483648, %v3141_v9  ;;  %v1192_v55 = vand.u32 2147483647, %v3141_v9  ;;  %vm3170_vm11 = vmor %vm1173_vm8, %vm1174_vm9 }
 0x123   :  { %v842_v44 = vpop.f32.mrf.mxu3  ;;  %v1170_v18 = vsub.f32 1.0, %v1169_v6  ;;  %v754_v20 = vadd.f32 %v753_v33, %v665_v62  ;;  %v667_v24 = vpop.f32.mrf.mxu1  ;;  %v3147_v27 = vpack.c.bf16 %v1166_v15, %v1151_v14  ;;  %v579_v30 = vadd.f32 %v2901_v54, %v578_v21 }
 0x124   :  { %vm1188_vm12 = vweird.f32 %v3141_v9  ;;  %v1195_v43 = vor.u32 1.1754944e-38, %v1194_v51  ;;  %vm1193_vm15 = vcmp.eq.f32.partialorder %v1192_v55, 8.507059e+37 }
 0x125   :  { %v843_v34 = vadd.f32 %v842_v44, %v754_v20  ;;  %v668_v35 = vadd.f32 %v667_v24, %v579_v30  ;;  %617 = vmatmul.bf16.gmra.mxu0 %v270_v63  ;;  %v1171_v38 = vmul.f32 %v3139_v4, %v1170_v18 }
 0x126   :  { %706 = vmatmul.bf16.gmra.mxu1 %v271_v2  ;;  %v1180_v2 = vor.u32 1.1754944e-38, %v1179_v50 }
 0x127   :  { %v2632_v37 = vpop.eup %2631  ;;  %v2362_v28 = vmul.f32 -1.442695, %v843_v34  ;;  %795 = vmatmul.bf16.gmra.mxu2 %v272_v13  ;;  %v1172_v22 = vadd.f32 %v3139_v4, %v1171_v38 }
 0x128   :  { %884 = vmatmul.bf16.gmra.mxu3 %v273_v26  ;;  %v2634_v39 = vpop.eup %2633  ;;  %v3151_v40 = vadd.f32 1.0, %v2632_v37 }
 0x129   :  { %v1184_v41 = vmul.f32 %v2634_v39, %v3141_v9  ;;  %2635 = vpow2.f32 %v2362_v28  ;;  %vm1189_vm10 = vweird.f32 %v2634_v39  ;;  %v1176_v60 = vsel %vm3170_vm11, %v3139_v4, %v1172_v22 }
 0x12a   :  { %2637 = vrcp.f32 %v3151_v40  ;;  %v756_v42 = vpop.f32.mrf.mxu2  ;;  %v580_v47 = vpop.f32.mrf.mxu0  ;;  %vm1190_vm14 = vmor %vm1188_vm12, %vm1189_vm10  ;;  %v1181_v1 = vsel %vm1178_vm13, %v1180_v2, %v1176_v60  ;;  %vm1203_vm0 = vweird.f32 %v3151_v40  ;;  %v1209_v37 = vand.u32 2147483648, %v3151_v40 }
 0x12b   :  { %v845_v54 = vpop.f32.mrf.mxu3  ;;  %v1185_v45 = vsub.f32 1.0, %v1184_v41  ;;  %v757_v46 = vadd.f32 %v756_v42, %v668_v35  ;;  %v669_v48 = vpop.f32.mrf.mxu1  ;;  %v581_v31 = vadd.f32 %v3161_v23, %v580_v47  ;;  %v1207_v35 = vand.u32 2147483647, %v3151_v40 }
 0x12c   :  { %v1210_v49 = vor.u32 1.1754944e-38, %v1209_v37 }
 0x12d   :  { %v846_v52 = vadd.f32 %v845_v54, %v757_v46  ;;  %v1186_v53 = vmul.f32 %v2634_v39, %v1185_v45  ;;  %v670_v56 = vadd.f32 %v669_v48, %v581_v31  ;;  %vm1208_vm5 = vcmp.eq.f32.partialorder %v1207_v35, 8.507059e+37 }
 0x12f   :  { %v2636_v58 = vpop.eup %2635  ;;  %v2363_v59 = vmul.f32 -1.442695, %v846_v52  ;;  %v1187_v61 = vadd.f32 %v2634_v39, %v1186_v53 }
 0x130   :  { %v3178_v62 = vpop.eup %2637  ;;  %v3180_v63 = vadd.f32 1.0, %v2636_v58 }
 0x131   :  { %v1199_v25 = vmul.f32 %v3178_v62, %v3151_v40  ;;  %2639 = vpow2.f32 %v2363_v59  ;;  %v1191_v7 = vsel %vm1190_vm14, %v2634_v39, %v1187_v61  ;;  %vm1204_vm1 = vweird.f32 %v3178_v62 }
 0x132   :  { %2641 = vrcp.f32 %v3180_v63  ;;  %v758_v8 = vpop.f32.mrf.mxu2  ;;  %v1196_v3 = vsel %vm1193_vm15, %v1195_v43, %v1191_v7  ;;  %v583_v9 = vpop.f32.mrf.mxu0  ;;  %v1224_v28 = vand.u32 2147483648, %v3180_v63  ;;  %v1222_v41 = vand.u32 2147483647, %v3180_v63  ;;  %vm3207_vm3 = vmor %vm1203_vm0, %vm1204_vm1 }
 0x133   :  { %v847_v0 = vpop.f32.mrf.mxu3  ;;  %v1200_v32 = vsub.f32 1.0, %v1199_v25  ;;  %v759_v4 = vadd.f32 %v758_v8, %v670_v56  ;;  %v672_v29 = vpop.f32.mrf.mxu1  ;;  %v3185_v5 = vpack.c.bf16 %v1196_v3, %v1181_v1  ;;  %v584_v10 = vadd.f32 %v3161_v23, %v583_v9 }
 0x134   :  { %vm1218_vm4 = vweird.f32 %v3180_v63  ;;  %v1225_v40 = vor.u32 1.1754944e-38, %v1224_v28  ;;  %vm1223_vm7 = vcmp.eq.f32.partialorder %v1222_v41, 8.507059e+37 }
 0x135   :  { %v848_v11 = vadd.f32 %v847_v0, %v759_v4  ;;  %v673_v6 = vadd.f32 %v672_v29, %v584_v10  ;;  %1724 = vmatmul.bf16.vlgmr.msrb.gmra.mxu0 %v2949_v17  ;;  %v1201_v44 = vmul.f32 %v3178_v62, %v1200_v32 }
 0x136   :  { %1813 = vmatmul.bf16.vlgmr.msrb.gmra.mxu1 %v2949_v17 }
 0x137   :  { %v2640_v12 = vpop.eup %2639  ;;  %v2364_v33 = vmul.f32 -1.442695, %v848_v11  ;;  %1902 = vmatmul.bf16.vlgmr.msrb.gmra.mxu2 %v2949_v17 }
 0x138   :  { %1991 = vmatmul.bf16.vlgmr.msrb.gmra.mxu3 %v2949_v17  ;;  %v2642_v13 = vpop.eup %2641  ;;  %v3193_v14 = vadd.f32 1.0, %v2640_v12  ;;  %v1202_v17 = vadd.f32 %v3178_v62, %v1201_v44 }
 0x139   :  { %v1214_v15 = vmul.f32 %v2642_v13, %v3180_v63  ;;  %2643 = vpow2.f32 %v2364_v33  ;;  %vm1219_vm2 = vweird.f32 %v2642_v13 }
 0x13a   :  { %2645 = vrcp.f32 %v3193_v14  ;;  %v761_v18 = vpop.f32.mrf.mxu2  ;;  %v585_v26 = vpop.f32.mrf.mxu0  ;;  %v1206_v47 = vsel %vm3207_vm3, %v3178_v62, %v1202_v17  ;;  %vm1220_vm6 = vmor %vm1218_vm4, %vm1219_vm2  ;;  %vm1233_vm8 = vweird.f32 %v3193_v14  ;;  %v1239_v12 = vand.u32 2147483648, %v3193_v14 }
 0x13b   :  { %v850_v20 = vpop.f32.mrf.mxu3  ;;  %v1215_v21 = vsub.f32 1.0, %v1214_v15  ;;  %v762_v24 = vadd.f32 %v761_v18, %v673_v6  ;;  %v674_v30 = vpop.f32.mrf.mxu1  ;;  %v586_v34 = vadd.f32 %v3161_v23, %v585_v26  ;;  %v1211_v55 = vsel %vm1208_vm5, %v1210_v49, %v1206_v47 }
 0x13c   :  { %v1237_v6 = vand.u32 2147483647, %v3193_v14  ;;  %v1240_v35 = vor.u32 1.1754944e-38, %v1239_v12 }
 0x13d   :  { %v851_v38 = vadd.f32 %v850_v20, %v762_v24  ;;  %v1216_v39 = vmul.f32 %v2642_v13, %v1215_v21  ;;  %v675_v42 = vadd.f32 %v674_v30, %v586_v34 }
 0x13e   :  { %vm1238_vm13 = vcmp.eq.f32.partialorder %v1237_v6, 8.507059e+37 }
 0x13f   :  { %v2644_v45 = vpop.eup %2643  ;;  %v2365_v46 = vmul.f32 -1.442695, %v851_v38  ;;  %v1217_v48 = vadd.f32 %v2642_v13, %v1216_v39 }
 0x140   :  { %v3215_v22 = vpop.eup %2645  ;;  %v3217_v31 = vadd.f32 1.0, %v2644_v45 }
 0x141   :  { %v1229_v50 = vmul.f32 %v3215_v22, %v3193_v14  ;;  %2647 = vpow2.f32 %v2365_v46  ;;  %v1221_v51 = vsel %vm1220_vm6, %v2642_v13, %v1217_v48  ;;  %vm1234_vm9 = vweird.f32 %v3215_v22 }
 0x142   :  { %2649 = vrcp.f32 %v3217_v31  ;;  %v763_v52 = vpop.f32.mrf.mxu2  ;;  %v1226_v56 = vsel %vm1223_vm7, %v1225_v40, %v1221_v51  ;;  %v588_v59 = vpop.f32.mrf.mxu0  ;;  %v1254_v33 = vand.u32 2147483648, %v3217_v31  ;;  %v1252_v15 = vand.u32 2147483647, %v3217_v31  ;;  %vm3244_vm11 = vmor %vm1233_vm8, %vm1234_vm9 }
 0x143   :  { %v852_v53 = vpop.f32.mrf.mxu3  ;;  %v1230_v57 = vsub.f32 1.0, %v1229_v50  ;;  %v764_v58 = vadd.f32 %v763_v52, %v675_v42  ;;  %v677_v60 = vpop.f32.mrf.mxu1  ;;  %v3222_v61 = vpack.c.bf16 %v1226_v56, %v1211_v55  ;;  %v589_v62 = vadd.f32 %v3161_v23, %v588_v59 }
 0x144   :  { %vm1248_vm12 = vweird.f32 %v3217_v31  ;;  %v1255_v14 = vor.u32 1.1754944e-38, %v1254_v33  ;;  %vm1253_vm15 = vcmp.eq.f32.partialorder %v1252_v15, 8.507059e+37 }
 0x145   :  { %v853_v63 = vadd.f32 %v852_v53, %v764_v58  ;;  %v678_v2 = vadd.f32 %v677_v60, %v589_v62  ;;  %1729 = vmatmul.bf16.gmra.mxu0 %v3002_v19  ;;  %v1231_v7 = vmul.f32 %v3215_v22, %v1230_v57 }
 0x146   :  { %1818 = vmatmul.bf16.gmra.mxu1 %v3002_v19 }
 0x147   :  { %v2648_v43 = vpop.eup %2647  ;;  %v2366_v25 = vmul.f32 -1.442695, %v853_v63  ;;  %1907 = vmatmul.bf16.gmra.mxu2 %v3002_v19 }
 0x148   :  { %1996 = vmatmul.bf16.gmra.mxu3 %v3002_v19  ;;  %v2650_v8 = vpop.eup %2649  ;;  %v3230_v0 = vadd.f32 1.0, %v2648_v43  ;;  %v1232_v19 = vadd.f32 %v3215_v22, %v1231_v7 }
 0x149   :  { %v1244_v1 = vmul.f32 %v2650_v8, %v3217_v31  ;;  %2651 = vpow2.f32 %v2366_v25  ;;  %vm1249_vm10 = vweird.f32 %v2650_v8 }
 0x14a   :  { %2653 = vrcp.f32 %v3230_v0  ;;  %v766_v3 = vpop.f32.mrf.mxu2  ;;  %v590_v29 = vpop.f32.mrf.mxu0  ;;  %v1236_v26 = vsel %vm3244_vm11, %v3215_v22, %v1232_v19  ;;  %vm1250_vm14 = vmor %vm1248_vm12, %vm1249_vm10  ;;  %vm1263_vm0 = vweird.f32 %v3230_v0  ;;  %v1269_v43 = vand.u32 2147483648, %v3230_v0 }
 0x14b   :  { %v855_v32 = vpop.f32.mrf.mxu3  ;;  %v1245_v4 = vsub.f32 1.0, %v1244_v1  ;;  %v767_v9 = vadd.f32 %v766_v3, %v678_v2  ;;  %v679_v10 = vpop.f32.mrf.mxu1  ;;  %v591_v11 = vadd.f32 %v3161_v23, %v590_v29  ;;  %v1241_v41 = vsel %vm1238_vm13, %v1240_v35, %v1236_v26 }
 0x14c   :  { %v1267_v2 = vand.u32 2147483647, %v3230_v0  ;;  %v1270_v6 = vor.u32 1.1754944e-38, %v1269_v43 }
 0x14d   :  { %v856_v44 = vadd.f32 %v855_v32, %v767_v9  ;;  %v1246_v13 = vmul.f32 %v2650_v8, %v1245_v4  ;;  %v680_v18 = vadd.f32 %v679_v10, %v591_v11 }
 0x14e   :  { %vm1268_vm5 = vcmp.eq.f32.partialorder %v1267_v2, 8.507059e+37 }
 0x14f   :  { %v2652_v21 = vpop.eup %2651  ;;  %v2367_v24 = vmul.f32 -1.442695, %v856_v44  ;;  %v1247_v30 = vadd.f32 %v2650_v8, %v1246_v13 }
 0x150   :  { %v3252_v17 = vpop.eup %2653  ;;  %v3254_v34 = vadd.f32 1.0, %v2652_v21 }
 0x151   :  { %v1259_v37 = vmul.f32 %v3252_v17, %v3230_v0  ;;  %2655 = vpow2.f32 %v2367_v24  ;;  %v1251_v28 = vsel %vm1250_vm14, %v2650_v8, %v1247_v30  ;;  %vm1264_vm1 = vweird.f32 %v3252_v17 }
 0x152   :  { %2657 = vrcp.f32 %v3254_v34  ;;  %v768_v38 = vpop.f32.mrf.mxu2  ;;  %v1256_v42 = vsel %vm1253_vm15, %v1255_v14, %v1251_v28  ;;  %v593_v46 = vpop.f32.mrf.mxu0  ;;  %v1284_v25 = vand.u32 2147483648, %v3254_v34  ;;  %v1282_v1 = vand.u32 2147483647, %v3254_v34  ;;  %vm3281_vm3 = vmor %vm1263_vm0, %vm1264_vm1 }
 0x153   :  { %v857_v39 = vpop.f32.mrf.mxu3  ;;  %v1260_v54 = vsub.f32 1.0, %v1259_v37  ;;  %v769_v45 = vadd.f32 %v768_v38, %v680_v18  ;;  %v682_v47 = vpop.f32.mrf.mxu1  ;;  %v3259_v48 = vpack.c.bf16 %v1256_v42, %v1241_v41  ;;  %v594_v22 = vadd.f32 %v3161_v23, %v593_v46 }
 0x154   :  { %vm1278_vm4 = vweird.f32 %v3254_v34  ;;  %v1285_v0 = vor.u32 1.1754944e-38, %v1284_v25  ;;  %vm1283_vm7 = vcmp.eq.f32.partialorder %v1282_v1, 8.507059e+37 }
 0x155   :  { %v858_v31 = vadd.f32 %v857_v39, %v769_v45  ;;  %v683_v49 = vadd.f32 %v682_v47, %v594_v22  ;;  %1734 = vmatmul.bf16.gmra.mxu0 %v3036_v16  ;;  %v1261_v51 = vmul.f32 %v3252_v17, %v1260_v54 }
 0x156   :  { %1823 = vmatmul.bf16.gmra.mxu1 %v3036_v16 }
 0x157   :  { %v2656_v40 = vpop.eup %2655  ;;  %v2368_v50 = vmul.f32 -1.442695, %v858_v31  ;;  %1912 = vmatmul.bf16.gmra.mxu2 %v3036_v16 }
 0x158   :  { %2001 = vmatmul.bf16.gmra.mxu3 %v3036_v16  ;;  %v2658_v52 = vpop.eup %2657  ;;  %v3267_v53 = vadd.f32 1.0, %v2656_v40  ;;  %v1262_v16 = vadd.f32 %v3252_v17, %v1261_v51 }
 0x159   :  { %v1274_v55 = vmul.f32 %v2658_v52, %v3254_v34  ;;  %2659 = vpow2.f32 %v2368_v50  ;;  %vm1279_vm2 = vweird.f32 %v2658_v52 }
 0x15a   :  { %2661 = vrcp.f32 %v3267_v53  ;;  %v771_v56 = vpop.f32.mrf.mxu2  ;;  %v595_v60 = vpop.f32.mrf.mxu0  ;;  %v1266_v29 = vsel %vm3281_vm3, %v3252_v17, %v1262_v16  ;;  %vm1280_vm6 = vmor %vm1278_vm4, %vm1279_vm2  ;;  %vm1293_vm8 = vweird.f32 %v3267_v53  ;;  %v1299_v40 = vand.u32 2147483648, %v3267_v53 }
 0x15b   :  { %v860_v57 = vpop.f32.mrf.mxu3  ;;  %v1275_v58 = vsub.f32 1.0, %v1274_v55  ;;  %v772_v59 = vadd.f32 %v771_v56, %v683_v49  ;;  %v684_v62 = vpop.f32.mrf.mxu1  ;;  %v596_v63 = vadd.f32 %v3161_v23, %v595_v60  ;;  %v1271_v15 = vsel %vm1268_vm5, %v1270_v6, %v1266_v29 }
 0x15c   :  { %v1297_v49 = vand.u32 2147483647, %v3267_v53  ;;  %v1300_v2 = vor.u32 1.1754944e-38, %v1299_v40 }
 0x15d   :  { %v861_v7 = vadd.f32 %v860_v57, %v772_v59  ;;  %v1276_v8 = vmul.f32 %v2658_v52, %v1275_v58  ;;  %v685_v3 = vadd.f32 %v684_v62, %v596_v63 }
 0x15e   :  { %vm1298_vm13 = vcmp.eq.f32.partialorder %v1297_v49, 8.507059e+37 }
 0x15f   :  { %v2660_v4 = vpop.eup %2659  ;;  %v2369_v9 = vmul.f32 -1.442695, %v861_v7  ;;  %v1277_v10 = vadd.f32 %v2658_v52, %v1276_v8 }
 0x160   :  { %v3289_v19 = vpop.eup %2661  ;;  %v3291_v11 = vadd.f32 1.0, %v2660_v4 }
 0x161   :  { %v1289_v12 = vmul.f32 %v3289_v19, %v3267_v53  ;;  %2663 = vpow2.f32 %v2369_v9  ;;  %v1281_v33 = vsel %vm1280_vm6, %v2658_v52, %v1277_v10  ;;  %vm1294_vm9 = vweird.f32 %v3289_v19 }
 0x162   :  { %2665 = vrcp.f32 %v3291_v11  ;;  %v773_v44 = vpop.f32.mrf.mxu2  ;;  %v1286_v18 = vsel %vm1283_vm7, %v1285_v0, %v1281_v33  ;;  %v598_v24 = vpop.f32.mrf.mxu0  ;;  %v1314_v50 = vand.u32 2147483648, %v3291_v11  ;;  %v1312_v55 = vand.u32 2147483647, %v3291_v11  ;;  %vm3318_vm11 = vmor %vm1293_vm8, %vm1294_vm9 }
 0x163   :  { %v862_v13 = vpop.f32.mrf.mxu3  ;;  %v1290_v20 = vsub.f32 1.0, %v1289_v12  ;;  %v774_v21 = vadd.f32 %v773_v44, %v685_v3  ;;  %v687_v26 = vpop.f32.mrf.mxu1  ;;  %v3296_v30 = vpack.c.bf16 %v1286_v18, %v1271_v15  ;;  %v599_v17 = vadd.f32 %v3161_v23, %v598_v24 }
 0x164   :  { %vm1308_vm12 = vweird.f32 %v3291_v11  ;;  %v1315_v53 = vor.u32 1.1754944e-38, %v1314_v50  ;;  %vm1313_vm15 = vcmp.eq.f32.partialorder %v1312_v55, 8.507059e+37 }
 0x165   :  { %v863_v34 = vadd.f32 %v862_v13, %v774_v21  ;;  %v688_v35 = vadd.f32 %v687_v26, %v599_v17  ;;  %1739 = vmatmul.bf16.gmra.mxu0 %v3110_v36  ;;  %v1291_v28 = vmul.f32 %v3289_v19, %v1290_v20 }
 0x166   :  { %1828 = vmatmul.bf16.gmra.mxu1 %v3110_v36 }
 0x167   :  { %v2664_v14 = vpop.eup %2663  ;;  %v2370_v37 = vmul.f32 -1.442695, %v863_v34  ;;  %1917 = vmatmul.bf16.gmra.mxu2 %v3110_v36 }
 0x168   :  { %2006 = vmatmul.bf16.gmra.mxu3 %v3110_v36  ;;  %v2666_v38 = vpop.eup %2665  ;;  %v3304_v39 = vadd.f32 1.0, %v2664_v14  ;;  %v1292_v36 = vadd.f32 %v3289_v19, %v1291_v28 }
 0x169   :  { %v1304_v41 = vmul.f32 %v2666_v38, %v3291_v11  ;;  %2667 = vpow2.f32 %v2370_v37  ;;  %vm1309_vm10 = vweird.f32 %v2666_v38 }
 0x16a   :  { %2669 = vrcp.f32 %v3304_v39  ;;  %v776_v42 = vpop.f32.mrf.mxu2  ;;  %v600_v47 = vpop.f32.mrf.mxu0  ;;  %v1296_v60 = vsel %vm3318_vm11, %v3289_v19, %v1292_v36  ;;  %vm1310_vm14 = vmor %vm1308_vm12, %vm1309_vm10  ;;  %vm1323_vm0 = vweird.f32 %v3304_v39  ;;  %v1329_v14 = vand.u32 2147483648, %v3304_v39 }
 0x16b   :  { %v865_v54 = vpop.f32.mrf.mxu3  ;;  %v1305_v45 = vsub.f32 1.0, %v1304_v41  ;;  %v777_v46 = vadd.f32 %v776_v42, %v688_v35  ;;  %v689_v22 = vpop.f32.mrf.mxu1  ;;  %v601_v31 = vadd.f32 %v3161_v23, %v600_v47  ;;  %v1301_v1 = vsel %vm1298_vm13, %v1300_v2, %v1296_v60 }
 0x16c   :  { %v1327_v35 = vand.u32 2147483647, %v3304_v39  ;;  %v1330_v49 = vor.u32 1.1754944e-38, %v1329_v14 }
 0x16d   :  { %v866_v51 = vadd.f32 %v865_v54, %v777_v46  ;;  %v1306_v52 = vmul.f32 %v2666_v38, %v1305_v45  ;;  %v690_v56 = vadd.f32 %v689_v22, %v601_v31 }
 0x16e   :  { %vm1328_vm5 = vcmp.eq.f32.partialorder %v1327_v35, 8.507059e+37 }
 0x16f   :  { %v2668_v58 = vpop.eup %2667  ;;  %v2371_v59 = vmul.f32 -1.442695, %v866_v51  ;;  %v1307_v62 = vadd.f32 %v2666_v38, %v1306_v52 }
 0x170   :  { %v3326_v16 = vpop.eup %2669  ;;  %v3328_v63 = vadd.f32 1.0, %v2668_v58 }
 0x171   :  { %v1319_v43 = vmul.f32 %v3326_v16, %v3304_v39  ;;  %2671 = vpow2.f32 %v2371_v59  ;;  %v1311_v25 = vsel %vm1310_vm14, %v2666_v38, %v1307_v62  ;;  %vm1324_vm1 = vweird.f32 %v3326_v16 }
 0x172   :  { %2673 = vrcp.f32 %v3328_v63  ;;  %v778_v7 = vpop.f32.mrf.mxu2  ;;  %v1316_v3 = vsel %vm1313_vm15, %v1315_v53, %v1311_v25  ;;  %v603_v9 = vpop.f32.mrf.mxu0  ;;  %v1344_v37 = vand.u32 2147483648, %v3328_v63  ;;  %v1342_v41 = vand.u32 2147483647, %v3328_v63  ;;  %vm3355_vm3 = vmor %vm1323_vm0, %vm1324_vm1 }
 0x173   :  { %v867_v8 = vpop.f32.mrf.mxu3  ;;  %v1320_v32 = vsub.f32 1.0, %v1319_v43  ;;  %v779_v4 = vadd.f32 %v778_v7, %v690_v56  ;;  %v692_v29 = vpop.f32.mrf.mxu1  ;;  %v3333_v10 = vpack.c.bf16 %v1316_v3, %v1301_v1  ;;  %v604_v19 = vadd.f32 %v3161_v23, %v603_v9 }
 0x174   :  { %vm1338_vm4 = vweird.f32 %v3328_v63  ;;  %v1345_v39 = vor.u32 1.1754944e-38, %v1344_v37  ;;  %vm1343_vm7 = vcmp.eq.f32.partialorder %v1342_v41, 8.507059e+37 }
 0x175   :  { %v868_v11 = vadd.f32 %v867_v8, %v779_v4  ;;  %v693_v6 = vadd.f32 %v692_v29, %v604_v19  ;;  %1744 = vmatmul.bf16.gmra.mxu0 %v3147_v27  ;;  %v1321_v33 = vmul.f32 %v3326_v16, %v1320_v32 }
 0x176   :  { %1833 = vmatmul.bf16.gmra.mxu1 %v3147_v27 }
 0x177   :  { %v2672_v0 = vpop.eup %2671  ;;  %v2372_v12 = vmul.f32 -1.442695, %v868_v11  ;;  %1922 = vmatmul.bf16.gmra.mxu2 %v3147_v27 }
 0x178   :  { %2011 = vmatmul.bf16.gmra.mxu3 %v3147_v27  ;;  %v2674_v44 = vpop.eup %2673  ;;  %v3341_v13 = vadd.f32 1.0, %v2672_v0  ;;  %v1322_v27 = vadd.f32 %v3326_v16, %v1321_v33 }
 0x179   :  { %v1334_v15 = vmul.f32 %v2674_v44, %v3328_v63  ;;  %2675 = vpow2.f32 %v2372_v12  ;;  %vm1339_vm2 = vweird.f32 %v2674_v44 }
 0x17a   :  { %2677 = vrcp.f32 %v3341_v13  ;;  %v781_v18 = vpop.f32.mrf.mxu2  ;;  %v605_v26 = vpop.f32.mrf.mxu0  ;;  %v1326_v47 = vsel %vm3355_vm3, %v3326_v16, %v1322_v27  ;;  %vm1340_vm6 = vmor %vm1338_vm4, %vm1339_vm2  ;;  %vm1353_vm8 = vweird.f32 %v3341_v13  ;;  %v1359_v0 = vand.u32 2147483648, %v3341_v13 }
 0x17b   :  { %v870_v20 = vpop.f32.mrf.mxu3  ;;  %v1335_v21 = vsub.f32 1.0, %v1334_v15  ;;  %v782_v24 = vadd.f32 %v781_v18, %v693_v6  ;;  %v694_v17 = vpop.f32.mrf.mxu1  ;;  %v606_v34 = vadd.f32 %v3161_v23, %v605_v26  ;;  %v1331_v55 = vsel %vm1328_vm5, %v1330_v49, %v1326_v47 }
 0x17c   :  { %v1357_v6 = vand.u32 2147483647, %v3341_v13  ;;  %v1360_v35 = vor.u32 1.1754944e-38, %v1359_v0 }
 0x17d   :  { %v871_v28 = vadd.f32 %v870_v20, %v782_v24  ;;  %v1336_v38 = vmul.f32 %v2674_v44, %v1335_v21  ;;  %v695_v42 = vadd.f32 %v694_v17, %v606_v34 }
 0x17e   :  { %vm1358_vm13 = vcmp.eq.f32.partialorder %v1357_v6, 8.507059e+37 }
 0x17f   :  { %v2676_v45 = vpop.eup %2675  ;;  %v2373_v46 = vmul.f32 -1.442695, %v871_v28  ;;  %v1337_v22 = vadd.f32 %v2674_v44, %v1336_v38 }
 0x180   :  { %v3363_v36 = vpop.eup %2677  ;;  %v3365_v31 = vadd.f32 1.0, %v2676_v45 }
 0x181   :  { %v1349_v40 = vmul.f32 %v3363_v36, %v3341_v13  ;;  %2679 = vpow2.f32 %v2373_v46  ;;  %v1341_v50 = vsel %vm1340_vm6, %v2674_v44, %v1337_v22  ;;  %vm1354_vm9 = vweird.f32 %v3363_v36 }
 0x182   :  { %2681 = vrcp.f32 %v3365_v31  ;;  %v783_v51 = vpop.f32.mrf.mxu2  ;;  %v1346_v56 = vsel %vm1343_vm7, %v1345_v39, %v1341_v50  ;;  %v608_v59 = vpop.f32.mrf.mxu0  ;;  %v1374_v12 = vand.u32 2147483648, %v3365_v31  ;;  %v1372_v15 = vand.u32 2147483647, %v3365_v31  ;;  %vm3392_vm11 = vmor %vm1353_vm8, %vm1354_vm9 }
 0x183   :  { %v872_v52 = vpop.f32.mrf.mxu3  ;;  %v1350_v57 = vsub.f32 1.0, %v1349_v40  ;;  %v784_v58 = vadd.f32 %v783_v51, %v695_v42  ;;  %v697_v60 = vpop.f32.mrf.mxu1  ;;  %v3370_v62 = vpack.c.bf16 %v1346_v56, %v1331_v55  ;;  %v609_v16 = vadd.f32 %v3161_v23, %v608_v59 }
 0x184   :  { %vm1368_vm12 = vweird.f32 %v3365_v31  ;;  %v1375_v13 = vor.u32 1.1754944e-38, %v1374_v12  ;;  %vm1373_vm15 = vcmp.eq.f32.partialorder %v1372_v15, 8.507059e+37 }
 0x185   :  { %v873_v63 = vadd.f32 %v872_v52, %v784_v58  ;;  %v698_v2 = vadd.f32 %v697_v60, %v609_v16  ;;  %1749 = vmatmul.bf16.gmra.mxu0 %v3185_v5  ;;  %v1351_v25 = vmul.f32 %v3363_v36, %v1350_v57 }
 0x186   :  { %1838 = vmatmul.bf16.gmra.mxu1 %v3185_v5 }
 0x187   :  { %v2680_v53 = vpop.eup %2679  ;;  %v2374_v43 = vmul.f32 -1.442695, %v873_v63  ;;  %1927 = vmatmul.bf16.gmra.mxu2 %v3185_v5 }
 0x188   :  { %2016 = vmatmul.bf16.gmra.mxu3 %v3185_v5  ;;  %v2682_v7 = vpop.eup %2681  ;;  %v3378_v8 = vadd.f32 1.0, %v2680_v53  ;;  %v1352_v5 = vadd.f32 %v3363_v36, %v1351_v25 }
 0x189   :  { %v1364_v1 = vmul.f32 %v2682_v7, %v3365_v31  ;;  %2683 = vpow2.f32 %v2374_v43  ;;  %vm1369_vm10 = vweird.f32 %v2682_v7 }
 0x18a   :  { %2685 = vrcp.f32 %v3378_v8  ;;  %v786_v3 = vpop.f32.mrf.mxu2  ;;  %v610_v29 = vpop.f32.mrf.mxu0  ;;  %v1356_v26 = vsel %vm3392_vm11, %v3363_v36, %v1352_v5  ;;  %vm1370_vm14 = vmor %vm1368_vm12, %vm1369_vm10  ;;  %vm1383_vm0 = vweird.f32 %v3378_v8  ;;  %v1389_v53 = vand.u32 2147483648, %v3378_v8 }
 0x18b   :  { %v875_v32 = vpop.f32.mrf.mxu3  ;;  %v1365_v4 = vsub.f32 1.0, %v1364_v1  ;;  %v787_v9 = vadd.f32 %v786_v3, %v698_v2  ;;  %v699_v19 = vpop.f32.mrf.mxu1  ;;  %v611_v11 = vadd.f32 %v3161_v23, %v610_v29  ;;  %v1361_v41 = vsel %vm1358_vm13, %v1360_v35, %v1356_v26 }
 0x18c   :  { %v1387_v2 = vand.u32 2147483647, %v3378_v8  ;;  %v1390_v6 = vor.u32 1.1754944e-38, %v1389_v53 }
 0x18d   :  { %v876_v33 = vadd.f32 %v875_v32, %v787_v9  ;;  %v1366_v44 = vmul.f32 %v2682_v7, %v1365_v4  ;;  %v700_v18 = vadd.f32 %v699_v19, %v611_v11 }
 0x18e   :  { %vm1388_vm5 = vcmp.eq.f32.partialorder %v1387_v2, 8.507059e+37 }
 0x18f   :  { %v2684_v21 = vpop.eup %2683  ;;  %v2375_v24 = vmul.f32 -1.442695, %v876_v33  ;;  %v1367_v17 = vadd.f32 %v2682_v7, %v1366_v44 }
 0x190   :  { %v3400_v27 = vpop.eup %2685  ;;  %v3402_v34 = vadd.f32 1.0, %v2684_v21 }
 0x191   :  { %v1379_v14 = vmul.f32 %v3400_v27, %v3378_v8  ;;  %2687 = vpow2.f32 %v2375_v24  ;;  %v1371_v37 = vsel %vm1370_vm14, %v2682_v7, %v1367_v17  ;;  %vm1384_vm1 = vweird.f32 %v3400_v27 }
 0x192   :  { %2689 = vrcp.f32 %v3402_v34  ;;  %v788_v28 = vpop.f32.mrf.mxu2  ;;  %v1376_v42 = vsel %vm1373_vm15, %v1375_v13, %v1371_v37  ;;  %v613_v46 = vpop.f32.mrf.mxu0  ;;  %v1404_v43 = vand.u32 2147483648, %v3402_v34  ;;  %v1402_v1 = vand.u32 2147483647, %v3402_v34  ;;  %vm3429_vm3 = vmor %vm1383_vm0, %vm1384_vm1 }
 0x193   :  { %v877_v38 = vpop.f32.mrf.mxu3  ;;  %v1380_v54 = vsub.f32 1.0, %v1379_v14  ;;  %v789_v45 = vadd.f32 %v788_v28, %v700_v18  ;;  %v702_v47 = vpop.f32.mrf.mxu1  ;;  %v3407_v22 = vpack.c.bf16 %v1376_v42, %v1361_v41  ;;  %v614_v36 = vadd.f32 %v3161_v23, %v613_v46 }
 0x194   :  { %vm1398_vm4 = vweird.f32 %v3402_v34  ;;  %v1405_v8 = vor.u32 1.1754944e-38, %v1404_v43  ;;  %vm1403_vm7 = vcmp.eq.f32.partialorder %v1402_v1, 8.507059e+37 }
 0x195   :  { %v878_v31 = vadd.f32 %v877_v38, %v789_v45  ;;  %v703_v49 = vadd.f32 %v702_v47, %v614_v36  ;;  %1754 = vmatmul.bf16.gmra.mxu0 %v3222_v61  ;;  %v1381_v50 = vmul.f32 %v3400_v27, %v1380_v54 }
 0x196   :  { %1843 = vmatmul.bf16.gmra.mxu1 %v3222_v61 }
 0x197   :  { %v2688_v39 = vpop.eup %2687  ;;  %v2376_v40 = vmul.f32 -1.442695, %v878_v31  ;;  %1932 = vmatmul.bf16.gmra.mxu2 %v3222_v61  ;;  %v1546_v31 = vld [vmem:[#allocation8] sm:$0xf] }
 0x198   :  { %2021 = vmatmul.bf16.gmra.mxu3 %v3222_v61  ;;  %v2690_v51 = vpop.eup %2689  ;;  %v3415_v52 = vadd.f32 1.0, %v2688_v39  ;;  %v1382_v61 = vadd.f32 %v3400_v27, %v1381_v50 }
 0x199   :  { %v1394_v55 = vmul.f32 %v2690_v51, %v3402_v34  ;;  %2691 = vpow2.f32 %v2376_v40  ;;  %vm1399_vm2 = vweird.f32 %v2690_v51 }
 0x19a   :  { %2693 = vrcp.f32 %v3415_v52  ;;  %v791_v56 = vpop.f32.mrf.mxu2  ;;  %v615_v60 = vpop.f32.mrf.mxu0  ;;  %v1386_v29 = vsel %vm3429_vm3, %v3400_v27, %v1382_v61  ;;  %vm1400_vm6 = vmor %vm1398_vm4, %vm1399_vm2  ;;  %vm1413_vm8 = vweird.f32 %v3415_v52  ;;  %v1417_v39 = vand.u32 2147483647, %v3415_v52 }
 0x19b   :  { %v880_v57 = vpop.f32.mrf.mxu3  ;;  %v1395_v58 = vsub.f32 1.0, %v1394_v55  ;;  %v792_v59 = vadd.f32 %v791_v56, %v703_v49  ;;  %v704_v16 = vpop.f32.mrf.mxu1  ;;  %v616_v63 = vadd.f32 %v3161_v23, %v615_v60  ;;  %v1391_v15 = vsel %vm1388_vm5, %v1390_v6, %v1386_v29 }
 0x19c   :  { %v1419_v40 = vand.u32 2147483648, %v3415_v52  ;;  %vm1418_vm13 = vcmp.eq.f32.partialorder %v1417_v39, 8.507059e+37 }
 0x19d   :  { %v881_v25 = vadd.f32 %v880_v57, %v792_v59  ;;  %v1396_v7 = vmul.f32 %v2690_v51, %v1395_v58  ;;  %v705_v3 = vadd.f32 %v704_v16, %v616_v63  ;;  %v3464_v58 = vperm.slane %v1546_v31, 0 }
 0x19e   :  { %v3466_v59 = vperm.slane %v1546_v31, 1  ;;  %v1420_v43 = vor.u32 1.1754944e-38, %v1419_v40 }
 0x19f   :  { %v2692_v4 = vpop.eup %2691  ;;  %v2377_v9 = vmul.f32 -1.442695, %v881_v25  ;;  %v1397_v19 = vadd.f32 %v2690_v51, %v1396_v7 }
 0x1a0   :  { %v3437_v5 = vpop.eup %2693  ;;  %v3439_v11 = vadd.f32 1.0, %v2692_v4 }
 0x1a1   :  { %v1409_v0 = vmul.f32 %v3437_v5, %v3415_v52  ;;  %2695 = vpow2.f32 %v2377_v9  ;;  %v1401_v12 = vsel %vm1400_vm6, %v2690_v51, %v1397_v19  ;;  %vm1414_vm9 = vweird.f32 %v3437_v5 }
 0x1a2   :  { %2697 = vrcp.f32 %v3439_v11  ;;  %v793_v33 = vpop.f32.mrf.mxu2  ;;  %v1406_v18 = vsel %vm1403_vm7, %v1405_v8, %v1401_v12  ;;  %v618_v24 = vpop.f32.mrf.mxu0  ;;  %v1434_v50 = vand.u32 2147483648, %v3439_v11  ;;  %v1432_v56 = vand.u32 2147483647, %v3439_v11  ;;  %vm3470_vm11 = vmor %vm1413_vm8, %vm1414_vm9 }
 0x1a3   :  { %v882_v44 = vpop.f32.mrf.mxu3  ;;  %v1410_v20 = vsub.f32 1.0, %v1409_v0  ;;  %v794_v21 = vadd.f32 %v793_v33, %v705_v3  ;;  %v707_v26 = vpop.f32.mrf.mxu1  ;;  %v3444_v17 = vpack.c.bf16 %v1406_v18, %v1391_v15  ;;  %v619_v27 = vadd.f32 %v3161_v23, %v618_v24 }
 0x1a4   :  { %vm1428_vm12 = vweird.f32 %v3439_v11  ;;  %v1435_v52 = vor.u32 1.1754944e-38, %v1434_v50  ;;  %vm1433_vm15 = vcmp.eq.f32.partialorder %v1432_v56, 8.507059e+37  ;;  %v3496_v15 = vperm.slane %v1546_v31, 3 }
 0x1a5   :  { %v883_v34 = vadd.f32 %v882_v44, %v794_v21  ;;  %v708_v35 = vadd.f32 %v707_v26, %v619_v27  ;;  %1759 = vmatmul.bf16.gmra.mxu0 %v3259_v48  ;;  %v1411_v37 = vmul.f32 %v3437_v5, %v1410_v20  ;;  %v3494_v44 = vperm.slane %v1546_v31, 2 }
 0x1a6   :  { %1848 = vmatmul.bf16.gmra.mxu1 %v3259_v48 }
 0x1a7   :  { %v2696_v13 = vpop.eup %2695  ;;  %v2378_v14 = vmul.f32 -1.442695, %v883_v34  ;;  %1937 = vmatmul.bf16.gmra.mxu2 %v3259_v48 }
 0x1a8   :  { %2026 = vmatmul.bf16.gmra.mxu3 %v3259_v48  ;;  %v2698_v28 = vpop.eup %2697  ;;  %v3452_v38 = vadd.f32 1.0, %v2696_v13  ;;  %v1412_v48 = vadd.f32 %v3437_v5, %v1411_v37 }
 0x1a9   :  { %v1424_v41 = vmul.f32 %v2698_v28, %v3439_v11  ;;  %2699 = vpow2.f32 %v2378_v14  ;;  %vm1429_vm10 = vweird.f32 %v2698_v28 }
 0x1aa   :  { %2701 = vrcp.f32 %v3452_v38  ;;  %v796_v42 = vpop.f32.mrf.mxu2  ;;  %v620_v47 = vpop.f32.mrf.mxu0  ;;  %v1416_v61 = vsel %vm3470_vm11, %v3437_v5, %v1412_v48  ;;  %vm1430_vm14 = vmor %vm1428_vm12, %vm1429_vm10  ;;  %vm1443_vm0 = vweird.f32 %v3452_v38 }
 0x1ab   :  { %v885_v54 = vpop.f32.mrf.mxu3  ;;  %v1425_v45 = vsub.f32 1.0, %v1424_v41  ;;  %v797_v46 = vadd.f32 %v796_v42, %v708_v35  ;;  %v709_v36 = vpop.f32.mrf.mxu1  ;;  %v621_v49 = vadd.f32 %v3161_v23, %v620_v47  ;;  %v1421_v32 = vsel %vm1418_vm13, %v1420_v43, %v1416_v61 }
 0x1ac   :  { %v1449_v42 = vand.u32 2147483648, %v3452_v38 }
 0x1ad   :  { %v886_v51 = vadd.f32 %v885_v54, %v797_v46  ;;  %v1426_v55 = vmul.f32 %v2698_v28, %v1425_v45  ;;  %v710_v57 = vadd.f32 %v709_v36, %v621_v49  ;;  %v1447_v45 = vand.u32 2147483647, %v3452_v38 }
 0x1ae   :  { %v1450_v50 = vor.u32 1.1754944e-38, %v1449_v42 }
 0x1af   :  { %v2700_v60 = vpop.eup %2699  ;;  %v2379_v16 = vmul.f32 -1.442695, %v886_v51  ;;  %v1427_v63 = vadd.f32 %v2698_v28, %v1426_v55  ;;  %vm1448_vm6 = vcmp.eq.f32.partialorder %v1447_v45, 8.507059e+37 }
 0x1b0   :  { %v3478_v2 = vpop.eup %2701  ;;  %v3480_v53 = vadd.f32 1.0, %v2700_v60 }
 0x1b1   :  { %v1439_v25 = vmul.f32 %v3478_v2, %v3452_v38  ;;  %2703 = vpow2.f32 %v2379_v16  ;;  %v1431_v7 = vsel %vm1430_vm14, %v2698_v28, %v1427_v63  ;;  %vm1444_vm1 = vweird.f32 %v3478_v2 }
 0x1b2   :  { %2705 = vrcp.f32 %v3480_v53  ;;  %v798_v1 = vpop.f32.mrf.mxu2  ;;  %v1436_v4 = vsel %vm1433_vm15, %v1435_v52, %v1431_v7  ;;  %v1725_v19 = vpop.f32.mrf.mxu0  ;;  %v1464_v54 = vand.u32 2147483648, %v3480_v53  ;;  %v1462_v47 = vand.u32 2147483647, %v3480_v53  ;;  %vm3518_vm3 = vmor %vm1443_vm0, %vm1444_vm1 }
 0x1b3   :  { %v887_v3 = vpop.f32.mrf.mxu3  ;;  %v1440_v9 = vsub.f32 1.0, %v1439_v25  ;;  %v799_v29 = vadd.f32 %v798_v1, %v710_v57  ;;  %v1814_v5 = vpop.f32.mrf.mxu1  ;;  %v3486_v11 = vpack.c.bf16 %v1436_v4, %v1421_v32  ;;  %v1726_v6 = vadd.f32 %v1725_v19, %v3464_v58 }
 0x1b4   :  { %v1815_v8 = vadd.f32 %v1814_v5, %v3466_v59  ;;  %vm1458_vm4 = vweird.f32 %v3480_v53  ;;  %v1465_v38 = vor.u32 1.1754944e-38, %v1464_v54  ;;  %vm1463_vm7 = vcmp.eq.f32.partialorder %v1462_v47, 8.507059e+37 }
 0x1b5   :  { %v888_v0 = vadd.f32 %v887_v3, %v799_v29  ;;  %2072 = vst [vmem:[#allocation10] sm:$0xff] %v1726_v6  ;;  %1764 = vmatmul.bf16.gmra.mxu0 %v3296_v30  ;;  %v1441_v18 = vmul.f32 %v3478_v2, %v1440_v9 }
 0x1b6   :  { %1853 = vmatmul.bf16.gmra.mxu1 %v3296_v30  ;;  %2073 = vst [vmem:[#allocation10 + $0x8] sm:$0xff] %v1815_v8 }
 0x1b7   :  { %v2704_v12 = vpop.eup %2703  ;;  %v2380_v33 = vmul.f32 -1.442695, %v888_v0  ;;  %1942 = vmatmul.bf16.gmra.mxu2 %v3296_v30  ;;  %v1442_v37 = vadd.f32 %v3478_v2, %v1441_v18 }
 0x1b8   :  { %2031 = vmatmul.bf16.gmra.mxu3 %v3296_v30  ;;  %v2706_v20 = vpop.eup %2705  ;;  %v3499_v21 = vadd.f32 1.0, %v2704_v12 }
 0x1b9   :  { %v1454_v24 = vmul.f32 %v2706_v20, %v3480_v53  ;;  %2707 = vpow2.f32 %v2380_v33  ;;  %vm1459_vm2 = vweird.f32 %v2706_v20  ;;  %v1446_v48 = vsel %vm3518_vm3, %v3478_v2, %v1442_v37 }
 0x1ba   :  { %2709 = vrcp.f32 %v3499_v21  ;;  %v1903_v26 = vpop.f32.mrf.mxu2  ;;  %v1727_v13 = vpop.f32.mrf.mxu0  ;;  %vm1460_vm5 = vmor %vm1458_vm4, %vm1459_vm2  ;;  %v1451_v23 = vsel %vm1448_vm6, %v1450_v50, %v1446_v48  ;;  %vm1473_vm8 = vweird.f32 %v3499_v21  ;;  %v1479_v12 = vand.u32 2147483648, %v3499_v21 }
 0x1bb   :  { %v1992_v27 = vpop.f32.mrf.mxu3  ;;  %v1455_v30 = vsub.f32 1.0, %v1454_v24  ;;  %v1904_v34 = vadd.f32 %v1903_v26, %v3494_v44  ;;  %v1816_v14 = vpop.f32.mrf.mxu1  ;;  %v1728_v28 = vadd.f32 %v1727_v13, %v3464_v58  ;;  %v1477_v18 = vand.u32 2147483647, %v3499_v21 }
 0x1bc   :  { %v1993_v35 = vadd.f32 %v1992_v27, %v3496_v15  ;;  %v1817_v41 = vadd.f32 %v1816_v14, %v3466_v59 }
 0x1bd   :  { %2074 = vst [vmem:[#allocation10 + $0x10] sm:$0xff] %v1904_v34  ;;  %v1456_v46 = vmul.f32 %v2706_v20, %v1455_v30  ;;  %v1480_v30 = vor.u32 1.1754944e-38, %v1479_v12  ;;  %vm1478_vm14 = vcmp.eq.f32.partialorder %v1477_v18, 8.507059e+37 }
 0x1be   :  { %2075 = vst [vmem:[#allocation10 + $0x18] sm:$0xff] %v1993_v35 }
 0x1bf   :  { %v2708_v31 = vpop.eup %2707  ;;  %2076 = vst [vmem:[#allocation10 + $0x20] sm:$0xff] %v1728_v28  ;;  %v1457_v49 = vadd.f32 %v2706_v20, %v1456_v46 }
 0x1c0   :  { %v3526_v39 = vpop.eup %2709  ;;  %v3528_v40 = vadd.f32 1.0, %v2708_v31  ;;  %2077 = vst [vmem:[#allocation10 + $0x28] sm:$0xff] %v1817_v41 }
 0x1c1   :  { %v1469_v51 = vmul.f32 %v3526_v39, %v3499_v21  ;;  %v1461_v55 = vsel %vm1460_vm5, %v2706_v20, %v1457_v49  ;;  %vm1474_vm9 = vweird.f32 %v3526_v39 }
 0x1c2   :  { %2711 = vrcp.f32 %v3528_v40  ;;  %v1905_v56 = vpop.f32.mrf.mxu2  ;;  %v1466_v60 = vsel %vm1463_vm7, %v1465_v38, %v1461_v55  ;;  %v1730_v2 = vpop.f32.mrf.mxu0  ;;  %v1494_v33 = vand.u32 2147483648, %v3528_v40  ;;  %v1492_v24 = vand.u32 2147483647, %v3528_v40  ;;  %vm1475_vm11 = vmor %vm1473_vm8, %vm1474_vm9 }
 0x1c3   :  { %v1994_v57 = vpop.f32.mrf.mxu3  ;;  %v1470_v16 = vsub.f32 1.0, %v1469_v51  ;;  %v1906_v61 = vadd.f32 %v1905_v56, %v3494_v44  ;;  %v1819_v53 = vpop.f32.mrf.mxu1  ;;  %v3535_v43 = vpack.c.bf16 %v1466_v60, %v1451_v23  ;;  %v1731_v52 = vadd.f32 %v1730_v2, %v3464_v58 }
 0x1c4   :  { %v1995_v63 = vadd.f32 %v1994_v57, %v3496_v15  ;;  %v1820_v25 = vadd.f32 %v1819_v53, %v3466_v59  ;;  %vm1488_vm12 = vweird.f32 %v3528_v40  ;;  %v1495_v34 = vor.u32 1.1754944e-38, %v1494_v33 }
 0x1c5   :  { %2078 = vst [vmem:[#allocation10 + $0x30] sm:$0xff] %v1906_v61  ;;  %1769 = vmatmul.bf16.gmra.mxu0 %v3333_v10  ;;  %v1471_v7 = vmul.f32 %v3526_v39, %v1470_v16  ;;  %vm1493_vm15 = vcmp.eq.f32.partialorder %v1492_v24, 8.507059e+37 }
 0x1c6   :  { %2079 = vst [vmem:[#allocation10 + $0x38] sm:$0xff] %v1995_v63  ;;  %1858 = vmatmul.bf16.gmra.mxu1 %v3333_v10 }
 0x1c7   :  { %2080 = vst [vmem:[#allocation10 + $0x40] sm:$0xff] %v1731_v52  ;;  %1947 = vmatmul.bf16.gmra.mxu2 %v3333_v10 }
 0x1c8   :  { %2036 = vmatmul.bf16.gmra.mxu3 %v3333_v10  ;;  %v2712_v1 = vpop.eup %2711  ;;  %2081 = vst [vmem:[#allocation10 + $0x48] sm:$0xff] %v1820_v25  ;;  %v1472_v10 = vadd.f32 %v3526_v39, %v1471_v7 }
 0x1c9   :  { %v1484_v3 = vmul.f32 %v2712_v1, %v3528_v40  ;;  %vm1489_vm10 = vweird.f32 %v2712_v1 }
 0x1ca   :  { %v1908_v32 = vpop.f32.mrf.mxu2  ;;  %v1732_v5 = vpop.f32.mrf.mxu0  ;;  %v1476_v26 = vsel %vm1475_vm11, %v3526_v39, %v1472_v10  ;;  %vm1490_vm13 = vmor %vm1488_vm12, %vm1489_vm10 }
 0x1cb   :  { %v1997_v4 = vpop.f32.mrf.mxu3  ;;  %v1485_v9 = vsub.f32 1.0, %v1484_v3  ;;  %v1909_v29 = vadd.f32 %v1908_v32, %v3494_v44  ;;  %v1821_v6 = vpop.f32.mrf.mxu1  ;;  %v1733_v8 = vadd.f32 %v1732_v5, %v3464_v58  ;;  %v1481_v37 = vsel %vm1478_vm14, %v1480_v30, %v1476_v26 }
 0x1cc   :  { %v1998_v19 = vadd.f32 %v1997_v4, %v3496_v15  ;;  %v1822_v0 = vadd.f32 %v1821_v6, %v3466_v59 }
 0x1cd   :  { %2082 = vst [vmem:[#allocation10 + $0x50] sm:$0xff] %v1909_v29  ;;  %v1486_v20 = vmul.f32 %v2712_v1, %v1485_v9 }
 0x1ce   :  { %2083 = vst [vmem:[#allocation10 + $0x58] sm:$0xff] %v1998_v19 }
 0x1cf   :  { %2084 = vst [vmem:[#allocation10 + $0x60] sm:$0xff] %v1733_v8  ;;  %v1487_v27 = vadd.f32 %v2712_v1, %v1486_v20 }
 0x1d0   :  { %2085 = vst [vmem:[#allocation10 + $0x68] sm:$0xff] %v1822_v0 }
 0x1d1   :  { %v1491_v35 = vsel %vm1490_vm13, %v2712_v1, %v1487_v27 }
 0x1d2   :  { %v1910_v13 = vpop.f32.mrf.mxu2  ;;  %v1496_v28 = vsel %vm1493_vm15, %v1495_v34, %v1491_v35  ;;  %v1735_v42 = vpop.f32.mrf.mxu0 }
 0x1d3   :  { %v1999_v14 = vpop.f32.mrf.mxu3  ;;  %v1911_v21 = vadd.f32 %v1910_v13, %v3494_v44  ;;  %v1824_v54 = vpop.f32.mrf.mxu1  ;;  %v3564_v45 = vpack.c.bf16 %v1496_v28, %v1481_v37  ;;  %v1736_v46 = vadd.f32 %v1735_v42, %v3464_v58 }
 0x1d4   :  { %v2000_v41 = vadd.f32 %v1999_v14, %v3496_v15  ;;  %v1825_v47 = vadd.f32 %v1824_v54, %v3466_v59 }
 0x1d5   :  { %2086 = vst [vmem:[#allocation10 + $0x70] sm:$0xff] %v1911_v21  ;;  %1774 = vmatmul.bf16.gmra.mxu0 %v3370_v62 }
 0x1d6   :  { %2087 = vst [vmem:[#allocation10 + $0x78] sm:$0xff] %v2000_v41  ;;  %1863 = vmatmul.bf16.gmra.mxu1 %v3370_v62 }
 0x1d7   :  { %2088 = vst [vmem:[#allocation10 + $0x80] sm:$0xff] %v1736_v46  ;;  %1952 = vmatmul.bf16.gmra.mxu2 %v3370_v62 }
 0x1d8   :  { %2041 = vmatmul.bf16.gmra.mxu3 %v3370_v62  ;;  %2089 = vst [vmem:[#allocation10 + $0x88] sm:$0xff] %v1825_v47 }
 0x1da   :  { %v1913_v36 = vpop.f32.mrf.mxu2  ;;  %v1737_v39 = vpop.f32.mrf.mxu0 }
 0x1db   :  { %v2002_v31 = vpop.f32.mrf.mxu3  ;;  %v1914_v48 = vadd.f32 %v1913_v36, %v3494_v44  ;;  %v1826_v40 = vpop.f32.mrf.mxu1  ;;  %v1738_v50 = vadd.f32 %v1737_v39, %v3464_v58 }
 0x1dc   :  { %v2003_v49 = vadd.f32 %v2002_v31, %v3496_v15  ;;  %v1827_v38 = vadd.f32 %v1826_v40, %v3466_v59 }
 0x1dd   :  { %2090 = vst [vmem:[#allocation10 + $0x90] sm:$0xff] %v1914_v48 }
 0x1de   :  { %2091 = vst [vmem:[#allocation10 + $0x98] sm:$0xff] %v2003_v49 }
 0x1df   :  { %2092 = vst [vmem:[#allocation10 + $0xa0] sm:$0xff] %v1738_v50 }
 0x1e0   :  { %2093 = vst [vmem:[#allocation10 + $0xa8] sm:$0xff] %v1827_v38 }
 0x1e2   :  { %v1915_v51 = vpop.f32.mrf.mxu2  ;;  %v1740_v57 = vpop.f32.mrf.mxu0 }
 0x1e3   :  { %v2004_v55 = vpop.f32.mrf.mxu3  ;;  %v1916_v62 = vadd.f32 %v1915_v51, %v3494_v44  ;;  %v1829_v23 = vpop.f32.mrf.mxu1  ;;  %v1741_v60 = vadd.f32 %v1740_v57, %v3464_v58 }
 0x1e4   :  { %v2005_v56 = vadd.f32 %v2004_v55, %v3496_v15  ;;  %v1830_v16 = vadd.f32 %v1829_v23, %v3466_v59 }
 0x1e5   :  { %2094 = vst [vmem:[#allocation10 + $0xb0] sm:$0xff] %v1916_v62  ;;  %1779 = vmatmul.bf16.gmra.mxu0 %v3407_v22 }
 0x1e6   :  { %2095 = vst [vmem:[#allocation10 + $0xb8] sm:$0xff] %v2005_v56  ;;  %1868 = vmatmul.bf16.gmra.mxu1 %v3407_v22 }
 0x1e7   :  { %2096 = vst [vmem:[#allocation10 + $0xc0] sm:$0xff] %v1741_v60  ;;  %1957 = vmatmul.bf16.gmra.mxu2 %v3407_v22 }
 0x1e8   :  { %2046 = vmatmul.bf16.gmra.mxu3 %v3407_v22  ;;  %2097 = vst [vmem:[#allocation10 + $0xc8] sm:$0xff] %v1830_v16 }
 0x1ea   :  { %v1918_v61 = vpop.f32.mrf.mxu2  ;;  %v1742_v52 = vpop.f32.mrf.mxu0 }
 0x1eb   :  { %v2007_v63 = vpop.f32.mrf.mxu3  ;;  %v1919_v2 = vadd.f32 %v1918_v61, %v3494_v44  ;;  %v1831_v25 = vpop.f32.mrf.mxu1  ;;  %v1743_v7 = vadd.f32 %v1742_v52, %v3464_v58 }
 0x1ec   :  { %v2008_v53 = vadd.f32 %v2007_v63, %v3496_v15  ;;  %v1832_v1 = vadd.f32 %v1831_v25, %v3466_v59 }
 0x1ed   :  { %2098 = vst [vmem:[#allocation10 + $0xd0] sm:$0xff] %v1919_v2 }
 0x1ee   :  { %2099 = vst [vmem:[#allocation10 + $0xd8] sm:$0xff] %v2008_v53 }
 0x1ef   :  { %2100 = vst [vmem:[#allocation10 + $0xe0] sm:$0xff] %v1743_v7 }
 0x1f0   :  { %2101 = vst [vmem:[#allocation10 + $0xe8] sm:$0xff] %v1832_v1 }
 0x1f2   :  { %v1920_v3 = vpop.f32.mrf.mxu2  ;;  %v1745_v9 = vpop.f32.mrf.mxu0 }
 0x1f3   :  { %v2009_v32 = vpop.f32.mrf.mxu3  ;;  %v1921_v22 = vadd.f32 %v1920_v3, %v3494_v44  ;;  %v1834_v29 = vpop.f32.mrf.mxu1  ;;  %v1746_v19 = vadd.f32 %v1745_v9, %v3464_v58 }
 0x1f4   :  { %v2010_v4 = vadd.f32 %v2009_v32, %v3496_v15  ;;  %v1835_v5 = vadd.f32 %v1834_v29, %v3466_v59 }
 0x1f5   :  { %2102 = vst [vmem:[#allocation10 + $0xf0] sm:$0xff] %v1921_v22  ;;  %1784 = vmatmul.bf16.gmra.mxu0 %v3444_v17 }
 0x1f6   :  { %2103 = vst [vmem:[#allocation10 + $0xf8] sm:$0xff] %v2010_v4  ;;  %1873 = vmatmul.bf16.gmra.mxu1 %v3444_v17 }
 0x1f7   :  { %2104 = vst [vmem:[#allocation10 + $0x100] sm:$0xff] %v1746_v19  ;;  %1962 = vmatmul.bf16.gmra.mxu2 %v3444_v17 }
 0x1f8   :  { %2051 = vmatmul.bf16.gmra.mxu3 %v3444_v17  ;;  %2105 = vst [vmem:[#allocation10 + $0x108] sm:$0xff] %v1835_v5 }
 0x1fa   :  { %v1923_v6 = vpop.f32.mrf.mxu2  ;;  %v1747_v12 = vpop.f32.mrf.mxu0 }
 0x1fb   :  { %v2012_v10 = vpop.f32.mrf.mxu3  ;;  %v1924_v8 = vadd.f32 %v1923_v6, %v3494_v44  ;;  %v1836_v33 = vpop.f32.mrf.mxu1  ;;  %v1748_v18 = vadd.f32 %v1747_v12, %v3464_v58 }
 0x1fc   :  { %v2013_v0 = vadd.f32 %v2012_v10, %v3496_v15  ;;  %v1837_v20 = vadd.f32 %v1836_v33, %v3466_v59 }
 0x1fd   :  { %2106 = vst [vmem:[#allocation10 + $0x110] sm:$0xff] %v1924_v8 }
 0x1fe   :  { %2107 = vst [vmem:[#allocation10 + $0x118] sm:$0xff] %v2013_v0 }
 0x1ff   :  { %2108 = vst [vmem:[#allocation10 + $0x120] sm:$0xff] %v1748_v18 }
 0x200   :  { %2109 = vst [vmem:[#allocation10 + $0x128] sm:$0xff] %v1837_v20 }
 0x202   :  { %v1925_v24 = vpop.f32.mrf.mxu2  ;;  %v1750_v30 = vpop.f32.mrf.mxu0 }
 0x203   :  { %v2014_v26 = vpop.f32.mrf.mxu3  ;;  %v1926_v17 = vadd.f32 %v1925_v24, %v3494_v44  ;;  %v1839_v34 = vpop.f32.mrf.mxu1  ;;  %v1751_v35 = vadd.f32 %v1750_v30, %v3464_v58 }
 0x204   :  { %v2015_v27 = vadd.f32 %v2014_v26, %v3496_v15  ;;  %v1840_v13 = vadd.f32 %v1839_v34, %v3466_v59 }
 0x205   :  { %2110 = vst [vmem:[#allocation10 + $0x130] sm:$0xff] %v1926_v17  ;;  %1789 = vmatmul.bf16.gmra.mxu0 %v3486_v11 }
 0x206   :  { %2111 = vst [vmem:[#allocation10 + $0x138] sm:$0xff] %v2015_v27  ;;  %1878 = vmatmul.bf16.gmra.mxu1 %v3486_v11 }
 0x207   :  { %2112 = vst [vmem:[#allocation10 + $0x140] sm:$0xff] %v1751_v35  ;;  %1967 = vmatmul.bf16.gmra.mxu2 %v3486_v11 }
 0x208   :  { %2056 = vmatmul.bf16.gmra.mxu3 %v3486_v11  ;;  %2113 = vst [vmem:[#allocation10 + $0x148] sm:$0xff] %v1840_v13 }
 0x20a   :  { %v1928_v14 = vpop.f32.mrf.mxu2  ;;  %v1752_v41 = vpop.f32.mrf.mxu0 }
 0x20b   :  { %v2017_v37 = vpop.f32.mrf.mxu3  ;;  %v1929_v28 = vadd.f32 %v1928_v14, %v3494_v44  ;;  %v1841_v42 = vpop.f32.mrf.mxu1  ;;  %v1753_v54 = vadd.f32 %v1752_v41, %v3464_v58 }
 0x20c   :  { %v2018_v21 = vadd.f32 %v2017_v37, %v3496_v15  ;;  %v1842_v46 = vadd.f32 %v1841_v42, %v3466_v59 }
 0x20d   :  { %2114 = vst [vmem:[#allocation10 + $0x150] sm:$0xff] %v1929_v28 }
 0x20e   :  { %2115 = vst [vmem:[#allocation10 + $0x158] sm:$0xff] %v2018_v21 }
 0x20f   :  { %2116 = vst [vmem:[#allocation10 + $0x160] sm:$0xff] %v1753_v54 }
 0x210   :  { %2117 = vst [vmem:[#allocation10 + $0x168] sm:$0xff] %v1842_v46 }
 0x212   :  { %v1930_v47 = vpop.f32.mrf.mxu2  ;;  %v1755_v48 = vpop.f32.mrf.mxu0 }
 0x213   :  { %v2019_v36 = vpop.f32.mrf.mxu3  ;;  %v1931_v11 = vadd.f32 %v1930_v47, %v3494_v44  ;;  %v1844_v49 = vpop.f32.mrf.mxu1  ;;  %v1756_v39 = vadd.f32 %v1755_v48, %v3464_v58 }
 0x214   :  { %v2020_v31 = vadd.f32 %v2019_v36, %v3496_v15  ;;  %v1845_v40 = vadd.f32 %v1844_v49, %v3466_v59 }
 0x215   :  { %2118 = vst [vmem:[#allocation10 + $0x170] sm:$0xff] %v1931_v11  ;;  %1794 = vmatmul.bf16.gmra.mxu0 %v3535_v43 }
 0x216   :  { %2119 = vst [vmem:[#allocation10 + $0x178] sm:$0xff] %v2020_v31  ;;  %1883 = vmatmul.bf16.gmra.mxu1 %v3535_v43 }
 0x217   :  { %2120 = vst [vmem:[#allocation10 + $0x180] sm:$0xff] %v1756_v39  ;;  %1972 = vmatmul.bf16.gmra.mxu2 %v3535_v43 }
 0x218   :  { %2061 = vmatmul.bf16.gmra.mxu3 %v3535_v43  ;;  %2121 = vst [vmem:[#allocation10 + $0x188] sm:$0xff] %v1845_v40 }
 0x21a   :  { %v1933_v50 = vpop.f32.mrf.mxu2  ;;  %v1757_v62 = vpop.f32.mrf.mxu0 }
 0x21b   :  { %v2022_v38 = vpop.f32.mrf.mxu3  ;;  %v1934_v51 = vadd.f32 %v1933_v50, %v3494_v44  ;;  %v1846_v56 = vpop.f32.mrf.mxu1  ;;  %v1758_v57 = vadd.f32 %v1757_v62, %v3464_v58 }
 0x21c   :  { %v2023_v55 = vadd.f32 %v2022_v38, %v3496_v15  ;;  %v1847_v23 = vadd.f32 %v1846_v56, %v3466_v59 }
 0x21d   :  { %2122 = vst [vmem:[#allocation10 + $0x190] sm:$0xff] %v1934_v51 }
 0x21e   :  { %2123 = vst [vmem:[#allocation10 + $0x198] sm:$0xff] %v2023_v55 }
 0x21f   :  { %2124 = vst [vmem:[#allocation10 + $0x1a0] sm:$0xff] %v1758_v57 }
 0x220   :  { %2125 = vst [vmem:[#allocation10 + $0x1a8] sm:$0xff] %v1847_v23 }
 0x222   :  { %v1935_v60 = vpop.f32.mrf.mxu2  ;;  %v1760_v63 = vpop.f32.mrf.mxu0 }
 0x223   :  { %v2024_v16 = vpop.f32.mrf.mxu3  ;;  %v1936_v43 = vadd.f32 %v1935_v60, %v3494_v44  ;;  %v1849_v2 = vpop.f32.mrf.mxu1  ;;  %v1761_v53 = vadd.f32 %v1760_v63, %v3464_v58 }
 0x224   :  { %v2025_v61 = vadd.f32 %v2024_v16, %v3496_v15  ;;  %v1850_v52 = vadd.f32 %v1849_v2, %v3466_v59 }
 0x225   :  { %2126 = vst [vmem:[#allocation10 + $0x1b0] sm:$0xff] %v1936_v43  ;;  %1799 = vmatmul.bf16.gmra.mxu0 %v3564_v45 }
 0x226   :  { %2127 = vst [vmem:[#allocation10 + $0x1b8] sm:$0xff] %v2025_v61  ;;  %1888 = vmatmul.bf16.gmra.mxu1 %v3564_v45 }
 0x227   :  { %2128 = vst [vmem:[#allocation10 + $0x1c0] sm:$0xff] %v1761_v53  ;;  %1977 = vmatmul.bf16.gmra.mxu2 %v3564_v45 }
 0x228   :  { %2066 = vmatmul.bf16.gmra.mxu3 %v3564_v45  ;;  %2129 = vst [vmem:[#allocation10 + $0x1c8] sm:$0xff] %v1850_v52 }
 0x22a   :  { %v1938_v25 = vpop.f32.mrf.mxu2  ;;  %v1762_v32 = vpop.f32.mrf.mxu0 }
 0x22b   :  { %v2027_v7 = vpop.f32.mrf.mxu3  ;;  %v1939_v1 = vadd.f32 %v1938_v25, %v3494_v44  ;;  %v1851_v22 = vpop.f32.mrf.mxu1  ;;  %v1763_v4 = vadd.f32 %v1762_v32, %v3464_v58 }
 0x22c   :  { %v2028_v3 = vadd.f32 %v2027_v7, %v3496_v15  ;;  %v1852_v9 = vadd.f32 %v1851_v22, %v3466_v59 }
 0x22d   :  { %2130 = vst [vmem:[#allocation10 + $0x1d0] sm:$0xff] %v1939_v1 }
 0x22e   :  { %2131 = vst [vmem:[#allocation10 + $0x1d8] sm:$0xff] %v2028_v3 }
 0x22f   :  { %2132 = vst [vmem:[#allocation10 + $0x1e0] sm:$0xff] %v1763_v4 }
 0x230   :  { %2133 = vst [vmem:[#allocation10 + $0x1e8] sm:$0xff] %v1852_v9 }
 0x232   :  { %v1940_v29 = vpop.f32.mrf.mxu2  ;;  %v1765_v6 = vpop.f32.mrf.mxu0 }
 0x233   :  { %v2029_v19 = vpop.f32.mrf.mxu3  ;;  %v1941_v45 = vadd.f32 %v1940_v29, %v3494_v44  ;;  %v1854_v10 = vpop.f32.mrf.mxu1  ;;  %v1766_v8 = vadd.f32 %v1765_v6, %v3464_v58 }
 0x234   :  { %v2030_v5 = vadd.f32 %v2029_v19, %v3496_v15  ;;  %v1855_v0 = vadd.f32 %v1854_v10, %v3466_v59 }
 0x235   :  { %2134 = vst [vmem:[#allocation10 + $0x1f0] sm:$0xff] %v1941_v45 }
 0x236   :  { %2135 = vst [vmem:[#allocation10 + $0x1f8] sm:$0xff] %v2030_v5 }
 0x237   :  { %2136 = vst [vmem:[#allocation10 + $0x200] sm:$0xff] %v1766_v8 }
 0x238   :  { %2137 = vst [vmem:[#allocation10 + $0x208] sm:$0xff] %v1855_v0 }
 0x23a   :  { %v1943_v12 = vpop.f32.mrf.mxu2  ;;  %v1767_v24 = vpop.f32.mrf.mxu0 }
 0x23b   :  { %v2032_v33 = vpop.f32.mrf.mxu3  ;;  %v1944_v18 = vadd.f32 %v1943_v12, %v3494_v44  ;;  %v1856_v26 = vpop.f32.mrf.mxu1  ;;  %v1768_v17 = vadd.f32 %v1767_v24, %v3464_v58 }
 0x23c   :  { %v2033_v20 = vadd.f32 %v2032_v33, %v3496_v15  ;;  %v1857_v27 = vadd.f32 %v1856_v26, %v3466_v59 }
 0x23d   :  { %2138 = vst [vmem:[#allocation10 + $0x210] sm:$0xff] %v1944_v18 }
 0x23e   :  { %2139 = vst [vmem:[#allocation10 + $0x218] sm:$0xff] %v2033_v20 }
 0x23f   :  { %2140 = vst [vmem:[#allocation10 + $0x220] sm:$0xff] %v1768_v17 }
 0x240   :  { %2141 = vst [vmem:[#allocation10 + $0x228] sm:$0xff] %v1857_v27 }
 0x242   :  { %v1945_v30 = vpop.f32.mrf.mxu2  ;;  %v1770_v14 = vpop.f32.mrf.mxu0 }
 0x243   :  { %v2034_v34 = vpop.f32.mrf.mxu3  ;;  %v1946_v35 = vadd.f32 %v1945_v30, %v3494_v44  ;;  %v1859_v37 = vpop.f32.mrf.mxu1  ;;  %v1771_v28 = vadd.f32 %v1770_v14, %v3464_v58 }
 0x244   :  { %v2035_v13 = vadd.f32 %v2034_v34, %v3496_v15  ;;  %v1860_v21 = vadd.f32 %v1859_v37, %v3466_v59 }
 0x245   :  { %2142 = vst [vmem:[#allocation10 + $0x230] sm:$0xff] %v1946_v35 }
 0x246   :  { %2143 = vst [vmem:[#allocation10 + $0x238] sm:$0xff] %v2035_v13 }
 0x247   :  { %2144 = vst [vmem:[#allocation10 + $0x240] sm:$0xff] %v1771_v28 }
 0x248   :  { %2145 = vst [vmem:[#allocation10 + $0x248] sm:$0xff] %v1860_v21 }
 0x24a   :  { %v1948_v41 = vpop.f32.mrf.mxu2  ;;  %v1772_v47 = vpop.f32.mrf.mxu0 }
 0x24b   :  { %v2037_v42 = vpop.f32.mrf.mxu3  ;;  %v1949_v54 = vadd.f32 %v1948_v41, %v3494_v44  ;;  %v1861_v36 = vpop.f32.mrf.mxu1  ;;  %v1773_v11 = vadd.f32 %v1772_v47, %v3464_v58 }
 0x24c   :  { %v2038_v46 = vadd.f32 %v2037_v42, %v3496_v15  ;;  %v1862_v31 = vadd.f32 %v1861_v36, %v3466_v59 }
 0x24d   :  { %2146 = vst [vmem:[#allocation10 + $0x250] sm:$0xff] %v1949_v54 }
 0x24e   :  { %2147 = vst [vmem:[#allocation10 + $0x258] sm:$0xff] %v2038_v46 }
 0x24f   :  { %2148 = vst [vmem:[#allocation10 + $0x260] sm:$0xff] %v1773_v11 }
 0x250   :  { %2149 = vst [vmem:[#allocation10 + $0x268] sm:$0xff] %v1862_v31 }
 0x252   :  { %v1950_v48 = vpop.f32.mrf.mxu2  ;;  %v1775_v50 = vpop.f32.mrf.mxu0 }
 0x253   :  { %v2039_v49 = vpop.f32.mrf.mxu3  ;;  %v1951_v39 = vadd.f32 %v1950_v48, %v3494_v44  ;;  %v1864_v38 = vpop.f32.mrf.mxu1  ;;  %v1776_v51 = vadd.f32 %v1775_v50, %v3464_v58 }
 0x254   :  { %v2040_v40 = vadd.f32 %v2039_v49, %v3496_v15  ;;  %v1865_v55 = vadd.f32 %v1864_v38, %v3466_v59 }
 0x255   :  { %2150 = vst [vmem:[#allocation10 + $0x270] sm:$0xff] %v1951_v39 }
 0x256   :  { %2151 = vst [vmem:[#allocation10 + $0x278] sm:$0xff] %v2040_v40 }
 0x257   :  { %2152 = vst [vmem:[#allocation10 + $0x280] sm:$0xff] %v1776_v51 }
 0x258   :  { %2153 = vst [vmem:[#allocation10 + $0x288] sm:$0xff] %v1865_v55 }
 0x25a   :  { %v1953_v62 = vpop.f32.mrf.mxu2  ;;  %v1777_v60 = vpop.f32.mrf.mxu0 }
 0x25b   :  { %v2042_v56 = vpop.f32.mrf.mxu3  ;;  %v1954_v57 = vadd.f32 %v1953_v62, %v3494_v44  ;;  %v1866_v16 = vpop.f32.mrf.mxu1  ;;  %v1778_v43 = vadd.f32 %v1777_v60, %v3464_v58 }
 0x25c   :  { %v2043_v23 = vadd.f32 %v2042_v56, %v3496_v15  ;;  %v1867_v61 = vadd.f32 %v1866_v16, %v3466_v59 }
 0x25d   :  { %2154 = vst [vmem:[#allocation10 + $0x290] sm:$0xff] %v1954_v57 }
 0x25e   :  { %2155 = vst [vmem:[#allocation10 + $0x298] sm:$0xff] %v2043_v23 }
 0x25f   :  { %2156 = vst [vmem:[#allocation10 + $0x2a0] sm:$0xff] %v1778_v43 }
 0x260   :  { %2157 = vst [vmem:[#allocation10 + $0x2a8] sm:$0xff] %v1867_v61 }
 0x262   :  { %v1955_v63 = vpop.f32.mrf.mxu2  ;;  %v1780_v25 = vpop.f32.mrf.mxu0 }
 0x263   :  { %v2044_v2 = vpop.f32.mrf.mxu3  ;;  %v1956_v53 = vadd.f32 %v1955_v63, %v3494_v44  ;;  %v1869_v7 = vpop.f32.mrf.mxu1  ;;  %v1781_v1 = vadd.f32 %v1780_v25, %v3464_v58 }
 0x264   :  { %v2045_v52 = vadd.f32 %v2044_v2, %v3496_v15  ;;  %v1870_v3 = vadd.f32 %v1869_v7, %v3466_v59 }
 0x265   :  { %2158 = vst [vmem:[#allocation10 + $0x2b0] sm:$0xff] %v1956_v53 }
 0x266   :  { %2159 = vst [vmem:[#allocation10 + $0x2b8] sm:$0xff] %v2045_v52 }
 0x267   :  { %2160 = vst [vmem:[#allocation10 + $0x2c0] sm:$0xff] %v1781_v1 }
 0x268   :  { %2161 = vst [vmem:[#allocation10 + $0x2c8] sm:$0xff] %v1870_v3 }
 0x26a   :  { %v1958_v32 = vpop.f32.mrf.mxu2  ;;  %v1782_v29 = vpop.f32.mrf.mxu0 }
 0x26b   :  { %v2047_v22 = vpop.f32.mrf.mxu3  ;;  %v1959_v4 = vadd.f32 %v1958_v32, %v3494_v44  ;;  %v1871_v19 = vpop.f32.mrf.mxu1  ;;  %v1783_v45 = vadd.f32 %v1782_v29, %v3464_v58 }
 0x26c   :  { %v2048_v9 = vadd.f32 %v2047_v22, %v3496_v15  ;;  %v1872_v5 = vadd.f32 %v1871_v19, %v3466_v59 }
 0x26d   :  { %2162 = vst [vmem:[#allocation10 + $0x2d0] sm:$0xff] %v1959_v4 }
 0x26e   :  { %2163 = vst [vmem:[#allocation10 + $0x2d8] sm:$0xff] %v2048_v9 }
 0x26f   :  { %2164 = vst [vmem:[#allocation10 + $0x2e0] sm:$0xff] %v1783_v45 }
 0x270   :  { %2165 = vst [vmem:[#allocation10 + $0x2e8] sm:$0xff] %v1872_v5 }
 0x272   :  { %v1960_v6 = vpop.f32.mrf.mxu2  ;;  %v1785_v12 = vpop.f32.mrf.mxu0 }
 0x273   :  { %v2049_v10 = vpop.f32.mrf.mxu3  ;;  %v1961_v8 = vadd.f32 %v1960_v6, %v3494_v44  ;;  %v1874_v33 = vpop.f32.mrf.mxu1  ;;  %v1786_v18 = vadd.f32 %v1785_v12, %v3464_v58 }
 0x274   :  { %v2050_v0 = vadd.f32 %v2049_v10, %v3496_v15  ;;  %v1875_v20 = vadd.f32 %v1874_v33, %v3466_v59 }
 0x275   :  { %2166 = vst [vmem:[#allocation10 + $0x2f0] sm:$0xff] %v1961_v8 }
 0x276   :  { %2167 = vst [vmem:[#allocation10 + $0x2f8] sm:$0xff] %v2050_v0 }
 0x277   :  { %2168 = vst [vmem:[#allocation10 + $0x300] sm:$0xff] %v1786_v18 }
 0x278   :  { %2169 = vst [vmem:[#allocation10 + $0x308] sm:$0xff] %v1875_v20 }
 0x27a   :  { %v1963_v24 = vpop.f32.mrf.mxu2  ;;  %v1787_v30 = vpop.f32.mrf.mxu0 }
 0x27b   :  { %v2052_v26 = vpop.f32.mrf.mxu3  ;;  %v1964_v17 = vadd.f32 %v1963_v24, %v3494_v44  ;;  %v1876_v34 = vpop.f32.mrf.mxu1  ;;  %v1788_v35 = vadd.f32 %v1787_v30, %v3464_v58 }
 0x27c   :  { %v2053_v27 = vadd.f32 %v2052_v26, %v3496_v15  ;;  %v1877_v13 = vadd.f32 %v1876_v34, %v3466_v59 }
 0x27d   :  { %2170 = vst [vmem:[#allocation10 + $0x310] sm:$0xff] %v1964_v17 }
 0x27e   :  { %2171 = vst [vmem:[#allocation10 + $0x318] sm:$0xff] %v2053_v27 }
 0x27f   :  { %2172 = vst [vmem:[#allocation10 + $0x320] sm:$0xff] %v1788_v35 }
 0x280   :  { %2173 = vst [vmem:[#allocation10 + $0x328] sm:$0xff] %v1877_v13 }
 0x282   :  { %v1965_v14 = vpop.f32.mrf.mxu2  ;;  %v1790_v41 = vpop.f32.mrf.mxu0 }
 0x283   :  { %v2054_v37 = vpop.f32.mrf.mxu3  ;;  %v1966_v28 = vadd.f32 %v1965_v14, %v3494_v44  ;;  %v1879_v42 = vpop.f32.mrf.mxu1  ;;  %v1791_v54 = vadd.f32 %v1790_v41, %v3464_v58 }
 0x284   :  { %v2055_v21 = vadd.f32 %v2054_v37, %v3496_v15  ;;  %v1880_v46 = vadd.f32 %v1879_v42, %v3466_v59 }
 0x285   :  { %2174 = vst [vmem:[#allocation10 + $0x330] sm:$0xff] %v1966_v28 }
 0x286   :  { %2175 = vst [vmem:[#allocation10 + $0x338] sm:$0xff] %v2055_v21 }
 0x287   :  { %2176 = vst [vmem:[#allocation10 + $0x340] sm:$0xff] %v1791_v54 }
 0x288   :  { %2177 = vst [vmem:[#allocation10 + $0x348] sm:$0xff] %v1880_v46 }
 0x28a   :  { %v1968_v47 = vpop.f32.mrf.mxu2  ;;  %v1792_v48 = vpop.f32.mrf.mxu0 }
 0x28b   :  { %v2057_v36 = vpop.f32.mrf.mxu3  ;;  %v1969_v11 = vadd.f32 %v1968_v47, %v3494_v44  ;;  %v1881_v49 = vpop.f32.mrf.mxu1  ;;  %v1793_v39 = vadd.f32 %v1792_v48, %v3464_v58 }
 0x28c   :  { %v2058_v31 = vadd.f32 %v2057_v36, %v3496_v15  ;;  %v1882_v40 = vadd.f32 %v1881_v49, %v3466_v59 }
 0x28d   :  { %2178 = vst [vmem:[#allocation10 + $0x350] sm:$0xff] %v1969_v11 }
 0x28e   :  { %2179 = vst [vmem:[#allocation10 + $0x358] sm:$0xff] %v2058_v31 }
 0x28f   :  { %2180 = vst [vmem:[#allocation10 + $0x360] sm:$0xff] %v1793_v39 }
 0x290   :  { %2181 = vst [vmem:[#allocation10 + $0x368] sm:$0xff] %v1882_v40 }
 0x292   :  { %v1970_v50 = vpop.f32.mrf.mxu2  ;;  %v1795_v62 = vpop.f32.mrf.mxu0 }
 0x293   :  { %v2059_v38 = vpop.f32.mrf.mxu3  ;;  %v1971_v51 = vadd.f32 %v1970_v50, %v3494_v44  ;;  %v1884_v56 = vpop.f32.mrf.mxu1  ;;  %v1796_v57 = vadd.f32 %v1795_v62, %v3464_v58 }
 0x294   :  { %v2060_v55 = vadd.f32 %v2059_v38, %v3496_v15  ;;  %v1885_v23 = vadd.f32 %v1884_v56, %v3466_v59 }
 0x295   :  { %2182 = vst [vmem:[#allocation10 + $0x370] sm:$0xff] %v1971_v51 }
 0x296   :  { %2183 = vst [vmem:[#allocation10 + $0x378] sm:$0xff] %v2060_v55 }
 0x297   :  { %2184 = vst [vmem:[#allocation10 + $0x380] sm:$0xff] %v1796_v57 }
 0x298   :  { %2185 = vst [vmem:[#allocation10 + $0x388] sm:$0xff] %v1885_v23 }
 0x29a   :  { %v1973_v60 = vpop.f32.mrf.mxu2  ;;  %v1797_v63 = vpop.f32.mrf.mxu0 }
 0x29b   :  { %v2062_v16 = vpop.f32.mrf.mxu3  ;;  %v1974_v43 = vadd.f32 %v1973_v60, %v3494_v44  ;;  %v1886_v2 = vpop.f32.mrf.mxu1  ;;  %v1798_v53 = vadd.f32 %v1797_v63, %v3464_v58 }
 0x29c   :  { %v2063_v61 = vadd.f32 %v2062_v16, %v3496_v15  ;;  %v1887_v52 = vadd.f32 %v1886_v2, %v3466_v59 }
 0x29d   :  { %2186 = vst [vmem:[#allocation10 + $0x390] sm:$0xff] %v1974_v43 }
 0x29e   :  { %2187 = vst [vmem:[#allocation10 + $0x398] sm:$0xff] %v2063_v61 }
 0x29f   :  { %2188 = vst [vmem:[#allocation10 + $0x3a0] sm:$0xff] %v1798_v53 }
 0x2a0   :  { %2189 = vst [vmem:[#allocation10 + $0x3a8] sm:$0xff] %v1887_v52 }
 0x2a2   :  { %v1975_v25 = vpop.f32.mrf.mxu2  ;;  %v1800_v32 = vpop.f32.mrf.mxu0 }
 0x2a3   :  { %v2064_v7 = vpop.f32.mrf.mxu3  ;;  %v1976_v1 = vadd.f32 %v1975_v25, %v3494_v44  ;;  %v1889_v22 = vpop.f32.mrf.mxu1  ;;  %v1801_v4 = vadd.f32 %v1800_v32, %v3464_v58 }
 0x2a4   :  { %v2065_v3 = vadd.f32 %v2064_v7, %v3496_v15  ;;  %v1890_v9 = vadd.f32 %v1889_v22, %v3466_v59 }
 0x2a5   :  { %2190 = vst [vmem:[#allocation10 + $0x3b0] sm:$0xff] %v1976_v1 }
 0x2a6   :  { %2191 = vst [vmem:[#allocation10 + $0x3b8] sm:$0xff] %v2065_v3 }
 0x2a7   :  { %2192 = vst [vmem:[#allocation10 + $0x3c0] sm:$0xff] %v1801_v4 }
 0x2a8   :  { %2193 = vst [vmem:[#allocation10 + $0x3c8] sm:$0xff] %v1890_v9 }
 0x2aa   :  { %v1978_v29 = vpop.f32.mrf.mxu2  ;;  %v1802_v6 = vpop.f32.mrf.mxu0 }
 0x2ab   :  { %v2067_v19 = vpop.f32.mrf.mxu3  ;;  %v1979_v45 = vadd.f32 %v1978_v29, %v3494_v44  ;;  %v1891_v10 = vpop.f32.mrf.mxu1  ;;  %v1803_v8 = vadd.f32 %v1802_v6, %v3464_v58 }
 0x2ac   :  { %v2068_v5 = vadd.f32 %v2067_v19, %v3496_v15  ;;  %v1892_v0 = vadd.f32 %v1891_v10, %v3466_v59 }
 0x2ad   :  { %2194 = vst [vmem:[#allocation10 + $0x3d0] sm:$0xff] %v1979_v45 }
 0x2ae   :  { %2195 = vst [vmem:[#allocation10 + $0x3d8] sm:$0xff] %v2068_v5 }
 0x2af   :  { %2196 = vst [vmem:[#allocation10 + $0x3e0] sm:$0xff] %v1803_v8 }
 0x2b0   :  { %2197 = vst [vmem:[#allocation10 + $0x3e8] sm:$0xff] %v1892_v0 }
 0x2b2   :  { %v1980_v12 = vpop.f32.mrf.mxu2 }
 0x2b3   :  { %v2069_v33 = vpop.f32.mrf.mxu3  ;;  %v1981_v18 = vadd.f32 %v1980_v12, %v3494_v44 }
 0x2b4   :  { %v2070_v20 = vadd.f32 %v2069_v33, %v3496_v15 }
 0x2b5   :  { %2198 = vst [vmem:[#allocation10 + $0x3f0] sm:$0xff] %v1981_v18 }
 0x2b6   :  { %2199 = vst [vmem:[#allocation10 + $0x3f8] sm:$0xff] %v2070_v20 }
 0x2b7   :  { %2212 = dma.vmem_to_hbm [thread:$0]  %s2205_s19, 16384, %s2207_s22, [#allocation4], %s2846_s30, %s2846_s30, %s2847_s6  }
 0x2b8   :  { %2840 = dma.done.wait [#allocation4], 16384  }
 0x2b9   :  { %2841 = vsyncadd [#allocation4], 4294950912 }
 0x2ba   :  { %2217 = vsyncpa [#allocation3], 1 }
 0x2bb   :  { %2218 = vsyncpa [#allocation6], 1 }
 0x2bc   :  { %2219 = vsyncpa [#allocation9], 1 }
 0x2bd   :  { %2220 = vsyncpa [#allocation4], 1 }

</bundles_post_ra>
